<compile_context>
chip_gen: v7x
topology: tpu7x:2x2x1
jax: 0.10.0
libtpu: 0.0.40
codegen_flags: <defaults>
</compile_context>

<pallas_src>
import functools
import math

import jax
import jax.numpy as jnp
from jax.experimental import pallas as pl
from jax.experimental.pallas import tpu as pltpu

LABEL_DIM = 100        # label_dim(x) >= 100 (default)
LABEL_EMB_DIM = 400    # forced by mlp_fc1 = Linear(400, 800)
FEATURE_DIM = 32
LN_EPS = 1e-5          # PyTorch nn.LayerNorm default eps
NEG = -1e30            # finite "-inf" for masked softmax logits
BT_MAX = 256           # batch tile: ~6.5 MB bf16 feature DMA per grid step
VMEM_LIMIT = 48 * 1024 * 1024   # fits v7x's 64 MiB physical VMEM with headroom

_SMEM = pl.BlockSpec(memory_space=pltpu.MemorySpace.SMEM)


def _layer_norm(x, gamma, beta):
    mu = jnp.mean(x, axis=-1, keepdims=True)
    var = jnp.mean((x - mu) ** 2, axis=-1, keepdims=True)   # biased variance
    return (x - mu) * jax.lax.rsqrt(var + LN_EPS) * gamma + beta


def _embed(lab_ref, wl_ref, bl_ref, gl_ref, betal_ref):
    emb = (jnp.dot(lab_ref[...], wl_ref[...],
                   preferred_element_type=jnp.float32) + bl_ref[...])
    return _layer_norm(emb, gl_ref[...], betal_ref[...])       # (bt, L) f32


def _ca_stats_kernel(feat_ref,                 # (bt, C, L) bf16  features tile
                     lab_ref,                  # (bt, D)    bf16  label tile
                     wf_ref,                   # (C, 1)     bf16  feature_fc col
                     bf_ref,                   # (1, 1)     f32   SMEM
                     wl_ref, bl_ref,           # (D, L) bf16, (1, L) f32
                     gl_ref, betal_ref,        # (1, L) f32 each
                     wca_ref,                  # (1, L)     f32   cross_attn row
                     bca_ref,                  # (1, 1)     f32   SMEM
                     ca_ref,                   # (1, L)     f32   output
                     m_ref, l_ref, acc_ref,    # scratch: running max/sum-exp/acc
                     *, batch):
    i = pl.program_id(0)
    bt = feat_ref.shape[0]

    @pl.when(i == 0)
    def _init():
        m_ref[...] = jnp.full_like(m_ref, NEG)
        l_ref[...] = jnp.zeros_like(l_ref)
        acc_ref[...] = jnp.zeros_like(acc_ref)

    # feature_fc on permuted features: VPU multiply + sublane (C) reduction
    # with f32 accumulation.  feat[b, l] = sum_c wf[c] * x[b, c, l] + bf.
    feat = (jnp.sum(feat_ref[...] * wf_ref[...], axis=1, dtype=jnp.float32)
            + bf_ref[0, 0])                                    # (bt, L) f32

    # label embedding + LayerNorm (f32 accumulation & norm math).
    emb = _embed(lab_ref, wl_ref, bl_ref, gl_ref, betal_ref)   # (bt, L) f32

    # cross_attention_fc (out_features == 1): VPU mul + lane reduction.
    wca = wca_ref[...]
    bca = bca_ref[0, 0]
    lf = jnp.sum(feat * wca, axis=-1, keepdims=True) + bca     # (bt, 1)
    le = jnp.sum(emb * wca, axis=-1, keepdims=True) + bca      # (bt, 1)

    # Mask rows that are batch padding.
    rows = i * bt + jax.lax.broadcasted_iota(jnp.int32, (bt, 1), 0)
    valid = rows < batch
    lf = jnp.where(valid, lf, NEG)
    le = jnp.where(valid, le, NEG)

    # Online (streaming) dim-0 softmax statistics across grid steps.
    m_prev = m_ref[...]                                        # (1, 1)
    m_new = jnp.maximum(m_prev, jnp.max(jnp.maximum(lf, le)))
    alpha = jnp.exp(m_prev - m_new)
    pf = jnp.where(valid, jnp.exp(lf - m_new), 0.0)
    pe = jnp.where(valid, jnp.exp(le - m_new), 0.0)
    l_ref[...] = alpha * l_ref[...] + jnp.sum(pf) + jnp.sum(pe)
    acc_ref[...] = (alpha * acc_ref[...]
                    + jnp.sum(pf * feat, axis=0, keepdims=True)
                    + jnp.sum(pe * emb, axis=0, keepdims=True))
    m_ref[...] = m_new

    @pl.when(i == pl.num_programs(0) - 1)
    def _finalize():
        ca_ref[...] = acc_ref[...] / l_ref[...]


def _head_kernel(lab_ref,                      # (bt, D)  bf16  label tile
                 ca_ref,                       # (1, L)   f32   cross-attn output
                 wl_ref, bl_ref,               # (D, L) bf16, (1, L) f32
                 gl_ref, betal_ref,            # (1, L) f32 each
                 w1_ref, b1_ref,               # (400, 800) bf16, (1, 800) f32
                 w2_ref, b2_ref,               # (800, 400) bf16, (1, 400) f32
                 w3_ref, b3_ref,               # (400, 64)  bf16, (1, 64)  f32
                 w4_ref,                       # (1, 64)    f32   ffn_fc2 row
                 b4_ref,                       # (1, 1)     f32   SMEM
                 out_ref):                     # (1, 1, bt) f32   lane-dense
    emb = _embed(lab_ref, wl_ref, bl_ref, gl_ref, betal_ref)   # (bt, L) f32

    mlp_in = (ca_ref[...] + emb).astype(jnp.bfloat16)          # (bt, 400)
    h = jnp.maximum(
        jnp.dot(mlp_in, w1_ref[...], preferred_element_type=jnp.float32)
        + b1_ref[...], 0.0)
    m2 = (jnp.dot(h.astype(jnp.bfloat16), w2_ref[...],
                  preferred_element_type=jnp.float32) + b2_ref[...])
    f = jnp.maximum(
        jnp.dot(m2.astype(jnp.bfloat16), w3_ref[...],
                preferred_element_type=jnp.float32) + b3_ref[...], 0.0)
    # ffn_fc2 (out_features == 1): VPU mul + lane reduction; lane-dense store.
    o = jnp.sum(f * w4_ref[...], axis=-1) + b4_ref[0, 0]       # (bt,)
    out_ref[...] = jax.nn.sigmoid(o).reshape(out_ref.shape)


def _round_up(x, m):
    return ((x + m - 1) // m) * m


def init_params(key):
    """Deterministic PyTorch-style (uniform +-1/sqrt(fan_in)) init, f32."""
    def linear(k, fan_in, fan_out):
        kw, kb = jax.random.split(k)
        bound = 1.0 / math.sqrt(fan_in)
        w = jax.random.uniform(kw, (fan_out, fan_in), jnp.float32, -bound, bound)
        b = jax.random.uniform(kb, (1, fan_out), jnp.float32, -bound, bound)
        return w, b

    keys = jax.random.split(key, 7)
    wf, bf = linear(keys[0], FEATURE_DIM, 1)                 # (1, 32), (1, 1)
    wl, bl = linear(keys[1], LABEL_DIM, LABEL_EMB_DIM)       # (400, 100), (1, 400)
    wca, bca = linear(keys[2], LABEL_EMB_DIM, 1)             # (1, 400), (1, 1)
    w1, b1 = linear(keys[3], 400, 800)
    w2, b2 = linear(keys[4], 800, 400)
    w3, b3 = linear(keys[5], 400, 64)
    w4, b4 = linear(keys[6], 64, 1)                          # (1, 64), (1, 1)
    return dict(
        wf=wf, bf=bf,                                        # row layout (1, C)
        wl=wl.T, bl=bl,                                      # (D, E)
        gl=jnp.ones((1, LABEL_EMB_DIM), jnp.float32),        # LayerNorm defaults
        betal=jnp.zeros((1, LABEL_EMB_DIM), jnp.float32),
        wca=wca, bca=bca,                                    # row layout (1, E)
        w1=w1.T, b1=b1, w2=w2.T, b2=b2, w3=w3.T, b3=b3,
        w4=w4, b4=b4,                                        # row layout (1, 64)
    )


@jax.jit
def rewarder_forward(features, label, params):
    p = params
    bf16 = jnp.bfloat16
    B, C, L = features.shape
    D = label.shape[1]

    bt = min(BT_MAX, _round_up(B, 8))
    nb = pl.cdiv(B, bt)
    b_pad = nb * bt
    pad = b_pad - B
    feats = jnp.pad(features, ((0, pad), (0, 0), (0, 0))).astype(bf16)
    lab = jnp.pad(label, ((0, pad), (0, 0))).astype(bf16)

    wf_col = p['wf'].reshape(C, 1).astype(bf16)
    wl = p['wl'].astype(bf16)
    w1 = p['w1'].astype(bf16)
    w2 = p['w2'].astype(bf16)
    w3 = p['w3'].astype(bf16)

    def const(shape):
        return pl.BlockSpec(shape, lambda i: (0,) * len(shape))

    # ---- Pass 1: stream features/labels once, accumulate dim-0 softmax ----
    ca = pl.pallas_call(
        functools.partial(_ca_stats_kernel, batch=B),
        out_shape=jax.ShapeDtypeStruct((1, L), jnp.float32),
        grid=(nb,),
        in_specs=[
            pl.BlockSpec((bt, C, L), lambda i: (i, 0, 0)),   # features tile
            pl.BlockSpec((bt, D), lambda i: (i, 0)),         # label tile
            const((C, 1)),                                   # wf column
            _SMEM,                                           # bf scalar
            const((D, L)), const((1, L)),                    # wl, bl
            const((1, L)), const((1, L)),                    # gl, betal
            const((1, L)),                                   # wca
            _SMEM,                                           # bca scalar
        ],
        out_specs=const((1, L)),
        scratch_shapes=[pltpu.VMEM((1, 1), jnp.float32),     # running max
                        pltpu.VMEM((1, 1), jnp.float32),     # running sum-exp
                        pltpu.VMEM((1, L), jnp.float32)],    # running weighted sum
        compiler_params=pltpu.CompilerParams(
            dimension_semantics=("arbitrary",),   # softmax couples batch tiles
            vmem_limit_bytes=VMEM_LIMIT),
    )(feats, lab, wf_col, p['bf'], wl, p['bl'], p['gl'], p['betal'],
      p['wca'], p['bca'])

    # ---- Pass 2: per-row MLP/FFN head; rows independent -> parallel -------
    out = pl.pallas_call(
        _head_kernel,
        out_shape=jax.ShapeDtypeStruct((nb, 1, bt), jnp.float32),
        grid=(nb,),
        in_specs=[
            pl.BlockSpec((bt, D), lambda i: (i, 0)),         # label tile
            const((1, L)),                                   # ca_out
            const((D, L)), const((1, L)),                    # wl, bl
            const((1, L)), const((1, L)),                    # gl, betal
            const((L, 800)), const((1, 800)),                # w1, b1
            const((800, L)), const((1, L)),                  # w2, b2
            const((L, 64)), const((1, 64)),                  # w3, b3
            const((1, 64)),                                  # w4
            _SMEM,                                           # b4 scalar
        ],
        out_specs=pl.BlockSpec((1, 1, bt), lambda i: (i, 0, 0)),
        compiler_params=pltpu.CompilerParams(
            dimension_semantics=("parallel",),               # v7x megacore split
            vmem_limit_bytes=VMEM_LIMIT),
    )(lab, ca, wl, p['bl'], p['gl'], p['betal'],
      w1, p['b1'], w2, p['b2'], w3, p['b3'], p['w4'], p['b4'])

    return out.reshape(b_pad)[:B].reshape(B, 1)


def rewarder_reference(features, label, p):
    """Pure-JAX f32 reference of the PyTorch forward (for a loose check)."""
    feat = jnp.einsum('bcl,c->bl', features, p['wf'][0]) + p['bf'][0, 0]
    emb = label @ p['wl'] + p['bl']
    mu = emb.mean(-1, keepdims=True)
    var = ((emb - mu) ** 2).mean(-1, keepdims=True)
    emb = (emb - mu) / jnp.sqrt(var + LN_EPS) * p['gl'] + p['betal']
    ca_in = jnp.concatenate([feat, emb], axis=0)
    logits = jnp.sum(ca_in * p['wca'], axis=-1, keepdims=True) + p['bca'][0, 0]
    w = jax.nn.softmax(logits, axis=0)
    ca_out = jnp.sum(w * ca_in, axis=0, keepdims=True)
    mlp_in = ca_out + emb
    h = jax.nn.relu(mlp_in @ p['w1'] + p['b1'])
    m = h @ p['w2'] + p['b2']
    f = jax.nn.relu(m @ p['w3'] + p['b3'])
    o = jnp.sum(f * p['w4'], axis=-1, keepdims=True) + p['b4'][0, 0]
    return jax.nn.sigmoid(o)


if __name__ == "__main__":
    key = jax.random.PRNGKey(0)
    kf, kl, kp = jax.random.split(key, 3)

    B = 2
    features = jax.random.normal(kf, (B, FEATURE_DIM, LABEL_EMB_DIM), jnp.float32)
    label = jax.random.normal(kl, (B, LABEL_DIM), jnp.float32)
    params = init_params(kp)

    out = rewarder_forward(features, label, params)
    jax.block_until_ready(out)
    assert out.shape == (B, 1)
    assert bool(jnp.all(jnp.isfinite(out)))

    ref = rewarder_reference(features, label, params)
    # bf16 matmul inputs with f32 accumulation -> loose tolerance vs f32 ref.
    assert bool(jnp.allclose(out, ref, atol=5e-2)), (out, ref)
    print("KERNEL_OK")
</pallas_src>

<mosaic_0001>
module attributes {stable_mosaic.version = 11 : i64} {
  func.func @_ca_stats_kernel(%arg0: i32, %arg1: memref<8x32x400xbf16, #tpu.memory_space<vmem>>, %arg2: memref<8x100xbf16, #tpu.memory_space<vmem>>, %arg3: memref<32x1xbf16, #tpu.memory_space<vmem>>, %arg4: memref<1x1xf32, #tpu.memory_space<smem>>, %arg5: memref<100x400xbf16, #tpu.memory_space<vmem>>, %arg6: memref<1x400xf32, #tpu.memory_space<vmem>>, %arg7: memref<1x400xf32, #tpu.memory_space<vmem>>, %arg8: memref<1x400xf32, #tpu.memory_space<vmem>>, %arg9: memref<1x400xf32, #tpu.memory_space<vmem>>, %arg10: memref<1x1xf32, #tpu.memory_space<smem>>, %arg11: memref<1x400xf32, #tpu.memory_space<vmem>>, %arg12: memref<1x1xf32, #tpu.memory_space<vmem>>, %arg13: memref<1x1xf32, #tpu.memory_space<vmem>>, %arg14: memref<1x400xf32, #tpu.memory_space<vmem>>) attributes {dimension_semantics = [#tpu.dimension_semantics<arbitrary>], iteration_bounds = array<i64: 1>, scalar_prefetch = 0 : i64, scratch_operands = 3 : i64, tpu.core_type = #tpu.core_type<tc>, window_params = [{transform_indices = @transform_0, window_bounds = array<i64: 8, 32, 400>}, {transform_indices = @transform_1, window_bounds = array<i64: 8, 100>}, {pipeline_mode = #tpu.pipeline_mode<synchronous>, transform_indices = @transform_2, window_bounds = array<i64: 32, 1>}, {transform_indices = @transform_3, window_bounds = array<i64: 1, 1>}, {pipeline_mode = #tpu.pipeline_mode<synchronous>, transform_indices = @transform_4, window_bounds = array<i64: 100, 400>}, {pipeline_mode = #tpu.pipeline_mode<synchronous>, transform_indices = @transform_5, window_bounds = array<i64: 1, 400>}, {pipeline_mode = #tpu.pipeline_mode<synchronous>, transform_indices = @transform_6, window_bounds = array<i64: 1, 400>}, {pipeline_mode = #tpu.pipeline_mode<synchronous>, transform_indices = @transform_7, window_bounds = array<i64: 1, 400>}, {pipeline_mode = #tpu.pipeline_mode<synchronous>, transform_indices = @transform_8, window_bounds = array<i64: 1, 400>}, {transform_indices = @transform_9, window_bounds = array<i64: 1, 1>}, {pipeline_mode = #tpu.pipeline_mode<synchronous>, transform_indices = @transform_10, window_bounds = array<i64: 1, 400>}]} {
    %c0_i32 = arith.constant 0 : i32
    %0 = arith.cmpi eq, %arg0, %c0_i32 : i32
    %1 = arith.extui %0 : i1 to i32
    %c0_i32_0 = arith.constant 0 : i32
    %2 = arith.cmpi ne, %1, %c0_i32_0 : i32
    scf.if %2 {
      %cst_52 = arith.constant -1.000000e+30 : f32
      %120 = vector.broadcast %cst_52 : f32 to vector<1x1xf32>
      %c0_53 = arith.constant 0 : index
      %c0_54 = arith.constant 0 : index
      %121 = vector.load %arg12[%c0_53, %c0_54] : memref<1x1xf32, #tpu.memory_space<vmem>>, vector<1x1xf32>
      tpu.vector_store %arg12[%c0_53, %c0_54], %120 {strides = array<i32>} : memref<1x1xf32, #tpu.memory_space<vmem>>, vector<1x1xf32>,
      %cst_55 = arith.constant 0.000000e+00 : f32
      %122 = vector.broadcast %cst_55 : f32 to vector<1x1xf32>
      %c0_56 = arith.constant 0 : index
      %c0_57 = arith.constant 0 : index
      %123 = vector.load %arg13[%c0_56, %c0_57] : memref<1x1xf32, #tpu.memory_space<vmem>>, vector<1x1xf32>
      tpu.vector_store %arg13[%c0_56, %c0_57], %122 {strides = array<i32>} : memref<1x1xf32, #tpu.memory_space<vmem>>, vector<1x1xf32>,
      %cst_58 = arith.constant 0.000000e+00 : f32
      %124 = vector.broadcast %cst_58 : f32 to vector<1x400xf32>
      %c0_59 = arith.constant 0 : index
      %c0_60 = arith.constant 0 : index
      %125 = vector.load %arg14[%c0_59, %c0_60] : memref<1x400xf32, #tpu.memory_space<vmem>>, vector<1x400xf32>
      tpu.vector_store %arg14[%c0_59, %c0_60], %124 {strides = array<i32>} : memref<1x400xf32, #tpu.memory_space<vmem>>, vector<1x400xf32>,
    } else {
    }
    %c0 = arith.constant 0 : index
    %c0_1 = arith.constant 0 : index
    %c0_2 = arith.constant 0 : index
    %3 = vector.load %arg1[%c0, %c0_1, %c0_2] : memref<8x32x400xbf16, #tpu.memory_space<vmem>>, vector<8x32x400xbf16>
    %c0_3 = arith.constant 0 : index
    %c0_4 = arith.constant 0 : index
    %4 = vector.load %arg3[%c0_3, %c0_4] : memref<32x1xbf16, #tpu.memory_space<vmem>>, vector<32x1xbf16>
    %5 = vector.shape_cast %4 : vector<32x1xbf16> to vector<1x32x1xbf16>
    %6 = vector.broadcast %5 : vector<1x32x1xbf16> to vector<8x32x400xbf16>
    %7 = arith.mulf %3, %6 : vector<8x32x400xbf16>
    %8 = arith.extf %7 : vector<8x32x400xbf16> to vector<8x32x400xf32>
    %cst = arith.constant dense<0.000000e+00> : vector<8x400xf32>
    %9 = vector.multi_reduction <add>, %8, %cst [1] : vector<8x32x400xf32> to vector<8x400xf32>
    %c0_5 = arith.constant 0 : index
    %c0_6 = arith.constant 0 : index
    %10 = memref.load %arg4[%c0_5, %c0_6] : memref<1x1xf32, #tpu.memory_space<smem>>
    %11 = vector.broadcast %10 : f32 to vector<8x400xf32>
    %12 = arith.addf %9, %11 : vector<8x400xf32>
    %c0_7 = arith.constant 0 : index
    %c0_8 = arith.constant 0 : index
    %13 = vector.load %arg2[%c0_7, %c0_8] : memref<8x100xbf16, #tpu.memory_space<vmem>>, vector<8x100xbf16>
    %c0_9 = arith.constant 0 : index
    %c0_10 = arith.constant 0 : index
    %14 = vector.load %arg5[%c0_9, %c0_10] : memref<100x400xbf16, #tpu.memory_space<vmem>>, vector<100x400xbf16>
    %cst_11 = arith.constant dense<0.000000e+00> : vector<8x400xf32>
    %15 = tpu.matmul %13, %14, %cst_11 {dimension_numbers = #tpu.dot_dimension_numbers<[1], [0], [0], [1], [0, 0, 1, 1], [], []>} : vector<8x100xbf16>, vector<100x400xbf16>, vector<8x400xf32> -> vector<8x400xf32>
    %c0_12 = arith.constant 0 : index
    %c0_13 = arith.constant 0 : index
    %16 = vector.load %arg6[%c0_12, %c0_13] : memref<1x400xf32, #tpu.memory_space<vmem>>, vector<1x400xf32>
    %17 = vector.broadcast %16 : vector<1x400xf32> to vector<8x400xf32>
    %18 = arith.addf %15, %17 : vector<8x400xf32>
    %c0_14 = arith.constant 0 : index
    %c0_15 = arith.constant 0 : index
    %19 = vector.load %arg7[%c0_14, %c0_15] : memref<1x400xf32, #tpu.memory_space<vmem>>, vector<1x400xf32>
    %c0_16 = arith.constant 0 : index
    %c0_17 = arith.constant 0 : index
    %20 = vector.load %arg8[%c0_16, %c0_17] : memref<1x400xf32, #tpu.memory_space<vmem>>, vector<1x400xf32>
    %cst_18 = arith.constant dense<0.000000e+00> : vector<8xf32>
    %21 = vector.multi_reduction <add>, %18, %cst_18 [1] : vector<8x400xf32> to vector<8xf32>
    %22 = vector.shape_cast %21 : vector<8xf32> to vector<8x1xf32>
    %cst_19 = arith.constant 4.000000e+02 : f32
    %23 = vector.broadcast %cst_19 : f32 to vector<8x1xf32>
    %24 = arith.divf %22, %23 : vector<8x1xf32>
    %25 = vector.broadcast %24 : vector<8x1xf32> to vector<8x400xf32>
    %26 = arith.subf %18, %25 : vector<8x400xf32>
    %27 = arith.mulf %26, %26 : vector<8x400xf32>
    %cst_20 = arith.constant dense<0.000000e+00> : vector<8xf32>
    %28 = vector.multi_reduction <add>, %27, %cst_20 [1] : vector<8x400xf32> to vector<8xf32>
    %29 = vector.shape_cast %28 : vector<8xf32> to vector<8x1xf32>
    %cst_21 = arith.constant 4.000000e+02 : f32
    %30 = vector.broadcast %cst_21 : f32 to vector<8x1xf32>
    %31 = arith.divf %29, %30 : vector<8x1xf32>
    %32 = vector.broadcast %24 : vector<8x1xf32> to vector<8x400xf32>
    %33 = arith.subf %18, %32 : vector<8x400xf32>
    %cst_22 = arith.constant 9.99999974E-6 : f32
    %34 = vector.broadcast %cst_22 : f32 to vector<8x1xf32>
    %35 = arith.addf %31, %34 : vector<8x1xf32>
    %36 = math.rsqrt %35 : vector<8x1xf32>
    %37 = vector.broadcast %36 : vector<8x1xf32> to vector<8x400xf32>
    %38 = arith.mulf %33, %37 : vector<8x400xf32>
    %39 = vector.broadcast %19 : vector<1x400xf32> to vector<8x400xf32>
    %40 = arith.mulf %38, %39 : vector<8x400xf32>
    %41 = vector.broadcast %20 : vector<1x400xf32> to vector<8x400xf32>
    %42 = arith.addf %40, %41 : vector<8x400xf32>
    %c0_23 = arith.constant 0 : index
    %c0_24 = arith.constant 0 : index
    %43 = vector.load %arg9[%c0_23, %c0_24] : memref<1x400xf32, #tpu.memory_space<vmem>>, vector<1x400xf32>
    %c0_25 = arith.constant 0 : index
    %c0_26 = arith.constant 0 : index
    %44 = memref.load %arg10[%c0_25, %c0_26] : memref<1x1xf32, #tpu.memory_space<smem>>
    %45 = vector.broadcast %43 : vector<1x400xf32> to vector<8x400xf32>
    %46 = arith.mulf %12, %45 : vector<8x400xf32>
    %cst_27 = arith.constant dense<0.000000e+00> : vector<8xf32>
    %47 = vector.multi_reduction <add>, %46, %cst_27 [1] : vector<8x400xf32> to vector<8xf32>
    %48 = vector.shape_cast %47 : vector<8xf32> to vector<8x1xf32>
    %49 = vector.broadcast %44 : f32 to vector<8x1xf32>
    %50 = arith.addf %48, %49 : vector<8x1xf32>
    %51 = vector.broadcast %43 : vector<1x400xf32> to vector<8x400xf32>
    %52 = arith.mulf %42, %51 : vector<8x400xf32>
    %cst_28 = arith.constant dense<0.000000e+00> : vector<8xf32>
    %53 = vector.multi_reduction <add>, %52, %cst_28 [1] : vector<8x400xf32> to vector<8xf32>
    %54 = vector.shape_cast %53 : vector<8xf32> to vector<8x1xf32>
    %55 = vector.broadcast %44 : f32 to vector<8x1xf32>
    %56 = arith.addf %54, %55 : vector<8x1xf32>
    %c8_i32 = arith.constant 8 : i32
    %57 = arith.muli %arg0, %c8_i32 : i32
    %58 = tpu.iota {dimensions = array<i32: 0>} : vector<8x1xi32>
    %59 = vector.broadcast %57 : i32 to vector<8x1xi32>
    %60 = arith.addi %59, %58 : vector<8x1xi32>
    %c2_i32 = arith.constant 2 : i32
    %61 = vector.broadcast %c2_i32 : i32 to vector<8x1xi32>
    %62 = arith.cmpi slt, %60, %61 : vector<8x1xi32>
    %cst_29 = arith.constant -1.000000e+30 : f32
    %63 = vector.broadcast %cst_29 : f32 to vector<8x1xf32>
    %64 = arith.select %62, %50, %63 : vector<8x1xi1>, vector<8x1xf32>
    %cst_30 = arith.constant -1.000000e+30 : f32
    %65 = vector.broadcast %cst_30 : f32 to vector<8x1xf32>
    %66 = arith.select %62, %56, %65 : vector<8x1xi1>, vector<8x1xf32>
    %c0_31 = arith.constant 0 : index
    %c0_32 = arith.constant 0 : index
    %67 = vector.load %arg12[%c0_31, %c0_32] : memref<1x1xf32, #tpu.memory_space<vmem>>, vector<1x1xf32>
    %68 = arith.maximumf %64, %66 : vector<8x1xf32>
    %69 = vector.shape_cast %68 : vector<8x1xf32> to vector<1x8x1xf32>
    %cst_33 = arith.constant dense<0xFF800000> : vector<1xf32>
    %70 = vector.multi_reduction <maximumf>, %69, %cst_33 [1, 2] : vector<1x8x1xf32> to vector<1xf32>
    %71 = vector.shape_cast %70 : vector<1xf32> to vector<1x1x1xf32>
    %72 = vector.extract %71[0, 0, 0] : f32 from vector<1x1x1xf32>
    %73 = vector.broadcast %72 : f32 to vector<1x1xf32>
    %74 = arith.maximumf %67, %73 : vector<1x1xf32>
    %75 = arith.subf %67, %74 : vector<1x1xf32>
    %76 = math.exp %75 : vector<1x1xf32>
    %77 = vector.broadcast %74 : vector<1x1xf32> to vector<8x1xf32>
    %78 = arith.subf %64, %77 : vector<8x1xf32>
    %79 = math.exp %78 : vector<8x1xf32>
    %cst_34 = arith.constant 0.000000e+00 : f32
    %80 = vector.broadcast %cst_34 : f32 to vector<8x1xf32>
    %81 = arith.select %62, %79, %80 : vector<8x1xi1>, vector<8x1xf32>
    %82 = vector.broadcast %74 : vector<1x1xf32> to vector<8x1xf32>
    %83 = arith.subf %66, %82 : vector<8x1xf32>
    %84 = math.exp %83 : vector<8x1xf32>
    %cst_35 = arith.constant 0.000000e+00 : f32
    %85 = vector.broadcast %cst_35 : f32 to vector<8x1xf32>
    %86 = arith.select %62, %84, %85 : vector<8x1xi1>, vector<8x1xf32>
    %c0_36 = arith.constant 0 : index
    %c0_37 = arith.constant 0 : index
    %87 = vector.load %arg13[%c0_36, %c0_37] : memref<1x1xf32, #tpu.memory_space<vmem>>, vector<1x1xf32>
    %88 = arith.mulf %76, %87 : vector<1x1xf32>
    %89 = vector.shape_cast %81 : vector<8x1xf32> to vector<1x8x1xf32>
    %cst_38 = arith.constant dense<0.000000e+00> : vector<1xf32>
    %90 = vector.multi_reduction <add>, %89, %cst_38 [1, 2] : vector<1x8x1xf32> to vector<1xf32>
    %91 = vector.shape_cast %90 : vector<1xf32> to vector<1x1x1xf32>
    %92 = vector.extract %91[0, 0, 0] : f32 from vector<1x1x1xf32>
    %93 = vector.broadcast %92 : f32 to vector<1x1xf32>
    %94 = arith.addf %88, %93 : vector<1x1xf32>
    %95 = vector.shape_cast %86 : vector<8x1xf32> to vector<1x8x1xf32>
    %cst_39 = arith.constant dense<0.000000e+00> : vector<1xf32>
    %96 = vector.multi_reduction <add>, %95, %cst_39 [1, 2] : vector<1x8x1xf32> to vector<1xf32>
    %97 = vector.shape_cast %96 : vector<1xf32> to vector<1x1x1xf32>
    %98 = vector.extract %97[0, 0, 0] : f32 from vector<1x1x1xf32>
    %99 = vector.broadcast %98 : f32 to vector<1x1xf32>
    %100 = arith.addf %94, %99 : vector<1x1xf32>
    %c0_40 = arith.constant 0 : index
    %c0_41 = arith.constant 0 : index
    %101 = vector.load %arg13[%c0_40, %c0_41] : memref<1x1xf32, #tpu.memory_space<vmem>>, vector<1x1xf32>
    tpu.vector_store %arg13[%c0_40, %c0_41], %100 {strides = array<i32>} : memref<1x1xf32, #tpu.memory_space<vmem>>, vector<1x1xf32>,
    %c0_42 = arith.constant 0 : index
    %c0_43 = arith.constant 0 : index
    %102 = vector.load %arg14[%c0_42, %c0_43] : memref<1x400xf32, #tpu.memory_space<vmem>>, vector<1x400xf32>
    %103 = vector.broadcast %76 : vector<1x1xf32> to vector<1x400xf32>
    %104 = arith.mulf %103, %102 : vector<1x400xf32>
    %105 = vector.broadcast %81 : vector<8x1xf32> to vector<8x400xf32>
    %106 = arith.mulf %105, %12 : vector<8x400xf32>
    %cst_44 = arith.constant dense<0.000000e+00> : vector<400xf32>
    %107 = vector.multi_reduction <add>, %106, %cst_44 [0] : vector<8x400xf32> to vector<400xf32>
    %108 = vector.shape_cast %107 : vector<400xf32> to vector<1x400xf32>
    %109 = arith.addf %104, %108 : vector<1x400xf32>
    %110 = vector.broadcast %86 : vector<8x1xf32> to vector<8x400xf32>
    %111 = arith.mulf %110, %42 : vector<8x400xf32>
    %cst_45 = arith.constant dense<0.000000e+00> : vector<400xf32>
    %112 = vector.multi_reduction <add>, %111, %cst_45 [0] : vector<8x400xf32> to vector<400xf32>
    %113 = vector.shape_cast %112 : vector<400xf32> to vector<1x400xf32>
    %114 = arith.addf %109, %113 : vector<1x400xf32>
    %c0_46 = arith.constant 0 : index
    %c0_47 = arith.constant 0 : index
    %115 = vector.load %arg14[%c0_46, %c0_47] : memref<1x400xf32, #tpu.memory_space<vmem>>, vector<1x400xf32>
    tpu.vector_store %arg14[%c0_46, %c0_47], %114 {strides = array<i32>} : memref<1x400xf32, #tpu.memory_space<vmem>>, vector<1x400xf32>,
    %c0_48 = arith.constant 0 : index
    %c0_49 = arith.constant 0 : index
    %116 = vector.load %arg12[%c0_48, %c0_49] : memref<1x1xf32, #tpu.memory_space<vmem>>, vector<1x1xf32>
    tpu.vector_store %arg12[%c0_48, %c0_49], %74 {strides = array<i32>} : memref<1x1xf32, #tpu.memory_space<vmem>>, vector<1x1xf32>,
    %c0_i32_50 = arith.constant 0 : i32
    %117 = arith.cmpi eq, %arg0, %c0_i32_50 : i32
    %118 = arith.extui %117 : i1 to i32
    %c0_i32_51 = arith.constant 0 : i32
    %119 = arith.cmpi ne, %118, %c0_i32_51 : i32
    scf.if %119 {
      %c0_52 = arith.constant 0 : index
      %c0_53 = arith.constant 0 : index
      %120 = vector.load %arg14[%c0_52, %c0_53] : memref<1x400xf32, #tpu.memory_space<vmem>>, vector<1x400xf32>
      %c0_54 = arith.constant 0 : index
      %c0_55 = arith.constant 0 : index
      %121 = vector.load %arg13[%c0_54, %c0_55] : memref<1x1xf32, #tpu.memory_space<vmem>>, vector<1x1xf32>
      %122 = vector.broadcast %121 : vector<1x1xf32> to vector<1x400xf32>
      %123 = arith.divf %120, %122 : vector<1x400xf32>
      %c0_56 = arith.constant 0 : index
      %c0_57 = arith.constant 0 : index
      %124 = vector.load %arg11[%c0_56, %c0_57] : memref<1x400xf32, #tpu.memory_space<vmem>>, vector<1x400xf32>
      tpu.vector_store %arg11[%c0_56, %c0_57], %123 {strides = array<i32>} : memref<1x400xf32, #tpu.memory_space<vmem>>, vector<1x400xf32>,
    } else {
    }
    return
  }
  func.func @transform_0(%arg0: i32) -> (i32, i32, i32) {
    %c0_i32 = arith.constant 0 : i32
    %c0_i32_0 = arith.constant 0 : i32
    %c0_i32_1 = arith.constant 0 : i32
    return %arg0, %c0_i32, %c0_i32_0 : i32, i32, i32
  }
  func.func @transform_1(%arg0: i32) -> (i32, i32) {
    %c0_i32 = arith.constant 0 : i32
    %c0_i32_0 = arith.constant 0 : i32
    return %arg0, %c0_i32 : i32, i32
  }
  func.func @transform_2(%arg0: i32) -> (i32, i32) {
    %c0_i32 = arith.constant 0 : i32
    %c0_i32_0 = arith.constant 0 : i32
    %c0_i32_1 = arith.constant 0 : i32
    return %c0_i32, %c0_i32_0 : i32, i32
  }
  func.func @transform_3(%arg0: i32) -> (i32, i32) {
    %c0_i32 = arith.constant 0 : i32
    %c0_i32_0 = arith.constant 0 : i32
    %c0_i32_1 = arith.constant 0 : i32
    return %c0_i32, %c0_i32_0 : i32, i32
  }
  func.func @transform_4(%arg0: i32) -> (i32, i32) {
    %c0_i32 = arith.constant 0 : i32
    %c0_i32_0 = arith.constant 0 : i32
    %c0_i32_1 = arith.constant 0 : i32
    return %c0_i32, %c0_i32_0 : i32, i32
  }
  func.func @transform_5(%arg0: i32) -> (i32, i32) {
    %c0_i32 = arith.constant 0 : i32
    %c0_i32_0 = arith.constant 0 : i32
    %c0_i32_1 = arith.constant 0 : i32
    return %c0_i32, %c0_i32_0 : i32, i32
  }
  func.func @transform_6(%arg0: i32) -> (i32, i32) {
    %c0_i32 = arith.constant 0 : i32
    %c0_i32_0 = arith.constant 0 : i32
    %c0_i32_1 = arith.constant 0 : i32
    return %c0_i32, %c0_i32_0 : i32, i32
  }
  func.func @transform_7(%arg0: i32) -> (i32, i32) {
    %c0_i32 = arith.constant 0 : i32
    %c0_i32_0 = arith.constant 0 : i32
    %c0_i32_1 = arith.constant 0 : i32
    return %c0_i32, %c0_i32_0 : i32, i32
  }
  func.func @transform_8(%arg0: i32) -> (i32, i32) {
    %c0_i32 = arith.constant 0 : i32
    %c0_i32_0 = arith.constant 0 : i32
    %c0_i32_1 = arith.constant 0 : i32
    return %c0_i32, %c0_i32_0 : i32, i32
  }
  func.func @transform_9(%arg0: i32) -> (i32, i32) {
    %c0_i32 = arith.constant 0 : i32
    %c0_i32_0 = arith.constant 0 : i32
    %c0_i32_1 = arith.constant 0 : i32
    return %c0_i32, %c0_i32_0 : i32, i32
  }
  func.func @transform_10(%arg0: i32) -> (i32, i32) {
    %c0_i32 = arith.constant 0 : i32
    %c0_i32_0 = arith.constant 0 : i32
    %c0_i32_1 = arith.constant 0 : i32
    return %c0_i32, %c0_i32_0 : i32, i32
  }
}

module attributes {stable_mosaic.version = 11 : i64} {
  func.func @_head_kernel(%arg0: i32, %arg1: memref<8x100xbf16, #tpu.memory_space<vmem>>, %arg2: memref<1x400xf32, #tpu.memory_space<vmem>>, %arg3: memref<100x400xbf16, #tpu.memory_space<vmem>>, %arg4: memref<1x400xf32, #tpu.memory_space<vmem>>, %arg5: memref<1x400xf32, #tpu.memory_space<vmem>>, %arg6: memref<1x400xf32, #tpu.memory_space<vmem>>, %arg7: memref<400x800xbf16, #tpu.memory_space<vmem>>, %arg8: memref<1x800xf32, #tpu.memory_space<vmem>>, %arg9: memref<800x400xbf16, #tpu.memory_space<vmem>>, %arg10: memref<1x400xf32, #tpu.memory_space<vmem>>, %arg11: memref<400x64xbf16, #tpu.memory_space<vmem>>, %arg12: memref<1x64xf32, #tpu.memory_space<vmem>>, %arg13: memref<1x64xf32, #tpu.memory_space<vmem>>, %arg14: memref<1x1xf32, #tpu.memory_space<smem>>, %arg15: memref<1x1x8xf32, #tpu.memory_space<vmem>>) attributes {dimension_semantics = [#tpu.dimension_semantics<parallel>], iteration_bounds = array<i64: 1>, scalar_prefetch = 0 : i64, scratch_operands = 0 : i64, tpu.core_type = #tpu.core_type<tc>, window_params = [{transform_indices = @transform_0, window_bounds = array<i64: 8, 100>}, {pipeline_mode = #tpu.pipeline_mode<synchronous>, transform_indices = @transform_1, window_bounds = array<i64: 1, 400>}, {pipeline_mode = #tpu.pipeline_mode<synchronous>, transform_indices = @transform_2, window_bounds = array<i64: 100, 400>}, {pipeline_mode = #tpu.pipeline_mode<synchronous>, transform_indices = @transform_3, window_bounds = array<i64: 1, 400>}, {pipeline_mode = #tpu.pipeline_mode<synchronous>, transform_indices = @transform_4, window_bounds = array<i64: 1, 400>}, {pipeline_mode = #tpu.pipeline_mode<synchronous>, transform_indices = @transform_5, window_bounds = array<i64: 1, 400>}, {pipeline_mode = #tpu.pipeline_mode<synchronous>, transform_indices = @transform_6, window_bounds = array<i64: 400, 800>}, {pipeline_mode = #tpu.pipeline_mode<synchronous>, transform_indices = @transform_7, window_bounds = array<i64: 1, 800>}, {pipeline_mode = #tpu.pipeline_mode<synchronous>, transform_indices = @transform_8, window_bounds = array<i64: 800, 400>}, {pipeline_mode = #tpu.pipeline_mode<synchronous>, transform_indices = @transform_9, window_bounds = array<i64: 1, 400>}, {pipeline_mode = #tpu.pipeline_mode<synchronous>, transform_indices = @transform_10, window_bounds = array<i64: 400, 64>}, {pipeline_mode = #tpu.pipeline_mode<synchronous>, transform_indices = @transform_11, window_bounds = array<i64: 1, 64>}, {pipeline_mode = #tpu.pipeline_mode<synchronous>, transform_indices = @transform_12, window_bounds = array<i64: 1, 64>}, {transform_indices = @transform_13, window_bounds = array<i64: 1, 1>}, {transform_indices = @transform_14, window_bounds = array<i64: 1, 1, 8>}]} {
    %c0 = arith.constant 0 : index
    %c0_0 = arith.constant 0 : index
    %0 = vector.load %arg1[%c0, %c0_0] : memref<8x100xbf16, #tpu.memory_space<vmem>>, vector<8x100xbf16>
    %c0_1 = arith.constant 0 : index
    %c0_2 = arith.constant 0 : index
    %1 = vector.load %arg3[%c0_1, %c0_2] : memref<100x400xbf16, #tpu.memory_space<vmem>>, vector<100x400xbf16>
    %cst = arith.constant dense<0.000000e+00> : vector<8x400xf32>
    %2 = tpu.matmul %0, %1, %cst {dimension_numbers = #tpu.dot_dimension_numbers<[1], [0], [0], [1], [0, 0, 1, 1], [], []>} : vector<8x100xbf16>, vector<100x400xbf16>, vector<8x400xf32> -> vector<8x400xf32>
    %c0_3 = arith.constant 0 : index
    %c0_4 = arith.constant 0 : index
    %3 = vector.load %arg4[%c0_3, %c0_4] : memref<1x400xf32, #tpu.memory_space<vmem>>, vector<1x400xf32>
    %4 = vector.broadcast %3 : vector<1x400xf32> to vector<8x400xf32>
    %5 = arith.addf %2, %4 : vector<8x400xf32>
    %c0_5 = arith.constant 0 : index
    %c0_6 = arith.constant 0 : index
    %6 = vector.load %arg5[%c0_5, %c0_6] : memref<1x400xf32, #tpu.memory_space<vmem>>, vector<1x400xf32>
    %c0_7 = arith.constant 0 : index
    %c0_8 = arith.constant 0 : index
    %7 = vector.load %arg6[%c0_7, %c0_8] : memref<1x400xf32, #tpu.memory_space<vmem>>, vector<1x400xf32>
    %cst_9 = arith.constant dense<0.000000e+00> : vector<8xf32>
    %8 = vector.multi_reduction <add>, %5, %cst_9 [1] : vector<8x400xf32> to vector<8xf32>
    %9 = vector.shape_cast %8 : vector<8xf32> to vector<8x1xf32>
    %cst_10 = arith.constant 4.000000e+02 : f32
    %10 = vector.broadcast %cst_10 : f32 to vector<8x1xf32>
    %11 = arith.divf %9, %10 : vector<8x1xf32>
    %12 = vector.broadcast %11 : vector<8x1xf32> to vector<8x400xf32>
    %13 = arith.subf %5, %12 : vector<8x400xf32>
    %14 = arith.mulf %13, %13 : vector<8x400xf32>
    %cst_11 = arith.constant dense<0.000000e+00> : vector<8xf32>
    %15 = vector.multi_reduction <add>, %14, %cst_11 [1] : vector<8x400xf32> to vector<8xf32>
    %16 = vector.shape_cast %15 : vector<8xf32> to vector<8x1xf32>
    %cst_12 = arith.constant 4.000000e+02 : f32
    %17 = vector.broadcast %cst_12 : f32 to vector<8x1xf32>
    %18 = arith.divf %16, %17 : vector<8x1xf32>
    %19 = vector.broadcast %11 : vector<8x1xf32> to vector<8x400xf32>
    %20 = arith.subf %5, %19 : vector<8x400xf32>
    %cst_13 = arith.constant 9.99999974E-6 : f32
    %21 = vector.broadcast %cst_13 : f32 to vector<8x1xf32>
    %22 = arith.addf %18, %21 : vector<8x1xf32>
    %23 = math.rsqrt %22 : vector<8x1xf32>
    %24 = vector.broadcast %23 : vector<8x1xf32> to vector<8x400xf32>
    %25 = arith.mulf %20, %24 : vector<8x400xf32>
    %26 = vector.broadcast %6 : vector<1x400xf32> to vector<8x400xf32>
    %27 = arith.mulf %25, %26 : vector<8x400xf32>
    %28 = vector.broadcast %7 : vector<1x400xf32> to vector<8x400xf32>
    %29 = arith.addf %27, %28 : vector<8x400xf32>
    %c0_14 = arith.constant 0 : index
    %c0_15 = arith.constant 0 : index
    %30 = vector.load %arg2[%c0_14, %c0_15] : memref<1x400xf32, #tpu.memory_space<vmem>>, vector<1x400xf32>
    %31 = vector.broadcast %30 : vector<1x400xf32> to vector<8x400xf32>
    %32 = arith.addf %31, %29 : vector<8x400xf32>
    %33 = arith.truncf %32 : vector<8x400xf32> to vector<8x400xbf16>
    %c0_16 = arith.constant 0 : index
    %c0_17 = arith.constant 0 : index
    %34 = vector.load %arg7[%c0_16, %c0_17] : memref<400x800xbf16, #tpu.memory_space<vmem>>, vector<400x800xbf16>
    %cst_18 = arith.constant dense<0.000000e+00> : vector<8x800xf32>
    %35 = tpu.matmul %33, %34, %cst_18 {dimension_numbers = #tpu.dot_dimension_numbers<[1], [0], [0], [1], [0, 0, 1, 1], [], []>} : vector<8x400xbf16>, vector<400x800xbf16>, vector<8x800xf32> -> vector<8x800xf32>
    %c0_19 = arith.constant 0 : index
    %c0_20 = arith.constant 0 : index
    %36 = vector.load %arg8[%c0_19, %c0_20] : memref<1x800xf32, #tpu.memory_space<vmem>>, vector<1x800xf32>
    %37 = vector.broadcast %36 : vector<1x800xf32> to vector<8x800xf32>
    %38 = arith.addf %35, %37 : vector<8x800xf32>
    %cst_21 = arith.constant 0.000000e+00 : f32
    %39 = vector.broadcast %cst_21 : f32 to vector<8x800xf32>
    %40 = arith.maximumf %38, %39 : vector<8x800xf32>
    %41 = arith.truncf %40 : vector<8x800xf32> to vector<8x800xbf16>
    %c0_22 = arith.constant 0 : index
    %c0_23 = arith.constant 0 : index
    %42 = vector.load %arg9[%c0_22, %c0_23] : memref<800x400xbf16, #tpu.memory_space<vmem>>, vector<800x400xbf16>
    %cst_24 = arith.constant dense<0.000000e+00> : vector<8x400xf32>
    %43 = tpu.matmul %41, %42, %cst_24 {dimension_numbers = #tpu.dot_dimension_numbers<[1], [0], [0], [1], [0, 0, 1, 1], [], []>} : vector<8x800xbf16>, vector<800x400xbf16>, vector<8x400xf32> -> vector<8x400xf32>
    %c0_25 = arith.constant 0 : index
    %c0_26 = arith.constant 0 : index
    %44 = vector.load %arg10[%c0_25, %c0_26] : memref<1x400xf32, #tpu.memory_space<vmem>>, vector<1x400xf32>
    %45 = vector.broadcast %44 : vector<1x400xf32> to vector<8x400xf32>
    %46 = arith.addf %43, %45 : vector<8x400xf32>
    %47 = arith.truncf %46 : vector<8x400xf32> to vector<8x400xbf16>
    %c0_27 = arith.constant 0 : index
    %c0_28 = arith.constant 0 : index
    %48 = vector.load %arg11[%c0_27, %c0_28] : memref<400x64xbf16, #tpu.memory_space<vmem>>, vector<400x64xbf16>
    %cst_29 = arith.constant dense<0.000000e+00> : vector<8x64xf32>
    %49 = tpu.matmul %47, %48, %cst_29 {dimension_numbers = #tpu.dot_dimension_numbers<[1], [0], [0], [1], [0, 0, 1, 1], [], []>} : vector<8x400xbf16>, vector<400x64xbf16>, vector<8x64xf32> -> vector<8x64xf32>
    %c0_30 = arith.constant 0 : index
    %c0_31 = arith.constant 0 : index
    %50 = vector.load %arg12[%c0_30, %c0_31] : memref<1x64xf32, #tpu.memory_space<vmem>>, vector<1x64xf32>
    %51 = vector.broadcast %50 : vector<1x64xf32> to vector<8x64xf32>
    %52 = arith.addf %49, %51 : vector<8x64xf32>
    %cst_32 = arith.constant 0.000000e+00 : f32
    %53 = vector.broadcast %cst_32 : f32 to vector<8x64xf32>
    %54 = arith.maximumf %52, %53 : vector<8x64xf32>
    %c0_33 = arith.constant 0 : index
    %c0_34 = arith.constant 0 : index
    %55 = vector.load %arg13[%c0_33, %c0_34] : memref<1x64xf32, #tpu.memory_space<vmem>>, vector<1x64xf32>
    %56 = vector.broadcast %55 : vector<1x64xf32> to vector<8x64xf32>
    %57 = arith.mulf %54, %56 : vector<8x64xf32>
    %cst_35 = arith.constant dense<0.000000e+00> : vector<8xf32>
    %58 = vector.multi_reduction <add>, %57, %cst_35 [1] : vector<8x64xf32> to vector<8xf32>
    %c0_36 = arith.constant 0 : index
    %c0_37 = arith.constant 0 : index
    %59 = memref.load %arg14[%c0_36, %c0_37] : memref<1x1xf32, #tpu.memory_space<smem>>
    %60 = vector.broadcast %59 : f32 to vector<8xf32>
    %61 = arith.addf %58, %60 : vector<8xf32>
    %62 = arith.negf %61 : vector<8xf32>
    %63 = math.exp %62 : vector<8xf32>
    %cst_38 = arith.constant 1.000000e+00 : f32
    %64 = vector.broadcast %cst_38 : f32 to vector<8xf32>
    %65 = arith.addf %64, %63 : vector<8xf32>
    %66 = arith.divf %64, %65 : vector<8xf32>
    %67 = vector.shape_cast %66 : vector<8xf32> to vector<1x1x8xf32>
    %c0_39 = arith.constant 0 : index
    %c0_40 = arith.constant 0 : index
    %c0_41 = arith.constant 0 : index
    %68 = vector.load %arg15[%c0_39, %c0_40, %c0_41] : memref<1x1x8xf32, #tpu.memory_space<vmem>>, vector<1x1x8xf32>
    tpu.vector_store %arg15[%c0_39, %c0_40, %c0_41], %67 {strides = array<i32>} : memref<1x1x8xf32, #tpu.memory_space<vmem>>, vector<1x1x8xf32>,
    return
  }
  func.func @transform_0(%arg0: i32) -> (i32, i32) {
    %c0_i32 = arith.constant 0 : i32
    %c0_i32_0 = arith.constant 0 : i32
    return %arg0, %c0_i32 : i32, i32
  }
  func.func @transform_1(%arg0: i32) -> (i32, i32) {
    %c0_i32 = arith.constant 0 : i32
    %c0_i32_0 = arith.constant 0 : i32
    %c0_i32_1 = arith.constant 0 : i32
    return %c0_i32, %c0_i32_0 : i32, i32
  }
  func.func @transform_2(%arg0: i32) -> (i32, i32) {
    %c0_i32 = arith.constant 0 : i32
    %c0_i32_0 = arith.constant 0 : i32
    %c0_i32_1 = arith.constant 0 : i32
    return %c0_i32, %c0_i32_0 : i32, i32
  }
  func.func @transform_3(%arg0: i32) -> (i32, i32) {
    %c0_i32 = arith.constant 0 : i32
    %c0_i32_0 = arith.constant 0 : i32
    %c0_i32_1 = arith.constant 0 : i32
    return %c0_i32, %c0_i32_0 : i32, i32
  }
  func.func @transform_4(%arg0: i32) -> (i32, i32) {
    %c0_i32 = arith.constant 0 : i32
    %c0_i32_0 = arith.constant 0 : i32
    %c0_i32_1 = arith.constant 0 : i32
    return %c0_i32, %c0_i32_0 : i32, i32
  }
  func.func @transform_5(%arg0: i32) -> (i32, i32) {
    %c0_i32 = arith.constant 0 : i32
    %c0_i32_0 = arith.constant 0 : i32
    %c0_i32_1 = arith.constant 0 : i32
    return %c0_i32, %c0_i32_0 : i32, i32
  }
  func.func @transform_6(%arg0: i32) -> (i32, i32) {
    %c0_i32 = arith.constant 0 : i32
    %c0_i32_0 = arith.constant 0 : i32
    %c0_i32_1 = arith.constant 0 : i32
    return %c0_i32, %c0_i32_0 : i32, i32
  }
  func.func @transform_7(%arg0: i32) -> (i32, i32) {
    %c0_i32 = arith.constant 0 : i32
    %c0_i32_0 = arith.constant 0 : i32
    %c0_i32_1 = arith.constant 0 : i32
    return %c0_i32, %c0_i32_0 : i32, i32
  }
  func.func @transform_8(%arg0: i32) -> (i32, i32) {
    %c0_i32 = arith.constant 0 : i32
    %c0_i32_0 = arith.constant 0 : i32
    %c0_i32_1 = arith.constant 0 : i32
    return %c0_i32, %c0_i32_0 : i32, i32
  }
  func.func @transform_9(%arg0: i32) -> (i32, i32) {
    %c0_i32 = arith.constant 0 : i32
    %c0_i32_0 = arith.constant 0 : i32
    %c0_i32_1 = arith.constant 0 : i32
    return %c0_i32, %c0_i32_0 : i32, i32
  }
  func.func @transform_10(%arg0: i32) -> (i32, i32) {
    %c0_i32 = arith.constant 0 : i32
    %c0_i32_0 = arith.constant 0 : i32
    %c0_i32_1 = arith.constant 0 : i32
    return %c0_i32, %c0_i32_0 : i32, i32
  }
  func.func @transform_11(%arg0: i32) -> (i32, i32) {
    %c0_i32 = arith.constant 0 : i32
    %c0_i32_0 = arith.constant 0 : i32
    %c0_i32_1 = arith.constant 0 : i32
    return %c0_i32, %c0_i32_0 : i32, i32
  }
  func.func @transform_12(%arg0: i32) -> (i32, i32) {
    %c0_i32 = arith.constant 0 : i32
    %c0_i32_0 = arith.constant 0 : i32
    %c0_i32_1 = arith.constant 0 : i32
    return %c0_i32, %c0_i32_0 : i32, i32
  }
  func.func @transform_13(%arg0: i32) -> (i32, i32) {
    %c0_i32 = arith.constant 0 : i32
    %c0_i32_0 = arith.constant 0 : i32
    %c0_i32_1 = arith.constant 0 : i32
    return %c0_i32, %c0_i32_0 : i32, i32
  }
  func.func @transform_14(%arg0: i32) -> (i32, i32, i32) {
    %c0_i32 = arith.constant 0 : i32
    %c0_i32_0 = arith.constant 0 : i32
    %c0_i32_1 = arith.constant 0 : i32
    return %arg0, %c0_i32, %c0_i32_0 : i32, i32, i32
  }
}

</mosaic_0001>

<bundles_post_ra>
// kernel: rewarder_forward.2
= control target key start
LH: loop header
LB: loop body
LE: loop exit
PB: predicated region body
PF: predicated region fallthrough
CT: control target
= control target key end

     0   :  { %17 = vsyncpa [#allocation8], 0  ;;  %s3319_s0 = inlined_call_operand.vmem [shape: bf16[8,32,400], index: 0, kind: input, shape index: {}]   ;;  %s3320_s1 = inlined_call_operand.vmem [shape: bf16[8,100], index: 1, kind: input, shape index: {}]   ;;  %s3321_s2 = inlined_call_operand.vmem [shape: bf16[32,1], index: 2, kind: input, shape index: {}]   ;;  %s3322_s3 = inlined_call_operand.<no memory space> [shape: f32[1,1], index: 3, kind: input, shape index: {}]   ;;  %s3323_s4 = inlined_call_operand.vmem [shape: bf16[100,400], index: 4, kind: input, shape index: {}]   ;;  %s3324_s5 = inlined_call_operand.hbm [shape: f32[1,400], index: 5, kind: input, shape index: {}]   ;;  %s3325_s6 = inlined_call_operand.hbm [shape: f32[1,400], index: 6, kind: input, shape index: {}]   ;;  %s3326_s7 = inlined_call_operand.hbm [shape: f32[1,400], index: 7, kind: input, shape index: {}]   ;;  %s3327_s8 = inlined_call_operand.hbm [shape: f32[1,400], index: 8, kind: input, shape index: {}]   ;;  %s3328_s9 = inlined_call_operand.<no memory space> [shape: f32[1,1], index: 9, kind: input, shape index: {}]   ;;  %s3329_s10 = inlined_call_operand.vmem [shape: f32[1,400], index: 10, kind: output, shape index: {}]  }
   0x1   :  { %18 = vsyncpa [#allocation10], 0 }
   0x2   :  { %19 = vsyncpa [#allocation13], 0  ;;  %s1783_s13 = smov [#allocation9]   ;;  %s1784_s15 = smov [#allocation7]  }
   0x3   :  { %s46_s14 = sshll.u32 %s1783_s13, 4  ;;  %s36_s16 = sshll.u32 %s1784_s15, 4  ;;  %s47_s14 = int_to_ptr.vmem [resolvable:$true] %s46_s14  ;;  %s37_s16 = int_to_ptr.vmem [resolvable:$true] %s36_s16 }
   0x4   :  { %s1689_s19 = scalar_lea.hbm %s3325_s6, 64 }
   0x5   :  { %p1690_p0 = scmp.ne.s32.totalorder %s3325_s6, %s1689_s19  ;;  %p1693_p1 = scmp.lt.u32.totalorder %s1689_s19, %s3325_s6 }
   0x7   :  { %p1695_p2 = pnand %p1693_p1, %p1690_p0 }
   0x9   :  { %1698 = shalt.err (!%p1695_p2)
}
   0xa   :  { %s1699_s24 = scalar_lea.vmem %s47_s14, 64  ;;  %p1704_p4 = scmp.lt.s32.totalorder %s47_s14, %s47_s14 }
   0xb   :  { %p1700_p3 = scmp.ne.s32.totalorder %s47_s14, %s1699_s24  ;;  %p1705_p5 = scmp.lt.s32.totalorder %s1699_s24, %s1699_s24 }
   0xd   :  { %p1706_p6 = por %p1705_p5, %p1704_p4 }
   0xf   :  { %p1707_p7 = pnand %p1706_p6, %p1700_p3 }
  0x11   :  { %1710 = shalt.err (!%p1707_p7)
}
  0x12   :  { %49 = dma.hbm_to_vmem [thread:$0]  %s3325_s6, 64, %s47_s14, [#allocation10]  }
  0x13   :  { %s1711_s29 = scalar_lea.hbm %s3324_s5, 64 }
  0x14   :  { %p1712_p8 = scmp.ne.s32.totalorder %s3324_s5, %s1711_s29  ;;  %p1715_p9 = scmp.lt.u32.totalorder %s1711_s29, %s3324_s5 }
  0x16   :  { %p1717_p10 = pnand %p1715_p9, %p1712_p8 }
  0x18   :  { %1720 = shalt.err (!%p1717_p10)
}
  0x19   :  { %s1721_s15 = scalar_lea.vmem %s37_s16, 64  ;;  %p1726_p12 = scmp.lt.s32.totalorder %s37_s16, %s37_s16 }
  0x1a   :  { %p1722_p11 = scmp.ne.s32.totalorder %s37_s16, %s1721_s15  ;;  %p1727_p13 = scmp.lt.s32.totalorder %s1721_s15, %s1721_s15 }
  0x1c   :  { %p1728_p0 = por %p1727_p13, %p1726_p12 }
  0x1e   :  { %p1729_p1 = pnand %p1728_p0, %p1722_p11 }
  0x20   :  { %1732 = shalt.err (!%p1729_p1)
}
  0x21   :  { %39 = dma.hbm_to_vmem [thread:$0]  %s3324_s5, 64, %s37_s16, [#allocation8]  }
  0x22   :  { %s1785_s17 = smov [#allocation11]   ;;  %s1786_s19 = smov [#allocation12]  }
  0x23   :  { %s56_s18 = sshll.u32 %s1785_s17, 4  ;;  %s66_s20 = sshll.u32 %s1786_s19, 4  ;;  %s57_s18 = int_to_ptr.vmem [resolvable:$true] %s56_s18  ;;  %s67_s20 = int_to_ptr.vmem [resolvable:$true] %s66_s20 }
  0x24   :  { %s1733_s23 = scalar_lea.hbm %s3326_s7, 64 }
  0x25   :  { %p1734_p2 = scmp.ne.s32.totalorder %s3326_s7, %s1733_s23  ;;  %p1737_p3 = scmp.lt.u32.totalorder %s1733_s23, %s3326_s7 }
  0x27   :  { %p1739_p4 = pnand %p1737_p3, %p1734_p2 }
  0x29   :  { %1742 = shalt.err (!%p1739_p4)
}
  0x2a   :  { %s1743_s5 = scalar_lea.vmem %s57_s18, 64  ;;  %p1748_p6 = scmp.lt.s32.totalorder %s57_s18, %s57_s18 }
  0x2b   :  { %p1744_p5 = scmp.ne.s32.totalorder %s57_s18, %s1743_s5  ;;  %p1749_p7 = scmp.lt.s32.totalorder %s1743_s5, %s1743_s5 }
  0x2d   :  { %p1750_p8 = por %p1749_p7, %p1748_p6 }
  0x2f   :  { %p1751_p9 = pnand %p1750_p8, %p1744_p5 }
  0x31   :  { %1754 = shalt.err (!%p1751_p9)
}
  0x32   :  { %59 = dma.hbm_to_vmem [thread:$0]  %s3326_s7, 64, %s57_s18, [#allocation10]  }
  0x33   :  { %s1755_s11 = scalar_lea.hbm %s3327_s8, 64 }
  0x34   :  { %p1756_p10 = scmp.ne.s32.totalorder %s3327_s8, %s1755_s11  ;;  %p1759_p11 = scmp.lt.u32.totalorder %s1755_s11, %s3327_s8 }
  0x36   :  { %p1761_p12 = pnand %p1759_p11, %p1756_p10 }
  0x38   :  { %1764 = shalt.err (!%p1761_p12)
}
  0x39   :  { %s1765_s14 = scalar_lea.vmem %s67_s20, 64  ;;  %p1770_p0 = scmp.lt.s32.totalorder %s67_s20, %s67_s20 }
  0x3a   :  { %p1766_p13 = scmp.ne.s32.totalorder %s67_s20, %s1765_s14  ;;  %p1771_p1 = scmp.lt.s32.totalorder %s1765_s14, %s1765_s14 }
  0x3c   :  { %p1772_p2 = por %p1771_p1, %p1770_p0 }
  0x3e   :  { %p1773_p3 = pnand %p1772_p2, %p1766_p13 }
  0x40   :  { %1776 = shalt.err (!%p1773_p3)
}
  0x41   :  { %69 = dma.hbm_to_vmem [thread:$0]  %s3327_s8, 64, %s67_s20, [#allocation13]  }
  0x42   :  { %1777 = dma.done.wait [#allocation8], 64  }
  0x43   :  { %1778 = vsyncadd [#allocation8], 4294967232 }
  0x44   :  { %1779 = dma.done.wait [#allocation10], 128  }
  0x45   :  { %1780 = vsyncadd [#allocation10], 4294967168 }
  0x46   :  { %1781 = dma.done.wait [#allocation13], 64  }
  0x47   :  { %1782 = vsyncadd [#allocation13], 4294967232  ;;  %v1787_v0 = vmov 0   ;;  %v1639_v1 = vld [vmem:[%s3323_s4 + $0x4] ss:$16 sps:$4 sm:$0xff]   ;;  %vm943_vm0 = vcmask 1041408   ;;  %v3330_v37 = vlaneseq }
  0x48   :  { %988 = vmatprep.mubr.bf16.mxu0 %v1787_v0  ;;  %1029 = vmatprep.mubr.bf16.mxu1 %v1787_v0  ;;  %v1641_v2 = vld [vmem:[%s3323_s4 + $0xc] ss:$16 sps:$4 sm:$0xff]   ;;  %v1643_v3 = vld [vmem:[%s3323_s4] ss:$16 sps:$4 sm:$0xff]   ;;  %v1644_v4 = vld [vmem:[%s3323_s4 + $0x8] ss:$16 sps:$4 sm:$0xff]  }
  0x49   :  { %1638 = vset.pattern.permute.xlu1 %v1787_v0  ;;  %1637 = vset.pattern.permute.xlu0 %v1787_v0  ;;  %v1645_v5 = vld [vmem:[%s3323_s4 + $0x24] ss:$16 sps:$4 sm:$0xff]   ;;  %v1647_v6 = vld [vmem:[%s3323_s4 + $0x2c] ss:$16 sps:$4 sm:$0xff]   ;;  %v1649_v7 = vld [vmem:[%s3323_s4 + $0x20] ss:$16 sps:$4 sm:$0xff]  }
  0x4a   :  { %956 = vmatprep.subr.bf16.mxu0 %v1639_v1  ;;  %997 = vmatprep.subr.bf16.mxu1 %v1641_v2  ;;  %v1650_v8 = vld [vmem:[%s3323_s4 + $0x28] ss:$16 sps:$4 sm:$0xff]   ;;  %v1651_v9 = vld [vmem:[%s3323_s4 + $0x44] ss:$16 sps:$4 sm:$0xff]   ;;  %v1653_v10 = vld [vmem:[%s3323_s4 + $0x4c] ss:$16 sps:$4 sm:$0xff]  }
  0x4b   :  { %957 = vmatpush1.bf16.msra.mxu0 %v1643_v3  ;;  %998 = vmatpush1.bf16.msra.mxu1 %v1644_v4  ;;  %v1655_v11 = vld [vmem:[%s3323_s4 + $0x40] ss:$16 sps:$4 sm:$0xff]   ;;  %v1656_v12 = vld [vmem:[%s3323_s4 + $0x48] ss:$16 sps:$4 sm:$0xff]   ;;  %v1657_v13 = vld [vmem:[%s3323_s4 + $0x64] ss:$16 sps:$4 sm:$0xff]  }
  0x4c   :  { %958 = vmatprep.subr.bf16.mxu0 %v1645_v5  ;;  %999 = vmatprep.subr.bf16.mxu1 %v1647_v6  ;;  %v1659_v14 = vld [vmem:[%s3323_s4 + $0x6c] ss:$16 sps:$4 sm:$0xff]   ;;  %v1661_v15 = vld [vmem:[%s3323_s4 + $0x60] ss:$16 sps:$4 sm:$0xff]   ;;  %v1662_v16 = vld [vmem:[%s3323_s4 + $0x68] ss:$16 sps:$4 sm:$0xff]  }
  0x4d   :  { %v1663_v17 = vld [vmem:[%s3323_s4 + $0x84] ss:$16 sps:$4 sm:$0xff]   ;;  %v1665_v18 = vld [vmem:[%s3323_s4 + $0x8c] ss:$16 sps:$4 sm:$0xff]   ;;  %v1667_v19 = vld [vmem:[%s3323_s4 + $0x80] ss:$16 sps:$4 sm:$0xff]  }
  0x4e   :  { %v1668_v20 = vld [vmem:[%s3323_s4 + $0x88] ss:$16 sps:$4 sm:$0xff]   ;;  %v1669_v21 = vld [vmem:[%s3323_s4 + $0xa4] ss:$16 sps:$4 sm:$0xff]   ;;  %v1671_v22 = vld [vmem:[%s3323_s4 + $0xac] ss:$16 sps:$4 sm:$0xff]  }
  0x4f   :  { %959 = vmatpush1.bf16.msra.mxu0 %v1649_v7  ;;  %1000 = vmatpush1.bf16.msra.mxu1 %v1650_v8  ;;  %v785_v23 = vld [vmem:[%s3323_s4 + $0xc0] sm:$0x33]  ;;  %v786_v24 = vld [vmem:[%s3323_s4 + $0xc8] sm:$0x33]  ;;  %vm939_vm1 = vcmask 818176   ;;  %v1986_v38 = vshrl.u32 %v3330_v37, 7 }
  0x50   :  { %960 = vmatprep.subr.bf16.mxu0 %v1651_v9  ;;  %1001 = vmatprep.subr.bf16.mxu1 %v1653_v10  ;;  %v1673_v25 = vld [vmem:[%s3323_s4 + $0xa0] ss:$16 sps:$4 sm:$0xff]   ;;  %v1674_v26 = vld [vmem:[%s3323_s4 + $0xa8] ss:$16 sps:$4 sm:$0xff]   ;;  %v1615_v27 = vcombine.high %v785_v23, %v785_v23  ;;  %v1617_v28 = vcombine.high %v786_v24, %v786_v24  ;;  %v1614_v29 = vcombine.low %v785_v23, %v785_v23  ;;  %v162_v34 = vld [vmem:[%s3321_s2 + $0x4] sm:$0xf] }
  0x51   :  { %v1616_v30 = vcombine.low %v786_v24, %v786_v24  ;;  %v760_v33 = vld [vmem:[%s3320_s1] sm:$0xf]  ;;  %179 = vperm.xlu1 %1638, %v162_v34   ;;  %v163_v35 = vld [vmem:[%s3321_s2 + $0x8] sm:$0xf]  ;;  %v164_v36 = vld [vmem:[%s3321_s2 + $0xc] sm:$0xf] }
  0x52   :  { %v945_v31 = vsel %vm943_vm0, %v1614_v29, 0  ;;  %3412 = vst [vmem:[#allocation17_spill] sm:$0xff] %v1986_v38  ;;  %v1989_v39 = vsub.s32 0, %v1986_v38  ;;  %v787_v40 = vld [vmem:[#allocation7] sm:$0xf]  ;;  %v1992_v41 = vsub.s32 2, %v1986_v38 }
  0x53   :  { %961 = vmatpush1.bf16.msra.mxu0 %v1655_v11  ;;  %1002 = vmatpush1.bf16.msra.mxu1 %v1656_v12  ;;  %v951_v32 = vsel %vm943_vm0, %v1616_v30, 0  ;;  %v1995_v42 = vsub.s32 1, %v1986_v38  ;;  %v1998_v43 = vsub.s32 3, %v1986_v38  ;;  %vm432_vm2 = vcmask 130048   ;;  %v161_v0 = vld [vmem:[%s3321_s2] sm:$0xf] }
  0x54   :  { %962 = vmatprep.subr.bf16.mxu0 %v1657_v13  ;;  %1003 = vmatprep.subr.bf16.mxu1 %v1659_v14  ;;  %3413 = vst [vmem:[#allocation18_spill] sm:$0xff] %v1989_v39  ;;  %3414 = vst [vmem:[#allocation19_spill] sm:$0xff] %v1992_v41  ;;  %v792_v44 = vrot.slane %v787_v40, %v1989_v39  ;;  %v800_v45 = vrot.slane %v787_v40, %v1992_v41  ;;  %v1788_v2 = vmov 839922192   ;;  %v1119_v7 = vld [vmem:[#allocation12] sm:$0xf] }
  0x55   :  { %191 = vperm.xlu1 %1638, %v163_v35   ;;  %3415 = vst [vmem:[#allocation20_spill] sm:$0xff] %v1995_v42  ;;  %3416 = vst [vmem:[#allocation21_spill] sm:$0xff] %v1998_v43  ;;  %v796_v46 = vrot.slane %v787_v40, %v1995_v42  ;;  %v804_v47 = vrot.slane %v787_v40, %v1998_v43  ;;  %v171_v3 = vunpack.c.l.s4 %v1788_v2  ;;  %v99_v8 = vld [vmem:[%s3319_s0 + $0x10] sm:$0xff]  ;;  %v100_v9 = vld [vmem:[%s3319_s0 + $0x18] sm:$0xff]  ;;  %vm1207_vm3 = vcmask 1041409  }
  0x56   :  { %v101_v11 = vld [vmem:[%s3319_s0 + $0x20] sm:$0xff]  ;;  %v102_v12 = vld [vmem:[%s3319_s0 + $0x28] sm:$0xff]  ;;  %v107_v13 = vld [vmem:[%s3319_s0 + $0x50] sm:$0xff]  ;;  %vm1210_vm4 = vcmask 1042434   ;;  %vm1213_vm5 = vcmask 1043459   ;;  %vm1216_vm6 = vcmask 1044484  }
  0x57   :  { %963 = vmatpush1.bf16.msra.mxu0 %v1661_v15  ;;  %1004 = vmatpush1.bf16.msra.mxu1 %v1662_v16  ;;  %v172_v4 = vunpack.c.0.s8 %v171_v3  ;;  %v103_v15 = vld [vmem:[%s3319_s0 + $0x30] sm:$0xff]  ;;  %v104_v16 = vld [vmem:[%s3319_s0 + $0x38] sm:$0xff]  ;;  %v118_v29 = vld [vmem:[%s3319_s0 + $0xa8] sm:$0xff]  ;;  %vm1219_vm7 = vcmask 1045509   ;;  %vm1222_vm8 = vcmask 1046534   ;;  %vm1225_vm9 = vcmask 1047559  }
  0x58   :  { %964 = vmatprep.subr.bf16.mxu0 %v1663_v17  ;;  %1005 = vmatprep.subr.bf16.mxu1 %v1665_v18  ;;  %v108_v17 = vld [vmem:[%s3319_s0 + $0x58] sm:$0xff]  ;;  %v109_v18 = vld [vmem:[%s3319_s0 + $0x60] sm:$0xff]  ;;  %v115_v23 = vld [vmem:[%s3319_s0 + $0x90] sm:$0xff]  ;;  %vm89_vm10 = vcmask 0   ;;  %vm1330_vm13 = vcmask 7168  }
  0x59   :  { %203 = vperm.xlu1 %1638, %v164_v36   ;;  %v2021_v6 = vsub.s32 %v172_v4, %v1986_v38  ;;  %v116_v24 = vld [vmem:[%s3319_s0 + $0x98] sm:$0xff]  ;;  %v119_v30 = vld [vmem:[%s3319_s0 + $0xb0] sm:$0xff]  ;;  %v125_v36 = vld [vmem:[%s3319_s0 + $0xe0] sm:$0xff] }
  0x5a   :  { %v123_v34 = vld [vmem:[%s3319_s0 + $0xd0] sm:$0xff]  ;;  %v124_v35 = vld [vmem:[%s3319_s0 + $0xd8] sm:$0xff] }
  0x5b   :  { %965 = vmatpush1.bf16.msra.mxu0 %v1667_v19  ;;  %1006 = vmatpush1.bf16.msra.mxu1 %v1668_v20  ;;  %v110_v19 = vld [vmem:[%s3319_s0 + $0x68] sm:$0xff]  ;;  %v155_v37 = vld [vmem:[%s3319_s0 + $0x1d0] sm:$0xff]  ;;  %v156_v38 = vld [vmem:[%s3319_s0 + $0x1d8] sm:$0xff] }
  0x5c   :  { %966 = vmatprep.subr.bf16.mxu0 %v1669_v21  ;;  %1007 = vmatprep.subr.bf16.mxu1 %v1671_v22  ;;  %v111_v21 = vld [vmem:[%s3319_s0 + $0x70] sm:$0xff]  ;;  %v112_v22 = vld [vmem:[%s3319_s0 + $0x78] sm:$0xff] }
  0x5f   :  { %967 = vmatpush1.bf16.msra.mxu0 %v1673_v25  ;;  %1008 = vmatpush1.bf16.msra.mxu1 %v1674_v26  ;;  %v2072_v25 = vrot.slane %v1119_v7, %v1989_v39  ;;  %v2075_v26 = vrot.slane %v1119_v7, %v1992_v41  ;;  %v158_v41 = vld [vmem:[%s3319_s0 + $0x1e8] sm:$0xff]  ;;  %v160_v39 = vld [vmem:[%s3319_s0 + $0x1f8] sm:$0xff] }
  0x60   :  { %1618 = vmatprep.subr.msk.bf16.mxu0 %vm943_vm0, %v1615_v27  ;;  %1620 = vmatprep.subr.msk.bf16.mxu1 %vm943_vm0, %v1617_v28  ;;  %v117_v28 = vld [vmem:[%s3319_s0 + $0xa0] sm:$0xff] }
  0x61   :  { %3417 = vst [vmem:[#allocation22_spill] sm:$0xff] %v2072_v25  ;;  %3418 = vst [vmem:[#allocation23_spill] sm:$0xff] %v2075_v26 }
  0x63   :  { %969 = vmatpush1.bf16.msra.mxu0 %v945_v31  ;;  %1010 = vmatpush1.bf16.msra.mxu1 %v951_v32  ;;  %v120_v31 = vld [vmem:[%s3319_s0 + $0xb8] sm:$0xff]  ;;  %v2093_v32 = vrot.slane %v1119_v7, %v1995_v42 }
  0x65   :  { %3419 = vst [vmem:[#allocation24_spill] sm:$0xff] %v2093_v32 }
  0x66   :  { %1619 = vmatmul.mubr.msk.bf16.vlgmr.msra.gmra.mrb[0].mxu0 %vm939_vm1, %v760_v33  ;;  %1621 = vmatmul.mubr.msk.bf16.vlgmr.msra.gmra.mrb[0].mxu1 %vm939_vm1, %v760_v33  ;;  %v2096_v33 = vrot.slane %v1119_v7, %v1998_v43  ;;  %v139_v7 = vld [vmem:[%s3319_s0 + $0x150] sm:$0xff]  ;;  %v157_v43 = vld [vmem:[%s3319_s0 + $0x1e0] sm:$0xff] }
  0x68   :  { %3420 = vst [vmem:[#allocation25_spill] sm:$0xff] %v2096_v33 }
  0xd0   :  { %v180_v1 = vpop.permute.xlu1 %179 }
  0xd1   :  { %v2039_v14 = vrot.slane %v180_v1, %v2021_v6  ;;  %v136_v1 = vld [vmem:[%s3319_s0 + $0x138] sm:$0xff] }
  0xd3   :  { %v2108_v40 = vmul.bf16 %v2039_v14, %v99_v8  ;;  %v2171_v4 = vmul.bf16 %v2039_v14, %v115_v23  ;;  %v140_v8 = vld [vmem:[%s3319_s0 + $0x158] sm:$0xff]  ;;  %v147_v23 = vld [vmem:[%s3319_s0 + $0x190] sm:$0xff] }
  0xd4   :  { %v192_v5 = vpop.permute.xlu1 %191 }
  0xd5   :  { %v2057_v20 = vrot.slane %v192_v5, %v2021_v6  ;;  %v2174_v5 = vmul.bf16 %v2039_v14, %v116_v24  ;;  %v148_v24 = vld [vmem:[%s3319_s0 + $0x198] sm:$0xff] }
  0xd6   :  { %v2297_v42 = vmul.bf16 %v2039_v14, %v148_v24  ;;  %v2318_v24 = vmul.bf16 %v2039_v14, %v156_v38 }
  0xd7   :  { %v2323_v25 = vmul.bf16 %v2057_v20, %v157_v43 }
  0xd8   :  { %v204_v10 = vpop.permute.xlu1 %203  ;;  %3434 = vst [vmem:[#allocation39_spill] sm:$0xff] %v2297_v42  ;;  %3440 = vst [vmem:[#allocation45_spill] sm:$0xff] %v2318_v24  ;;  %v396_v32 = vunpack.c.h.bf16 %v2318_v24 }
  0xd9   :  { %v2078_v27 = vrot.slane %v204_v10, %v2021_v6  ;;  %v2186_v10 = vmul.bf16 %v2057_v20, %v117_v28  ;;  %v149_v28 = vld [vmem:[%s3319_s0 + $0x1a0] sm:$0xff]  ;;  %3441 = vst [vmem:[#allocation46_spill] sm:$0xff] %v2323_v25 }
  0xda   :  { %v2303_v33 = vmul.bf16 %v2057_v20, %v149_v28  ;;  %v380_v28 = vunpack.c.h.bf16 %v2297_v42 }
  0xdb   :  { %v2165_v2 = vmul.bf16 %v2078_v27, %v111_v21  ;;  %v2168_v3 = vmul.bf16 %v2078_v27, %v112_v22  ;;  %v2213_v21 = vmul.bf16 %v2057_v20, %v125_v36  ;;  %v151_v36 = vld [vmem:[%s3319_s0 + $0x1b0] sm:$0xff] }
  0xdc   :  { %3435 = vst [vmem:[#allocation40_spill] sm:$0xff] %v2303_v33 }
 0x139   :  { %v990_v48 = vpop.f32.mrb[0].mxu0  ;;  %v1031_v49 = vpop.f32.mrb[0].mxu1 }
 0x13a   :  { %v2004_v50 = vadd.f32 %v990_v48, %v792_v44  ;;  %v992_v51 = vpop.f32.mrb[1].mxu0  ;;  %v1033_v52 = vpop.f32.mrb[1].mxu1  ;;  %v2006_v53 = vadd.f32 %v1031_v49, %v800_v45  ;;  %v2111_v44 = vmul.bf16 %v2039_v14, %v100_v9  ;;  %v126_v45 = vld [vmem:[%s3319_s0 + $0xe8] sm:$0xff]  ;;  %v2123_v48 = vmul.bf16 %v2057_v20, %v101_v11  ;;  %v141_v9 = vld [vmem:[%s3319_s0 + $0x160] sm:$0xff] }
 0x13b   :  { %v2008_v54 = vadd.f32 %v992_v51, %v796_v46  ;;  %v2010_v55 = vadd.f32 %v1033_v52, %v804_v47  ;;  %v994_v56 = vpop.f32.mrb[2].mxu0  ;;  %v1035_v57 = vpop.f32.mrb[2].mxu1  ;;  %v127_v46 = vld [vmem:[%s3319_s0 + $0xf0] sm:$0xff]  ;;  %v128_v47 = vld [vmem:[%s3319_s0 + $0xf8] sm:$0xff]  ;;  %v2126_v49 = vmul.bf16 %v2057_v20, %v102_v12  ;;  %v2129_v51 = vmul.bf16 %v2039_v14, %v107_v13 }
 0x13c   :  { %v995_v58 = vpop.f32.mrb[3].mxu0  ;;  %v1036_v59 = vpop.f32.mrb[3].mxu1  ;;  %v2132_v52 = vmul.bf16 %v2039_v14, %v108_v17  ;;  %v131_v56 = vld [vmem:[%s3319_s0 + $0x110] sm:$0xff]  ;;  %v132_v57 = vld [vmem:[%s3319_s0 + $0x118] sm:$0xff]  ;;  %v2189_v11 = vmul.bf16 %v2057_v20, %v118_v29  ;;  %v2192_v12 = vmul.bf16 %v2078_v27, %v119_v30  ;;  %v2195_v13 = vmul.bf16 %v2078_v27, %v120_v31 }
 0x13d   :  { %v1040_v60 = vadd.f32 %v2008_v54, %v2004_v50  ;;  %v1042_v61 = vsel %vm432_vm2, %v2010_v55, 0.0  ;;  %v133_v58 = vld [vmem:[%s3319_s0 + $0x120] sm:$0xff]  ;;  %v2144_v59 = vmul.bf16 %v2078_v27, %v103_v15  ;;  %v142_v15 = vld [vmem:[%s3319_s0 + $0x168] sm:$0xff]  ;;  %v144_v17 = vld [vmem:[%s3319_s0 + $0x178] sm:$0xff]  ;;  %v2216_v22 = vmul.bf16 %v2057_v20, %v126_v45 }
 0x13e   :  { %v2228_v29 = vmul.bf16 %v2078_v27, %v127_v46  ;;  %v2231_v30 = vmul.bf16 %v2078_v27, %v128_v47  ;;  %v2234_v31 = vmul.bf16 %v2039_v14, %v131_v56  ;;  %v152_v45 = vld [vmem:[%s3319_s0 + $0x1b8] sm:$0xff]  ;;  %v2249_v46 = vmul.bf16 %v2057_v20, %v133_v58 }
 0x13f   :  { %v1041_v62 = vadd.f32 %v1040_v60, %v2006_v53  ;;  %v2147_v60 = vmul.bf16 %v2078_v27, %v104_v16  ;;  %v143_v16 = vld [vmem:[%s3319_s0 + $0x170] sm:$0xff]  ;;  %v2267_v58 = vmul.bf16 %v2039_v14, %v139_v7 }
 0x140   :  { %3421 = vst [vmem:[#allocation26_spill] sm:$0xff] %v2234_v31  ;;  %3423 = vst [vmem:[#allocation28_spill] sm:$0xff] %v2249_v46  ;;  %v159_v7 = vld [vmem:[%s3319_s0 + $0x1f0] sm:$0xff]  ;;  %v98_v46 = vld [vmem:[%s3319_s0 + $0x8] sm:$0xff] }
 0x141   :  { %v1043_v63 = vadd.f32 %v1042_v61, %v1041_v62  ;;  %v2150_v61 = vmul.bf16 %v2057_v20, %v109_v18  ;;  %v2153_v62 = vmul.bf16 %v2057_v20, %v110_v19  ;;  %v2207_v18 = vmul.bf16 %v2039_v14, %v123_v34  ;;  %3427 = vst [vmem:[#allocation32_spill] sm:$0xff] %v2267_v58 }
 0x142   :  { %v2210_v19 = vmul.bf16 %v2039_v14, %v124_v35  ;;  %v2237_v34 = vmul.bf16 %v2039_v14, %v132_v57  ;;  %v150_v35 = vld [vmem:[%s3319_s0 + $0x1a8] sm:$0xff]  ;;  %v2258_v57 = vmul.bf16 %v2078_v27, %v136_v1  ;;  %v2276_v1 = vmul.bf16 %v2057_v20, %v142_v15 }
 0x143   :  { %1044 = vadd.xlane.f32.xlu0 %v1043_v63  ;;  %v134_v63 = vld [vmem:[%s3319_s0 + $0x128] sm:$0xff]  ;;  %v2294_v15 = vmul.bf16 %v2039_v14, %v147_v23  ;;  %v2306_v26 = vmul.bf16 %v2057_v20, %v150_v35  ;;  %v2315_v23 = vmul.bf16 %v2039_v14, %v155_v37  ;;  %v2326_v35 = vmul.bf16 %v2057_v20, %v158_v41 }
 0x144   :  { %3422 = vst [vmem:[#allocation27_spill] sm:$0xff] %v2237_v34  ;;  %v2252_v47 = vmul.bf16 %v2057_v20, %v134_v63  ;;  %3426 = vst [vmem:[#allocation31_spill] sm:$0xff] %v2258_v57  ;;  %v2270_v63 = vmul.bf16 %v2039_v14, %v140_v8  ;;  %v2288_v8 = vmul.bf16 %v2078_v27, %v143_v16  ;;  %v3472_v58 = vunpack.c.h.bf16 %v2276_v1 }
 0x145   :  { %3430 = vst [vmem:[#allocation35_spill] sm:$0xff] %v2276_v1  ;;  %3433 = vst [vmem:[#allocation38_spill] sm:$0xff] %v2294_v15  ;;  %v2309_v16 = vmul.bf16 %v2078_v27, %v151_v36  ;;  %v2329_v36 = vmul.bf16 %v2078_v27, %v159_v7  ;;  %v2333_v37 = vmul.bf16 %v2078_v27, %v160_v39  ;;  %v400_v38 = vunpack.c.h.bf16 %v2326_v35 }
 0x146   :  { %3424 = vst [vmem:[#allocation29_spill] sm:$0xff] %v2252_v47  ;;  %3428 = vst [vmem:[#allocation33_spill] sm:$0xff] %v2270_v63  ;;  %v3460_v15 = vunpack.c.h.bf16 %v2216_v22 }
 0x147   :  { %3431 = vst [vmem:[#allocation36_spill] sm:$0xff] %v2288_v8  ;;  %3436 = vst [vmem:[#allocation41_spill] sm:$0xff] %v2306_v26  ;;  %v404_v43 = vunpack.c.h.bf16 %v2333_v37 }
 0x148   :  { %3437 = vst [vmem:[#allocation42_spill] sm:$0xff] %v2309_v16  ;;  %3439 = vst [vmem:[#allocation44_spill] sm:$0xff] %v2315_v23  ;;  %v3445_v16 = vunpack.c.h.bf16 %v2111_v44  ;;  %v3458_v23 = vunpack.c.h.bf16 %v2210_v19 }
 0x149   :  { %3442 = vst [vmem:[#allocation47_spill] sm:$0xff] %v2326_v35  ;;  %3443 = vst [vmem:[#allocation48_spill] sm:$0xff] %v2329_v36  ;;  %v3447_v35 = vunpack.c.h.bf16 %v2147_v60 }
 0x14a   :  { %3444 = vst [vmem:[#allocation49_spill] sm:$0xff] %v2333_v37  ;;  %v2431_v41 = vsel %vm432_vm2, %v3445_v16, 0.0 }
 0x14b   :  { %v2441_v39 = vsel %vm432_vm2, %v3447_v35, 0.0 }
 0x159   :  { %167 = vperm.xlu0 %1637, %v161_v0   ;;  %v135_v0 = vld [vmem:[%s3319_s0 + $0x130] sm:$0xff] }
 0x15a   :  { %v2255_v56 = vmul.bf16 %v2078_v27, %v135_v0  ;;  %v2273_v0 = vmul.bf16 %v2057_v20, %v141_v9  ;;  %v2291_v9 = vmul.bf16 %v2078_v27, %v144_v17  ;;  %v2312_v17 = vmul.bf16 %v2078_v27, %v152_v45 }
 0x15b   :  { %v384_v20 = vunpack.c.h.bf16 %v2306_v26  ;;  %v3446_v26 = vunpack.c.h.bf16 %v2126_v49 }
 0x15c   :  { %3425 = vst [vmem:[#allocation30_spill] sm:$0xff] %v2255_v56  ;;  %3429 = vst [vmem:[#allocation34_spill] sm:$0xff] %v2273_v0  ;;  %v372_v45 = vunpack.c.h.bf16 %v2291_v9  ;;  %v388_v27 = vunpack.c.h.bf16 %v2312_v17 }
 0x15d   :  { %3432 = vst [vmem:[#allocation37_spill] sm:$0xff] %v2291_v9  ;;  %3438 = vst [vmem:[#allocation43_spill] sm:$0xff] %v2312_v17  ;;  %v2436_v7 = vsel %vm432_vm2, %v3446_v26, 0.0  ;;  %v3449_v17 = vunpack.c.h.bf16 %v2153_v62  ;;  %v3462_v9 = vunpack.c.h.bf16 %v2231_v30 }
 0x15f   :  { %v2451_v16 = vsel %vm432_vm2, %v3449_v17, 0.0  ;;  %v3455_v17 = vunpack.c.h.bf16 %v2174_v5 }
 0x161   :  { %v2473_v24 = vsel %vm432_vm2, %v3455_v17, 0.0  ;;  %v2492_v17 = vsel %vm432_vm2, %v3458_v23, 0.0  ;;  %v3464_v23 = vunpack.c.h.bf16 %v2237_v34  ;;  %v121_v34 = vld [vmem:[%s3319_s0 + $0xc0] sm:$0xff] }
 0x162   :  { %3459 = vst [vmem:[#allocation54_spill] sm:$0xff] %v2492_v17 }
 0x163   :  { %v2512_v8 = vsel %vm432_vm2, %v3464_v23, 0.0  ;;  %v106_v23 = vld [vmem:[%s3319_s0 + $0x48] sm:$0xff] }
 0x164   :  { %3465 = vst [vmem:[#allocation57_spill] sm:$0xff] %v2512_v8  ;;  %v3468_v8 = vunpack.c.h.bf16 %v2258_v57  ;;  %v2549_v57 = vsel %vm432_vm2, %v3472_v58, 0.0  ;;  %v122_v58 = vld [vmem:[%s3319_s0 + $0xc8] sm:$0xff] }
 0x165   :  { %3473 = vst [vmem:[#allocation61_spill] sm:$0xff] %v2549_v57 }
 0x1d0   :  { %v1045_v33 = vpop.xlane.xlu0 %1044 }
 0x1d1   :  { %v1047_v14 = vmul.f32 0.0025, %v1045_v33  ;;  %v3448_v33 = vunpack.c.h.bf16 %v2132_v52 }
 0x1d3   :  { %v2446_v42 = vsel %vm432_vm2, %v3448_v33, 0.0  ;;  %v2454_v37 = vsub.f32 %v2004_v50, %v1047_v14  ;;  %v2457_v26 = vsub.f32 %v2008_v54, %v1047_v14  ;;  %v2460_v36 = vsub.f32 %v2006_v53, %v1047_v14 }
 0x1d4   :  { %v2463_v35 = vsub.f32 %v2010_v55, %v1047_v14  ;;  %v3454_v33 = vunpack.c.h.bf16 %v2168_v3  ;;  %v3456_v50 = vunpack.c.h.bf16 %v2189_v11  ;;  %v3457_v53 = vunpack.c.h.bf16 %v2195_v13 }
 0x1d5   :  { %3450 = vst [vmem:[#allocation50_spill] sm:$0xff] %v2454_v37  ;;  %3451 = vst [vmem:[#allocation51_spill] sm:$0xff] %v2457_v26  ;;  %v1052_v14 = vmul.f32 %v2454_v37, %v2454_v37  ;;  %v97_v37 = vld [vmem:[%s3319_s0] sm:$0xff] }
 0x1d6   :  { %3452 = vst [vmem:[#allocation52_spill] sm:$0xff] %v2460_v36  ;;  %3453 = vst [vmem:[#allocation53_spill] sm:$0xff] %v2463_v35  ;;  %v2468_v25 = vsel %vm432_vm2, %v3454_v33, 0.0  ;;  %v2478_v54 = vsel %vm432_vm2, %v3456_v50, 0.0  ;;  %v2483_v55 = vsel %vm432_vm2, %v3457_v53, 0.0  ;;  %v1053_v33 = vmul.f32 %v2457_v26, %v2457_v26 }
 0x1d7   :  { %v2497_v50 = vsel %vm432_vm2, %v3460_v15, 0.0  ;;  %v1055_v53 = vmul.f32 %v2463_v35, %v2463_v35  ;;  %v2507_v26 = vsel %vm432_vm2, %v3462_v9, 0.0  ;;  %v3466_v15 = vunpack.c.h.bf16 %v2252_v47  ;;  %v105_v9 = vld [vmem:[%s3319_s0 + $0x40] sm:$0xff]  ;;  %v114_v47 = vld [vmem:[%s3319_s0 + $0x88] sm:$0xff] }
 0x1d8   :  { %3461 = vst [vmem:[#allocation55_spill] sm:$0xff] %v2497_v50  ;;  %3463 = vst [vmem:[#allocation56_spill] sm:$0xff] %v2507_v26  ;;  %v1054_v35 = vmul.f32 %v2460_v36, %v2460_v36  ;;  %v1056_v0 = vadd.f32 %v1053_v33, %v1052_v14  ;;  %v3470_v36 = vunpack.c.h.bf16 %v2270_v63  ;;  %v168_v33 = vpop.permute.xlu0 %167 }
 0x1d9   :  { %v2517_v56 = vsel %vm432_vm2, %v3466_v15, 0.0  ;;  %v2533_v15 = vsel %vm432_vm2, %v3468_v8, 0.0  ;;  %v2552_v8 = vsel %vm432_vm2, %v372_v45, 0.0  ;;  %v176_v63 = vrot.slane %v168_v33, %v2021_v6  ;;  %v129_v45 = vld [vmem:[%s3319_s0 + $0x100] sm:$0xff]  ;;  %v138_v33 = vld [vmem:[%s3319_s0 + $0x148] sm:$0xff] }
 0x1da   :  { %3467 = vst [vmem:[#allocation58_spill] sm:$0xff] %v2517_v56  ;;  %3469 = vst [vmem:[#allocation59_spill] sm:$0xff] %v2533_v15  ;;  %v2538_v14 = vsel %vm432_vm2, %v3470_v36, 0.0  ;;  %v113_v56 = vld [vmem:[%s3319_s0 + $0x80] sm:$0xff]  ;;  %v2555_v36 = vsel %vm432_vm2, %v380_v28, 0.0  ;;  %v1057_v15 = vadd.f32 %v1056_v0, %v1054_v35  ;;  %v2571_v28 = vsel %vm432_vm2, %v388_v27, 0.0 }
 0x1db   :  { %3471 = vst [vmem:[#allocation60_spill] sm:$0xff] %v2538_v14  ;;  %3474 = vst [vmem:[#allocation62_spill] sm:$0xff] %v2552_v8  ;;  %v2558_v14 = vsel %vm432_vm2, %v384_v20, 0.0  ;;  %v2574_v20 = vsel %vm432_vm2, %v396_v32, 0.0  ;;  %v1058_v6 = vsel %vm432_vm2, %v1055_v53, 0.0  ;;  %v130_v0 = vld [vmem:[%s3319_s0 + $0x108] sm:$0xff]  ;;  %v2595_v53 = vstv %s3322_s3 }
 0x1dc   :  { %3475 = vst [vmem:[#allocation63_spill] sm:$0xff] %v2555_v36  ;;  %3476 = vst [vmem:[#allocation64_spill] sm:$0xff] %v2558_v14  ;;  %v137_v35 = vld [vmem:[%s3319_s0 + $0x140] sm:$0xff]  ;;  %v2587_v27 = vsel %vm432_vm2, %v400_v38, 0.0  ;;  %v2590_v32 = vsel %vm432_vm2, %v404_v43, 0.0  ;;  %v146_v14 = vld [vmem:[%s3319_s0 + $0x188] sm:$0xff]  ;;  %v213_v43 = vmul.bf16 %v176_v63, %v97_v37  ;;  %v2611_v36 = vmul.bf16 %v176_v63, %v114_v47 }
 0x1dd   :  { %3477 = vst [vmem:[#allocation65_spill] sm:$0xff] %v2571_v28  ;;  %3478 = vst [vmem:[#allocation66_spill] sm:$0xff] %v2574_v20  ;;  %v1059_v20 = vadd.f32 %v1058_v6, %v1057_v15  ;;  %v145_v28 = vld [vmem:[%s3319_s0 + $0x180] sm:$0xff]  ;;  %v222_v15 = vmul.bf16 %v176_v63, %v106_v23  ;;  %v2609_v6 = vmul.bf16 %v176_v63, %v113_v56 }
 0x1de   :  { %3479 = vst [vmem:[#allocation67_spill] sm:$0xff] %v2587_v27  ;;  %3480 = vst [vmem:[#allocation68_spill] sm:$0xff] %v2590_v32  ;;  %v153_v38 = vld [vmem:[%s3319_s0 + $0x1c0] sm:$0xff]  ;;  %v214_v32 = vmul.bf16 %v176_v63, %v98_v46  ;;  %v221_v27 = vmul.bf16 %v176_v63, %v105_v9  ;;  %v2613_v8 = vmul.bf16 %v176_v63, %v121_v34  ;;  %v277_v34 = vunpack.c.l.bf16 %v213_v43 }
 0x1df   :  { %3481 = vst [vmem:[#allocation69_spill] sm:$0xff] %v2595_v53  ;;  %v154_v53 = vld [vmem:[%s3319_s0 + $0x1c8] sm:$0xff]  ;;  %1060 = vadd.xlane.f32.xlu1 %v1059_v20  ;;  %v2615_v57 = vmul.bf16 %v176_v63, %v122_v58  ;;  %v2617_v1 = vmul.bf16 %v176_v63, %v129_v45  ;;  %v2619_v31 = vmul.bf16 %v176_v63, %v130_v0  ;;  %v278_v20 = vunpack.c.h.bf16 %v213_v43 }
 0x1e0   :  { %v2621_v46 = vmul.bf16 %v176_v63, %v137_v35  ;;  %v2623_v37 = vmul.bf16 %v176_v63, %v138_v33  ;;  %v2625_v9 = vmul.bf16 %v176_v63, %v145_v28  ;;  %v2627_v23 = vmul.bf16 %v176_v63, %v146_v14 }
 0x1e1   :  { %v2629_v56 = vmul.bf16 %v176_v63, %v153_v38  ;;  %v2631_v47 = vmul.bf16 %v176_v63, %v154_v53  ;;  %v279_v58 = vunpack.c.l.bf16 %v214_v32  ;;  %v280_v26 = vunpack.c.h.bf16 %v214_v32 }
 0x1e2   :  { %3482 = vst [vmem:[#allocation70_spill] sm:$0xff] %v2625_v9  ;;  %v293_v45 = vunpack.c.l.bf16 %v221_v27  ;;  %v294_v50 = vunpack.c.h.bf16 %v221_v27  ;;  %v295_v0 = vunpack.c.l.bf16 %v222_v15  ;;  %v296_v17 = vunpack.c.h.bf16 %v222_v15 }
 0x1e3   :  { %3483 = vst [vmem:[#allocation71_spill] sm:$0xff] %v2629_v56  ;;  %3484 = vst [vmem:[#allocation72_spill] sm:$0xff] %v2631_v47  ;;  %v3485_v38 = vunpack.c.l.bf16 %v2108_v40  ;;  %v3486_v63 = vunpack.c.h.bf16 %v2108_v40  ;;  %v3487_v32 = vunpack.c.l.bf16 %v2111_v44  ;;  %v433_v27 = vsel %vm432_vm2, %v280_v26, 0.0 }
 0x1e4   :  { %v3488_v43 = vunpack.c.l.bf16 %v2129_v51  ;;  %v3489_v33 = vunpack.c.h.bf16 %v2129_v51  ;;  %v3490_v28 = vunpack.c.l.bf16 %v2132_v52  ;;  %v3491_v47 = vunpack.c.l.bf16 %v2123_v48 }
 0x1e5   :  { %v405_v35 = vadd.f32 %v3485_v38, %v277_v34  ;;  %v414_v53 = vadd.f32 %v3486_v63, %v278_v20  ;;  %v423_v9 = vadd.f32 %v3487_v32, %v279_v58  ;;  %v3492_v40 = vunpack.c.h.bf16 %v2123_v48 }
 0x1e6   :  { %v446_v15 = vadd.f32 %v3488_v43, %v293_v45  ;;  %v455_v56 = vadd.f32 %v3489_v33, %v294_v50  ;;  %v464_v14 = vadd.f32 %v3490_v28, %v295_v0  ;;  %v3493_v44 = vunpack.c.l.bf16 %v2126_v49 }
 0x1e7   :  { %v406_v34 = vadd.f32 %v405_v35, %v3491_v47  ;;  %v415_v20 = vadd.f32 %v414_v53, %v3492_v40  ;;  %v435_v26 = vadd.f32 %v2431_v41, %v433_v27  ;;  %v3494_v38 = vunpack.c.l.bf16 %v2150_v61 }
 0x1e8   :  { %v424_v58 = vadd.f32 %v423_v9, %v3493_v44  ;;  %v3495_v51 = vunpack.c.h.bf16 %v2150_v61  ;;  %v3496_v52 = vunpack.c.l.bf16 %v2153_v62  ;;  %v473_v33 = vsel %vm432_vm2, %v296_v17, 0.0 }
 0x1e9   :  { %v447_v45 = vadd.f32 %v446_v15, %v3494_v38  ;;  %v3497_v47 = vunpack.c.l.bf16 %v2144_v59  ;;  %v3498_v35 = vunpack.c.h.bf16 %v2144_v59  ;;  %v3499_v9 = vunpack.c.l.bf16 %v2147_v60 }
 0x1ea   :  { %v456_v50 = vadd.f32 %v455_v56, %v3495_v51  ;;  %v465_v0 = vadd.f32 %v464_v14, %v3496_v52  ;;  %v437_v28 = vadd.f32 %v2436_v7, %v435_v26  ;;  %v3500_v63 = vunpack.c.l.bf16 %v2165_v2 }
 0x1eb   :  { %v407_v48 = vadd.f32 %v406_v34, %v3497_v47  ;;  %v416_v49 = vadd.f32 %v415_v20, %v3498_v35  ;;  %v425_v41 = vadd.f32 %v424_v58, %v3499_v9  ;;  %v3501_v56 = vunpack.c.h.bf16 %v2165_v2 }
 0x1ec   :  { %v448_v61 = vadd.f32 %v447_v45, %v3500_v63  ;;  %v3502_v14 = vunpack.c.l.bf16 %v2168_v3  ;;  %v475_v53 = vadd.f32 %v2446_v42, %v473_v33  ;;  %v439_v43 = vadd.f32 %v2441_v39, %v437_v28 }
 0x1ed   :  { %v457_v62 = vadd.f32 %v456_v50, %v3501_v56  ;;  %v408_v32 = vrot.slane %v407_v48, 4  ;;  %v417_v27 = vrot.slane %v416_v49, 4  ;;  %v426_v59 = vrot.slane %v425_v41, 4 }
 0x1ee   :  { %v466_v17 = vadd.f32 %v465_v0, %v3502_v14  ;;  %v449_v60 = vrot.slane %v448_v61, 4  ;;  %v477_v7 = vadd.f32 %v2451_v16, %v475_v53  ;;  %v440_v2 = vrot.slane %v439_v43, 4 }
 0x1ef   :  { %v458_v15 = vrot.slane %v457_v62, 4  ;;  %v409_v40 = vadd.f32 %v408_v32, %v407_v48  ;;  %v418_v20 = vadd.f32 %v417_v27, %v416_v49  ;;  %v427_v44 = vadd.f32 %v426_v59, %v425_v41 }
 0x1f0   :  { %v467_v34 = vrot.slane %v466_v17, 4  ;;  %v450_v58 = vadd.f32 %v449_v60, %v448_v61  ;;  %v479_v38 = vadd.f32 %v2468_v25, %v477_v7  ;;  %v441_v50 = vadd.f32 %v440_v2, %v439_v43 }
 0x1f1   :  { %v459_v26 = vadd.f32 %v458_v15, %v457_v62  ;;  %v410_v42 = vrot.slane %v409_v40, 2  ;;  %v419_v45 = vrot.slane %v418_v20, 2  ;;  %v428_v51 = vrot.slane %v427_v44, 2 }
 0x1f2   :  { %v468_v3 = vadd.f32 %v467_v34, %v466_v17  ;;  %v451_v52 = vrot.slane %v450_v58, 2  ;;  %v480_v33 = vrot.slane %v479_v38, 4  ;;  %v442_v48 = vrot.slane %v441_v50, 2 }
 0x1f3   :  { %v460_v39 = vrot.slane %v459_v26, 2  ;;  %v411_v47 = vadd.f32 %v410_v42, %v409_v40  ;;  %v420_v35 = vadd.f32 %v419_v45, %v418_v20  ;;  %v429_v16 = vadd.f32 %v428_v51, %v427_v44 }
 0x1f4   :  { %v469_v0 = vrot.slane %v468_v3, 2  ;;  %v452_v49 = vadd.f32 %v451_v52, %v450_v58  ;;  %v481_v28 = vadd.f32 %v480_v33, %v479_v38  ;;  %v443_v25 = vadd.f32 %v442_v48, %v441_v50 }
 0x1f5   :  { %v461_v9 = vadd.f32 %v460_v39, %v459_v26  ;;  %v412_v63 = vrot.slane %v411_v47, 1  ;;  %v421_v61 = vrot.slane %v420_v35, 1  ;;  %v430_v56 = vrot.slane %v429_v16, 1 }
 0x1f6   :  { %v470_v41 = vadd.f32 %v469_v0, %v468_v3  ;;  %v453_v62 = vrot.slane %v452_v49, 1  ;;  %v482_v53 = vrot.slane %v481_v28, 2  ;;  %v444_v43 = vrot.slane %v443_v25, 1 }
 0x1f7   :  { %v462_v14 = vrot.slane %v461_v9, 1  ;;  %v2701_v32 = vadd.f32 %v412_v63, %v411_v47  ;;  %v2703_v27 = vadd.f32 %v421_v61, %v420_v35  ;;  %v2705_v59 = vadd.f32 %v430_v56, %v429_v16 }
 0x1f8   :  { %v471_v17 = vrot.slane %v470_v41, 1  ;;  %v2707_v60 = vadd.f32 %v453_v62, %v452_v49  ;;  %v483_v7 = vadd.f32 %v482_v53, %v481_v28  ;;  %v2713_v40 = vadd.f32 %v444_v43, %v443_v25 }
 0x1f9   :  { %v2709_v15 = vadd.f32 %v462_v14, %v461_v9  ;;  %v3503_v20 = vunpack.c.l.bf16 %v2609_v6  ;;  %v3504_v44 = vunpack.c.l.bf16 %v2171_v4  ;;  %v3505_v58 = vunpack.c.h.bf16 %v2609_v6 }
 0x1fa   :  { %v2711_v34 = vadd.f32 %v471_v17, %v470_v41  ;;  %v3506_v26 = vunpack.c.h.bf16 %v2171_v4  ;;  %v3507_v38 = vunpack.c.l.bf16 %v2611_v36  ;;  %v3508_v42 = vunpack.c.l.bf16 %v2174_v5 }
 0x1fb   :  { %v486_v2 = vadd.f32 %v3504_v44, %v3503_v20  ;;  %v484_v51 = vrot.slane %v483_v7, 1  ;;  %v3509_v50 = vunpack.c.h.bf16 %v2611_v36  ;;  %v3510_v39 = vunpack.c.l.bf16 %v2613_v8 }
 0x1fc   :  { %v495_v3 = vadd.f32 %v3506_v26, %v3505_v58  ;;  %v504_v45 = vadd.f32 %v3508_v42, %v3507_v38  ;;  %v3511_v0 = vunpack.c.l.bf16 %v2207_v18  ;;  %v3512_v6 = vunpack.c.h.bf16 %v2613_v8 }
 0x1fd   :  { %v513_v52 = vsel %vm432_vm2, %v3509_v50, 0.0  ;;  %v3513_v4 = vunpack.c.h.bf16 %v2207_v18  ;;  %v3514_v35 = vunpack.c.l.bf16 %v2186_v10  ;;  %v3515_v5 = vunpack.c.h.bf16 %v2186_v10 }
 0x1fe   :  { %v526_v33 = vadd.f32 %v3511_v0, %v3510_v39  ;;  %v3516_v36 = vunpack.c.l.bf16 %v2189_v11  ;;  %v515_v9 = vadd.f32 %v2473_v24, %v513_v52  ;;  %v2745_v41 = vadd.f32 %v484_v51, %v483_v7  ;;  %v3529_v51 = vld [vmem:[#allocation54_spill] sm:$0xff] }
 0x1ff   :  { %v535_v47 = vadd.f32 %v3513_v4, %v3512_v6  ;;  %v487_v16 = vadd.f32 %v486_v2, %v3514_v35  ;;  %v496_v48 = vadd.f32 %v495_v3, %v3515_v5  ;;  %v3517_v28 = vunpack.c.l.bf16 %v2213_v21  ;;  %v3530_v6 = vld [vmem:[#allocation55_spill] sm:$0xff] }
 0x200   :  { %v505_v49 = vadd.f32 %v504_v45, %v3516_v36  ;;  %v3518_v8 = vunpack.c.h.bf16 %v2213_v21  ;;  %v3519_v61 = vunpack.c.l.bf16 %v2615_v57  ;;  %v3520_v56 = vunpack.c.l.bf16 %v2210_v19 }
 0x201   :  { %v527_v63 = vadd.f32 %v526_v33, %v3517_v28  ;;  %v3521_v10 = vunpack.c.l.bf16 %v2192_v12  ;;  %v3522_v11 = vunpack.c.h.bf16 %v2192_v12  ;;  %v3523_v24 = vunpack.c.l.bf16 %v2195_v13 }
 0x202   :  { %v536_v18 = vadd.f32 %v535_v47, %v3518_v8  ;;  %v544_v25 = vadd.f32 %v3520_v56, %v3519_v61  ;;  %v517_v53 = vadd.f32 %v2478_v54, %v515_v9  ;;  %v3524_v43 = vunpack.c.l.bf16 %v2228_v29 }
 0x203   :  { %v488_v62 = vadd.f32 %v487_v16, %v3521_v10  ;;  %v497_v14 = vadd.f32 %v496_v48, %v3522_v11  ;;  %v506_v17 = vadd.f32 %v505_v49, %v3523_v24  ;;  %v3525_v7 = vunpack.c.h.bf16 %v2228_v29 }
 0x204   :  { %v528_v21 = vadd.f32 %v527_v63, %v3524_v43  ;;  %v3526_v19 = vunpack.c.l.bf16 %v2216_v22  ;;  %v3527_v2 = vunpack.c.h.bf16 %v2615_v57  ;;  %v519_v13 = vadd.f32 %v2483_v55, %v517_v53 }
 0x205   :  { %v537_v20 = vadd.f32 %v536_v18, %v3525_v7  ;;  %v489_v12 = vrot.slane %v488_v62, 4  ;;  %v498_v26 = vrot.slane %v497_v14, 4  ;;  %v507_v3 = vrot.slane %v506_v17, 4 }
 0x206   :  { %v545_v44 = vadd.f32 %v544_v25, %v3526_v19  ;;  %v553_v58 = vsel %vm432_vm2, %v3527_v2, 0.0  ;;  %v529_v38 = vrot.slane %v528_v21, 4  ;;  %v3528_v42 = vunpack.c.l.bf16 %v2231_v30  ;;  %v3531_v30 = vld [vmem:[#allocation56_spill] sm:$0xff] }
 0x207   :  { %v538_v54 = vrot.slane %v537_v20, 4  ;;  %v555_v29 = vadd.f32 %v3529_v51, %v553_v58  ;;  %v490_v50 = vadd.f32 %v489_v12, %v488_v62  ;;  %v499_v52 = vadd.f32 %v498_v26, %v497_v14 }
 0x208   :  { %v546_v45 = vadd.f32 %v545_v44, %v3528_v42  ;;  %v508_v22 = vadd.f32 %v507_v3, %v506_v17  ;;  %v520_v39 = vrot.slane %v519_v13, 4  ;;  %v530_v0 = vadd.f32 %v529_v38, %v528_v21 }
 0x209   :  { %v539_v57 = vadd.f32 %v538_v54, %v537_v20  ;;  %v557_v4 = vadd.f32 %v3530_v6, %v555_v29  ;;  %v491_v47 = vrot.slane %v490_v50, 2  ;;  %v500_v35 = vrot.slane %v499_v52, 2 }
 0x20a   :  { %v547_v33 = vrot.slane %v546_v45, 4  ;;  %v509_v16 = vrot.slane %v508_v22, 2  ;;  %v521_v55 = vadd.f32 %v520_v39, %v519_v13  ;;  %v531_v5 = vrot.slane %v530_v0, 2  ;;  %v3533_v13 = vld [vmem:[#allocation26_spill] sm:$0xff] }
 0x20b   :  { %v540_v48 = vrot.slane %v539_v57, 2  ;;  %v559_v49 = vadd.f32 %v3531_v30, %v557_v4  ;;  %v492_v9 = vadd.f32 %v491_v47, %v490_v50  ;;  %v501_v28 = vadd.f32 %v500_v35, %v499_v52  ;;  %v3538_v50 = vld [vmem:[#allocation27_spill] sm:$0xff]  ;;  %v3542_v4 = vld [vmem:[#allocation32_spill] sm:$0xff] }
 0x20c   :  { %v548_v36 = vadd.f32 %v547_v33, %v546_v45  ;;  %v510_v63 = vadd.f32 %v509_v16, %v508_v22  ;;  %v522_v8 = vrot.slane %v521_v55, 2  ;;  %v532_v18 = vadd.f32 %v531_v5, %v530_v0  ;;  %v3544_v35 = vld [vmem:[#allocation28_spill] sm:$0xff] }
 0x20d   :  { %v541_v61 = vadd.f32 %v540_v48, %v539_v57  ;;  %v560_v25 = vrot.slane %v559_v49, 4  ;;  %v493_v10 = vrot.slane %v492_v9, 1  ;;  %v502_v62 = vrot.slane %v501_v28, 1 }
 0x20e   :  { %v549_v56 = vrot.slane %v548_v36, 2  ;;  %v511_v11 = vrot.slane %v510_v63, 1  ;;  %v523_v14 = vadd.f32 %v522_v8, %v521_v55  ;;  %v533_v24 = vrot.slane %v532_v18, 1 }
 0x20f   :  { %v542_v17 = vrot.slane %v541_v61, 1  ;;  %v561_v43 = vadd.f32 %v560_v25, %v559_v49  ;;  %v2777_v21 = vadd.f32 %v493_v10, %v492_v9  ;;  %v2779_v7 = vadd.f32 %v502_v62, %v501_v28  ;;  %v3549_v9 = vld [vmem:[#allocation57_spill] sm:$0xff] }
 0x210   :  { %v550_v53 = vadd.f32 %v549_v56, %v548_v36  ;;  %v2781_v20 = vadd.f32 %v511_v11, %v510_v63  ;;  %v524_v19 = vrot.slane %v523_v14, 1  ;;  %v2783_v44 = vadd.f32 %v533_v24, %v532_v18  ;;  %v3547_v36 = vld [vmem:[#allocation29_spill] sm:$0xff]  ;;  %v3557_v24 = vld [vmem:[#allocation30_spill] sm:$0xff] }
 0x211   :  { %v2785_v2 = vadd.f32 %v542_v17, %v541_v61  ;;  %v562_v12 = vrot.slane %v561_v43, 2  ;;  %v3532_v3 = vunpack.c.l.bf16 %v2617_v1  ;;  %v3534_v38 = vunpack.c.l.bf16 %v3533_v13  ;;  %v3555_v62 = vld [vmem:[#allocation33_spill] sm:$0xff] }
 0x212   :  { %v551_v58 = vrot.slane %v550_v53, 1  ;;  %v2787_v26 = vadd.f32 %v524_v19, %v523_v14  ;;  %v3535_v42 = vunpack.c.h.bf16 %v2617_v1  ;;  %v3536_v45 = vunpack.c.h.bf16 %v3533_v13  ;;  %v3562_v13 = vld [vmem:[#allocation58_spill] sm:$0xff] }
 0x213   :  { %v566_v54 = vadd.f32 %v3534_v38, %v3532_v3  ;;  %v3537_v29 = vunpack.c.l.bf16 %v2619_v31  ;;  %v3539_v52 = vunpack.c.l.bf16 %v3538_v50  ;;  %v563_v0 = vadd.f32 %v562_v12, %v561_v43  ;;  %v3566_v50 = vld [vmem:[#allocation35_spill] sm:$0xff] }
 0x214   :  { %v575_v51 = vadd.f32 %v3536_v45, %v3535_v42  ;;  %v2801_v39 = vadd.f32 %v551_v58, %v550_v53  ;;  %v3540_v57 = vunpack.c.h.bf16 %v2619_v31  ;;  %v3541_v6 = vunpack.c.l.bf16 %v2621_v46  ;;  %v3550_v31 = vld [vmem:[#allocation34_spill] sm:$0xff]  ;;  %v3560_v58 = vld [vmem:[#allocation31_spill] sm:$0xff] }
 0x215   :  { %v584_v22 = vadd.f32 %v3539_v52, %v3537_v29  ;;  %v3543_v47 = vunpack.c.l.bf16 %v3542_v4  ;;  %v3545_v16 = vunpack.c.l.bf16 %v3544_v35  ;;  %v3546_v5 = vunpack.c.h.bf16 %v3544_v35 }
 0x216   :  { %v593_v33 = vsel %vm432_vm2, %v3540_v57, 0.0  ;;  %v3548_v30 = vunpack.c.l.bf16 %v3547_v36  ;;  %v564_v63 = vrot.slane %v563_v0, 1  ;;  %v3551_v8 = vunpack.c.l.bf16 %v3550_v31 }
 0x217   :  { %v606_v1 = vadd.f32 %v3543_v47, %v3541_v6  ;;  %v567_v55 = vadd.f32 %v566_v54, %v3545_v16  ;;  %v576_v48 = vadd.f32 %v575_v51, %v3546_v5  ;;  %v595_v28 = vadd.f32 %v3549_v9, %v593_v33  ;;  %v3563_v54 = vld [vmem:[#allocation36_spill] sm:$0xff] }
 0x218   :  { %v585_v49 = vadd.f32 %v584_v22, %v3548_v30  ;;  %v3552_v61 = vunpack.c.h.bf16 %v2621_v46  ;;  %v3553_v56 = vunpack.c.h.bf16 %v3542_v4  ;;  %v3554_v10 = vunpack.c.l.bf16 %v2623_v37  ;;  %v3568_v4 = vld [vmem:[#allocation59_spill] sm:$0xff] }
 0x219   :  { %v607_v18 = vadd.f32 %v606_v1, %v3551_v8  ;;  %v3556_v11 = vunpack.c.l.bf16 %v3555_v62  ;;  %v3558_v17 = vunpack.c.l.bf16 %v3557_v24  ;;  %v3559_v43 = vunpack.c.h.bf16 %v3557_v24 }
 0x21a   :  { %v615_v25 = vadd.f32 %v3553_v56, %v3552_v61  ;;  %v3561_v12 = vunpack.c.l.bf16 %v3560_v58  ;;  %v597_v38 = vadd.f32 %v3562_v13, %v595_v28  ;;  %v2834_v46 = vadd.f32 %v564_v63, %v563_v0  ;;  %v3570_v0 = vld [vmem:[#allocation37_spill] sm:$0xff] }
 0x21b   :  { %v624_v14 = vadd.f32 %v3556_v11, %v3554_v10  ;;  %v568_v53 = vadd.f32 %v567_v55, %v3558_v17  ;;  %v577_v19 = vadd.f32 %v576_v48, %v3559_v43  ;;  %v3564_v42 = vunpack.c.l.bf16 %v3563_v54  ;;  %v3574_v17 = vld [vmem:[#allocation61_spill] sm:$0xff] }
 0x21c   :  { %v586_v3 = vadd.f32 %v585_v49, %v3561_v12  ;;  %v3565_v51 = vunpack.c.h.bf16 %v3550_v31  ;;  %v3567_v52 = vunpack.c.l.bf16 %v3566_v50  ;;  %v599_v47 = vadd.f32 %v3568_v4, %v597_v38  ;;  %v3575_v38 = vld [vmem:[#allocation62_spill] sm:$0xff] }
 0x21d   :  { %v608_v45 = vadd.f32 %v607_v18, %v3564_v42  ;;  %v569_v57 = vrot.slane %v568_v53, 4  ;;  %v578_v33 = vrot.slane %v577_v19, 4  ;;  %v3569_v35 = vunpack.c.h.bf16 %v3563_v54  ;;  %v3573_v18 = vld [vmem:[#allocation60_spill] sm:$0xff] }
 0x21e   :  { %v616_v29 = vadd.f32 %v615_v25, %v3565_v51  ;;  %v625_v22 = vadd.f32 %v624_v14, %v3567_v52  ;;  %v587_v6 = vrot.slane %v586_v3, 4  ;;  %v3571_v55 = vunpack.c.l.bf16 %v3570_v0 }
 0x21f   :  { %v609_v1 = vrot.slane %v608_v45, 4  ;;  %v3572_v48 = vunpack.c.h.bf16 %v2623_v37  ;;  %v570_v30 = vadd.f32 %v569_v57, %v568_v53  ;;  %v579_v49 = vadd.f32 %v578_v33, %v577_v19 }
 0x220   :  { %v617_v16 = vadd.f32 %v616_v29, %v3569_v35  ;;  %v626_v5 = vadd.f32 %v625_v22, %v3571_v55  ;;  %v588_v9 = vadd.f32 %v587_v6, %v586_v3  ;;  %v600_v28 = vrot.slane %v599_v47, 4 }
 0x221   :  { %v633_v36 = vsel %vm432_vm2, %v3572_v48, 0.0  ;;  %v610_v63 = vadd.f32 %v609_v1, %v608_v45  ;;  %v571_v56 = vrot.slane %v570_v30, 2  ;;  %v580_v25 = vrot.slane %v579_v49, 2 }
 0x222   :  { %v618_v31 = vrot.slane %v617_v16, 4  ;;  %v627_v8 = vrot.slane %v626_v5, 4  ;;  %v635_v61 = vadd.f32 %v3573_v18, %v633_v36  ;;  %v589_v10 = vrot.slane %v588_v9, 2  ;;  %v3578_v36 = vld [vmem:[#allocation38_spill] sm:$0xff] }
 0x223   :  { %v601_v62 = vadd.f32 %v600_v28, %v599_v47  ;;  %v611_v11 = vrot.slane %v610_v63, 2  ;;  %v572_v43 = vadd.f32 %v571_v56, %v570_v30  ;;  %v581_v58 = vadd.f32 %v580_v25, %v579_v49 }
 0x224   :  { %v619_v14 = vadd.f32 %v618_v31, %v617_v16  ;;  %v628_v24 = vadd.f32 %v627_v8, %v626_v5  ;;  %v637_v37 = vadd.f32 %v3574_v17, %v635_v61  ;;  %v590_v53 = vadd.f32 %v589_v10, %v588_v9  ;;  %v3576_v5 = vld [vmem:[#allocation70_spill] sm:$0xff]  ;;  %v3583_v8 = vld [vmem:[#allocation39_spill] sm:$0xff] }
 0x225   :  { %v602_v19 = vrot.slane %v601_v62, 2  ;;  %v612_v12 = vadd.f32 %v611_v11, %v610_v63  ;;  %v573_v42 = vrot.slane %v572_v43, 1  ;;  %v582_v45 = vrot.slane %v581_v58, 1 }
 0x226   :  { %v620_v3 = vrot.slane %v619_v14, 2  ;;  %v629_v13 = vrot.slane %v628_v24, 2  ;;  %v639_v54 = vadd.f32 %v3575_v38, %v637_v37  ;;  %v591_v51 = vrot.slane %v590_v53, 1  ;;  %v3592_v38 = vld [vmem:[#allocation71_spill] sm:$0xff] }
 0x227   :  { %v603_v29 = vadd.f32 %v602_v19, %v601_v62  ;;  %v613_v50 = vrot.slane %v612_v12, 1  ;;  %v2853_v33 = vadd.f32 %v573_v42, %v572_v43  ;;  %v2855_v6 = vadd.f32 %v582_v45, %v581_v58  ;;  %v3589_v58 = vld [vmem:[#allocation41_spill] sm:$0xff]  ;;  %v3594_v42 = vld [vmem:[#allocation44_spill] sm:$0xff] }
 0x228   :  { %v621_v52 = vadd.f32 %v620_v3, %v619_v14  ;;  %v630_v22 = vadd.f32 %v629_v13, %v628_v24  ;;  %v640_v57 = vrot.slane %v639_v54, 4  ;;  %v2857_v4 = vadd.f32 %v591_v51, %v590_v53  ;;  %v3586_v14 = vld [vmem:[#allocation40_spill] sm:$0xff] }
 0x229   :  { %v604_v47 = vrot.slane %v603_v29, 1  ;;  %v2859_v1 = vadd.f32 %v613_v50, %v612_v12  ;;  %v3577_v48 = vunpack.c.l.bf16 %v3576_v5  ;;  %v3579_v30 = vunpack.c.l.bf16 %v3578_v36  ;;  %v3591_v12 = vld [vmem:[#allocation63_spill] sm:$0xff] }
 0x22a   :  { %v622_v35 = vrot.slane %v621_v52, 1  ;;  %v631_v16 = vrot.slane %v630_v22, 1  ;;  %v641_v0 = vadd.f32 %v640_v57, %v639_v54  ;;  %v3580_v9 = vunpack.c.h.bf16 %v3576_v5  ;;  %v3600_v57 = vld [vmem:[#allocation45_spill] sm:$0xff] }
 0x22b   :  { %v2861_v55 = vadd.f32 %v604_v47, %v603_v29  ;;  %v646_v49 = vadd.f32 %v3579_v30, %v3577_v48  ;;  %v3581_v28 = vunpack.c.h.bf16 %v3578_v36  ;;  %v3582_v31 = vunpack.c.l.bf16 %v2627_v23  ;;  %v3605_v30 = vld [vmem:[#allocation43_spill] sm:$0xff] }
 0x22c   :  { %v3584_v18 = vunpack.c.l.bf16 %v3583_v8  ;;  %v2875_v56 = vadd.f32 %v622_v35, %v621_v52  ;;  %v2877_v25 = vadd.f32 %v631_v16, %v630_v22  ;;  %v642_v10 = vrot.slane %v641_v0, 2  ;;  %v3598_v52 = vld [vmem:[#allocation72_spill] sm:$0xff]  ;;  %v3602_v16 = vld [vmem:[#allocation42_spill] sm:$0xff] }
 0x22d   :  { %v655_v63 = vadd.f32 %v3581_v28, %v3580_v9  ;;  %v3585_v62 = vunpack.c.h.bf16 %v2627_v23  ;;  %v3587_v24 = vunpack.c.l.bf16 %v3586_v14  ;;  %v3588_v37 = vunpack.c.h.bf16 %v3586_v14  ;;  %v3607_v28 = vld [vmem:[#allocation64_spill] sm:$0xff]  ;;  %v3608_v8 = vld [vmem:[#allocation46_spill] sm:$0xff] }
 0x22e   :  { %v664_v61 = vadd.f32 %v3584_v18, %v3582_v31  ;;  %v3590_v53 = vunpack.c.l.bf16 %v3589_v58  ;;  %v643_v13 = vadd.f32 %v642_v10, %v641_v0  ;;  %v3593_v54 = vunpack.c.l.bf16 %v3592_v38 }
 0x22f   :  { %v673_v11 = vsel %vm432_vm2, %v3585_v62, 0.0  ;;  %v647_v17 = vadd.f32 %v646_v49, %v3587_v24  ;;  %v656_v43 = vadd.f32 %v655_v63, %v3588_v37  ;;  %v3595_v45 = vunpack.c.l.bf16 %v3594_v42 }
 0x230   :  { %v665_v19 = vadd.f32 %v664_v61, %v3590_v53  ;;  %v675_v3 = vadd.f32 %v3591_v12, %v673_v11  ;;  %v3596_v23 = vunpack.c.h.bf16 %v3592_v38  ;;  %v3597_v29 = vunpack.c.h.bf16 %v3594_v42  ;;  %v3611_v11 = vld [vmem:[#allocation47_spill] sm:$0xff]  ;;  %v3613_v53 = vld [vmem:[#allocation65_spill] sm:$0xff] }
 0x231   :  { %v686_v51 = vadd.f32 %v3595_v45, %v3593_v54  ;;  %v3599_v22 = vunpack.c.l.bf16 %v3598_v52  ;;  %v3601_v47 = vunpack.c.l.bf16 %v3600_v57  ;;  %v3603_v5 = vunpack.c.l.bf16 %v3602_v16  ;;  %v3617_v45 = vld [vmem:[#allocation49_spill] sm:$0xff] }
 0x232   :  { %v695_v50 = vadd.f32 %v3597_v29, %v3596_v23  ;;  %v3604_v0 = vunpack.c.h.bf16 %v3602_v16  ;;  %v3606_v49 = vunpack.c.l.bf16 %v3605_v30  ;;  %v677_v63 = vadd.f32 %v3607_v28, %v675_v3 }
 0x233   :  { %v704_v35 = vadd.f32 %v3601_v47, %v3599_v22  ;;  %v648_v48 = vadd.f32 %v647_v17, %v3603_v5  ;;  %v644_v31 = vrot.slane %v643_v13, 1  ;;  %v3609_v18 = vunpack.c.l.bf16 %v3608_v8 }
 0x234   :  { %v657_v36 = vadd.f32 %v656_v43, %v3604_v0  ;;  %v666_v9 = vadd.f32 %v665_v19, %v3606_v49  ;;  %v3610_v10 = vunpack.c.h.bf16 %v3608_v8  ;;  %v3612_v14 = vunpack.c.l.bf16 %v3611_v11  ;;  %v3614_v19 = vld [vmem:[#allocation48_spill] sm:$0xff] }
 0x235   :  { %v687_v61 = vadd.f32 %v686_v51, %v3609_v18  ;;  %v649_v37 = vrot.slane %v648_v48, 4  ;;  %v679_v43 = vadd.f32 %v3613_v53, %v677_v63  ;;  %v2915_v12 = vadd.f32 %v644_v31, %v643_v13  ;;  %v3620_v18 = vld [vmem:[#allocation66_spill] sm:$0xff] }
 0x236   :  { %v696_v62 = vadd.f32 %v695_v50, %v3610_v10  ;;  %v705_v24 = vadd.f32 %v704_v35, %v3612_v14  ;;  %v658_v17 = vrot.slane %v657_v36, 4  ;;  %v667_v58 = vrot.slane %v666_v9, 4 }
 0x237   :  { %v3615_v38 = vunpack.c.l.bf16 %v3614_v19  ;;  %v3616_v54 = vunpack.c.h.bf16 %v3614_v19  ;;  %v3618_v51 = vunpack.c.l.bf16 %v3617_v45  ;;  %v650_v29 = vadd.f32 %v649_v37, %v648_v48 }
 0x238   :  { %v659_v50 = vadd.f32 %v658_v17, %v657_v36  ;;  %v668_v22 = vadd.f32 %v667_v58, %v666_v9  ;;  %v680_v57 = vrot.slane %v679_v43, 4  ;;  %v3619_v5 = vunpack.c.h.bf16 %v3598_v52 }
 0x239   :  { %v688_v3 = vadd.f32 %v687_v61, %v3615_v38  ;;  %v697_v42 = vadd.f32 %v696_v62, %v3616_v54  ;;  %v706_v23 = vadd.f32 %v705_v24, %v3618_v51  ;;  %v651_v0 = vrot.slane %v650_v29, 2  ;;  %v3621_v24 = vld [vmem:[#allocation67_spill] sm:$0xff] }
 0x23a   :  { %v713_v13 = vsel %vm432_vm2, %v3619_v5, 0.0  ;;  %v660_v30 = vrot.slane %v659_v50, 2  ;;  %v669_v49 = vrot.slane %v668_v22, 2  ;;  %v681_v28 = vadd.f32 %v680_v57, %v679_v43 }
 0x23b   :  { %v689_v47 = vrot.slane %v688_v3, 4  ;;  %v698_v35 = vrot.slane %v697_v42, 4  ;;  %v707_v16 = vrot.slane %v706_v23, 4  ;;  %v715_v61 = vadd.f32 %v3620_v18, %v713_v13 }
 0x23c   :  { %v652_v48 = vadd.f32 %v651_v0, %v650_v29  ;;  %v661_v36 = vadd.f32 %v660_v30, %v659_v50  ;;  %v670_v9 = vadd.f32 %v669_v49, %v668_v22  ;;  %v682_v10 = vrot.slane %v681_v28, 2 }
 0x23d   :  { %v690_v63 = vadd.f32 %v689_v47, %v688_v3  ;;  %v699_v31 = vadd.f32 %v698_v35, %v697_v42  ;;  %v708_v8 = vadd.f32 %v707_v16, %v706_v23  ;;  %v717_v52 = vadd.f32 %v3621_v24, %v715_v61  ;;  %v3622_v3 = vld [vmem:[#allocation68_spill] sm:$0xff]  ;;  %v3623_v35 = vld [vmem:[#allocation69_spill] sm:$0xff]  ;;  %v3643_v24 = vld [vmem:[#allocation23_spill] sm:$0xff] }
 0x23e   :  { %v653_v37 = vrot.slane %v652_v48, 1  ;;  %v662_v17 = vrot.slane %v661_v36, 1  ;;  %v671_v58 = vrot.slane %v670_v9, 1  ;;  %v683_v53 = vadd.f32 %v682_v10, %v681_v28  ;;  %v3641_v10 = vld [vmem:[#allocation22_spill] sm:$0xff] }
 0x23f   :  { %v691_v62 = vrot.slane %v690_v63, 2  ;;  %v700_v11 = vrot.slane %v699_v31, 2  ;;  %v709_v14 = vrot.slane %v708_v8, 2  ;;  %v719_v54 = vadd.f32 %v3622_v3, %v717_v52 }
 0x240   :  { %v654_v42 = vadd.f32 %v653_v37, %v652_v48  ;;  %v663_v45 = vadd.f32 %v662_v17, %v661_v36  ;;  %v672_v51 = vadd.f32 %v671_v58, %v670_v9  ;;  %v684_v23 = vrot.slane %v683_v53, 1  ;;  %v3644_v37 = vld [vmem:[#allocation25_spill] sm:$0xff] }
 0x241   :  { %v692_v19 = vadd.f32 %v691_v62, %v690_v63  ;;  %v701_v43 = vadd.f32 %v700_v11, %v699_v31  ;;  %v710_v38 = vadd.f32 %v709_v14, %v708_v8  ;;  %v720_v57 = vrot.slane %v719_v54, 4  ;;  %v3642_v11 = vld [vmem:[#allocation24_spill] sm:$0xff] }
 0x242   :  { %v685_v47 = vadd.f32 %v684_v23, %v683_v53  ;;  %v2931_v16 = vadd.f32 %v3623_v35, %v2701_v32  ;;  %v2935_v5 = vadd.f32 %v3623_v35, %v2703_v27  ;;  %v2939_v13 = vadd.f32 %v3623_v35, %v2705_v59 }
 0x243   :  { %v693_v29 = vrot.slane %v692_v19, 1  ;;  %v702_v50 = vrot.slane %v701_v43, 1  ;;  %v711_v22 = vrot.slane %v710_v38, 1  ;;  %v721_v28 = vadd.f32 %v720_v57, %v719_v54 }
 0x244   :  { %v2943_v63 = vadd.f32 %v3623_v35, %v2713_v40  ;;  %v2947_v32 = vadd.f32 %v3623_v35, %v2707_v60  ;;  %v2951_v27 = vadd.f32 %v3623_v35, %v2709_v15  ;;  %v2955_v59 = vadd.f32 %v3623_v35, %v2711_v34 }
 0x245   :  { %v694_v0 = vadd.f32 %v693_v29, %v692_v19  ;;  %v703_v30 = vadd.f32 %v702_v50, %v701_v43  ;;  %v712_v49 = vadd.f32 %v711_v22, %v710_v38  ;;  %v722_v31 = vrot.slane %v721_v28, 2 }
 0x246   :  { %3624 = vst [vmem:[#allocation54_spill] sm:$0xff] %v2943_v63  ;;  %v2959_v8 = vadd.f32 %v3623_v35, %v2745_v41  ;;  %v2963_v40 = vadd.f32 %v3623_v35, %v2777_v21  ;;  %v2967_v60 = vadd.f32 %v3623_v35, %v2779_v7  ;;  %v2971_v15 = vadd.f32 %v3623_v35, %v2781_v20 }
 0x247   :  { %v2975_v34 = vadd.f32 %v3623_v35, %v2787_v26  ;;  %v2979_v41 = vadd.f32 %v3623_v35, %v2783_v44  ;;  %v2983_v21 = vadd.f32 %v3623_v35, %v2785_v2  ;;  %v723_v18 = vadd.f32 %v722_v31, %v721_v28 }
 0x248   :  { %3625 = vst [vmem:[#allocation55_spill] sm:$0xff] %v2959_v8  ;;  %v2987_v7 = vadd.f32 %v3623_v35, %v2801_v39  ;;  %v2991_v20 = vadd.f32 %v3623_v35, %v2834_v46  ;;  %v2995_v26 = vadd.f32 %v3623_v35, %v2853_v33  ;;  %v2999_v44 = vadd.f32 %v3623_v35, %v2855_v6 }
 0x249   :  { %3626 = vst [vmem:[#allocation56_spill] sm:$0xff] %v2975_v34  ;;  %v3003_v2 = vadd.f32 %v3623_v35, %v2857_v4  ;;  %v3007_v39 = vadd.f32 %v3623_v35, %v2861_v55  ;;  %v3011_v46 = vadd.f32 %v3623_v35, %v2859_v1  ;;  %v724_v61 = vrot.slane %v723_v18, 1 }
 0x24a   :  { %3627 = vst [vmem:[#allocation26_spill] sm:$0xff] %v2991_v20  ;;  %v3015_v33 = vadd.f32 %v3623_v35, %v2875_v56  ;;  %v3019_v6 = vadd.f32 %v3623_v35, %v2877_v25  ;;  %v3023_v4 = vadd.f32 %v3623_v35, %v2915_v12  ;;  %v3026_v55 = vadd.f32 %v3623_v35, %v654_v42 }
 0x24b   :  { %3628 = vst [vmem:[#allocation27_spill] sm:$0xff] %v3003_v2  ;;  %3629 = vst [vmem:[#allocation32_spill] sm:$0xff] %v3007_v39  ;;  %v3029_v48 = vadd.f32 %v3623_v35, %v663_v45  ;;  %v3032_v1 = vadd.f32 %v3623_v35, %v672_v51  ;;  %v3035_v56 = vadd.f32 %v3623_v35, %v685_v47 }
 0x24c   :  { %3630 = vst [vmem:[#allocation28_spill] sm:$0xff] %v3011_v46  ;;  %3631 = vst [vmem:[#allocation29_spill] sm:$0xff] %v3015_v33  ;;  %v725_v36 = vadd.f32 %v724_v61, %v723_v18  ;;  %v3038_v25 = vadd.f32 %v3623_v35, %v694_v0  ;;  %v3041_v9 = vadd.f32 %v3623_v35, %v703_v30 }
 0x24d   :  { %3632 = vst [vmem:[#allocation57_spill] sm:$0xff] %v3019_v6  ;;  %3633 = vst [vmem:[#allocation34_spill] sm:$0xff] %v3023_v4  ;;  %v3044_v12 = vadd.f32 %v3623_v35, %v712_v49  ;;  %v1142_v62 = vmul.f32 %v3641_v10, %v2931_v16  ;;  %v1143_v14 = vmul.f32 %v3642_v11, %v2935_v5 }
 0x24e   :  { %3634 = vst [vmem:[#allocation33_spill] sm:$0xff] %v3026_v55  ;;  %3635 = vst [vmem:[#allocation30_spill] sm:$0xff] %v3029_v48  ;;  %v3052_v52 = vmul.f32 %v3643_v24, %v2939_v13  ;;  %v3056_v17 = vmul.f32 %v3644_v37, %v2943_v63  ;;  %v3059_v58 = vadd.f32 %v3623_v35, %v725_v36 }
 0x24f   :  { %3636 = vst [vmem:[#allocation31_spill] sm:$0xff] %v3032_v1  ;;  %3637 = vst [vmem:[#allocation58_spill] sm:$0xff] %v3035_v56  ;;  %v1146_v53 = vmul.f32 %v3641_v10, %v2947_v32  ;;  %v1147_v19 = vmul.f32 %v3642_v11, %v2951_v27  ;;  %v1148_v43 = vmul.f32 %v3643_v24, %v2955_v59 }
 0x250   :  { %3638 = vst [vmem:[#allocation36_spill] sm:$0xff] %v3038_v25  ;;  %3639 = vst [vmem:[#allocation35_spill] sm:$0xff] %v3041_v9  ;;  %v3069_v38 = vmul.f32 %v3644_v37, %v2959_v8  ;;  %v1150_v3 = vmul.f32 %v3641_v10, %v2963_v40  ;;  %v1151_v54 = vmul.f32 %v3642_v11, %v2967_v60 }
 0x251   :  { %3640 = vst [vmem:[#allocation59_spill] sm:$0xff] %v3044_v12  ;;  %v1152_v42 = vmul.f32 %v3643_v24, %v2971_v15  ;;  %v3079_v45 = vmul.f32 %v3644_v37, %v2975_v34  ;;  %v1154_v51 = vmul.f32 %v3641_v10, %v2979_v41  ;;  %v1155_v23 = vmul.f32 %v3642_v11, %v2983_v21 }
 0x252   :  { %v1156_v29 = vmul.f32 %v3643_v24, %v2987_v7  ;;  %v3089_v50 = vmul.f32 %v3644_v37, %v2991_v20  ;;  %v1158_v22 = vmul.f32 %v3641_v10, %v2995_v26  ;;  %v1159_v57 = vmul.f32 %v3642_v11, %v2999_v44 }
 0x253   :  { %v1160_v47 = vmul.f32 %v3643_v24, %v3003_v2  ;;  %v3099_v35 = vmul.f32 %v3644_v37, %v3007_v39  ;;  %v1162_v0 = vmul.f32 %v3641_v10, %v3011_v46  ;;  %v1163_v30 = vmul.f32 %v3642_v11, %v3015_v33 }
 0x254   :  { %v1164_v49 = vmul.f32 %v3643_v24, %v3019_v6  ;;  %v3109_v28 = vmul.f32 %v3644_v37, %v3023_v4  ;;  %v1166_v31 = vmul.f32 %v3641_v10, %v3026_v55  ;;  %v1167_v18 = vmul.f32 %v3642_v11, %v3029_v48 }
 0x255   :  { %v1168_v61 = vmul.f32 %v3643_v24, %v3032_v1  ;;  %v3119_v36 = vmul.f32 %v3644_v37, %v3035_v56  ;;  %v1170_v39 = vmul.f32 %v3641_v10, %v3038_v25  ;;  %v1171_v4 = vmul.f32 %v3642_v11, %v3041_v9 }
 0x256   :  { %v1172_v20 = vmul.f32 %v3643_v24, %v3044_v12  ;;  %v1173_v48 = vmul.f32 %v3644_v37, %v3059_v58  ;;  %v1206_v55 = vrot.slane %v1146_v53, 7  ;;  %v1209_v1 = vrot.slane %v1150_v3, 6 }
 0x257   :  { %v1212_v34 = vrot.slane %v1154_v51, 5  ;;  %v1215_v6 = vrot.slane %v1158_v22, 4  ;;  %v1218_v33 = vrot.slane %v1162_v0, 3  ;;  %v1221_v56 = vrot.slane %v1166_v31, 2 }
 0x258   :  { %v1224_v46 = vrot.slane %v1170_v39, 1  ;;  %v1208_v8 = vsel %vm1207_vm3, %v1206_v55, %v1142_v62  ;;  %v1227_v10 = vrot.slane %v1147_v19, 7  ;;  %v1229_v25 = vrot.slane %v1151_v54, 6 }
 0x259   :  { %v1231_v63 = vrot.slane %v1155_v23, 5  ;;  %v1211_v11 = vsel %vm1210_vm4, %v1209_v1, %v1208_v8  ;;  %v1233_v9 = vrot.slane %v1159_v57, 4  ;;  %v1235_v24 = vrot.slane %v1163_v30, 3 }
 0x25a   :  { %v1237_v12 = vrot.slane %v1167_v18, 2  ;;  %v1214_v2 = vsel %vm1213_vm5, %v1212_v34, %v1211_v11  ;;  %v1228_v53 = vsel %vm1207_vm3, %v1227_v10, %v1143_v14  ;;  %v1239_v3 = vrot.slane %v1171_v4, 1 }
 0x25b   :  { %v1241_v51 = vrot.slane %v1148_v43, 7  ;;  %v1217_v22 = vsel %vm1216_vm6, %v1215_v6, %v1214_v2  ;;  %v1230_v39 = vsel %vm1210_vm4, %v1229_v25, %v1228_v53  ;;  %v1243_v0 = vrot.slane %v1152_v42, 6 }
 0x25c   :  { %v1245_v55 = vrot.slane %v1156_v29, 5  ;;  %v1220_v62 = vsel %vm1219_vm7, %v1218_v33, %v1217_v22  ;;  %v1232_v19 = vsel %vm1213_vm5, %v1231_v63, %v1230_v39  ;;  %v1247_v1 = vrot.slane %v1160_v47, 4  ;;  %v3649_v22 = vld [vmem:[#allocation29_spill] sm:$0xff] }
 0x25d   :  { %v1242_v8 = vsel %vm1207_vm3, %v1241_v51, %v3052_v52  ;;  %v1223_v34 = vsel %vm1222_vm8, %v1221_v56, %v1220_v62  ;;  %v1234_v10 = vsel %vm1216_vm6, %v1233_v9, %v1232_v19  ;;  %v1249_v11 = vrot.slane %v1164_v49, 3  ;;  %v3650_v39 = vld [vmem:[#allocation57_spill] sm:$0xff]  ;;  %v3653_v19 = vld [vmem:[#allocation30_spill] sm:$0xff] }
 0x25e   :  { %v1244_v4 = vsel %vm1210_vm4, %v1243_v0, %v1242_v8  ;;  %v1226_v2 = vsel %vm1225_vm9, %v1224_v46, %v1223_v34  ;;  %v1236_v6 = vsel %vm1219_vm7, %v1235_v24, %v1234_v10  ;;  %v1251_v33 = vrot.slane %v1168_v61, 2  ;;  %v3651_v0 = vld [vmem:[#allocation56_spill] sm:$0xff]  ;;  %v3655_v10 = vld [vmem:[#allocation26_spill] sm:$0xff] }
 0x25f   :  { %v1246_v25 = vsel %vm1213_vm5, %v1245_v55, %v1244_v4  ;;  %v1238_v63 = vsel %vm1222_vm8, %v1237_v12, %v1236_v6  ;;  %v1253_v52 = vrot.slane %v1172_v20, 1  ;;  %v1255_v43 = vrot.slane %v3069_v38, 7  ;;  %v3652_v55 = vld [vmem:[#allocation33_spill] sm:$0xff]  ;;  %v3657_v6 = vld [vmem:[#allocation35_spill] sm:$0xff] }
 0x260   :  { %v1248_v14 = vsel %vm1216_vm6, %v1247_v1, %v1246_v25  ;;  %v1240_v56 = vsel %vm1225_vm9, %v1239_v3, %v1238_v63  ;;  %v1257_v54 = vrot.slane %v3079_v45, 6  ;;  %v1259_v46 = vrot.slane %v3089_v50, 5  ;;  %v3647_v3 = vld [vmem:[#allocation55_spill] sm:$0xff] }
 0x261   :  { %v1250_v9 = vsel %vm1219_vm7, %v1249_v11, %v1248_v14  ;;  %v1256_v42 = vsel %vm1207_vm3, %v1255_v43, %v3056_v17  ;;  %v1261_v12 = vrot.slane %v3099_v35, 4  ;;  %v1263_v23 = vrot.slane %v3109_v28, 3  ;;  %v3654_v1 = vld [vmem:[#allocation31_spill] sm:$0xff]  ;;  %v3656_v11 = vld [vmem:[#allocation36_spill] sm:$0xff]  ;;  %v3660_v43 = vld [vmem:[#allocation34_spill] sm:$0xff] }
 0x262   :  { %v1252_v24 = vsel %vm1222_vm8, %v1251_v33, %v1250_v9  ;;  %v1258_v38 = vsel %vm1210_vm4, %v1257_v54, %v1256_v42  ;;  %v1265_v29 = vrot.slane %v3119_v36, 2  ;;  %v1267_v45 = vrot.slane %v1173_v48, 1  ;;  %v3658_v33 = vld [vmem:[#allocation59_spill] sm:$0xff]  ;;  %v3659_v14 = vld [vmem:[#allocation32_spill] sm:$0xff]  ;;  %v3661_v9 = vld [vmem:[#allocation58_spill] sm:$0xff] }
 0x263   :  { %v1254_v20 = vsel %vm1225_vm9, %v1253_v52, %v1252_v24  ;;  %v1260_v57 = vsel %vm1213_vm5, %v1259_v46, %v1258_v38  ;;  %v1273_v47 = vadd.f32 %v1240_v56, %v1226_v2  ;;  %v1405_v28 = vsel %vm1207_vm3, %v2947_v32, %v2931_v16  ;;  %v3662_v38 = vld [vmem:[#allocation18_spill] sm:$0xff] }
 0x264   :  { %v1262_v50 = vsel %vm1216_vm6, %v1261_v12, %v1260_v57  ;;  %v1412_v31 = vsel %vm1207_vm3, %v2951_v27, %v2935_v5  ;;  %v1419_v48 = vsel %vm1207_vm3, %v2955_v59, %v2939_v13  ;;  %v1406_v61 = vsel %vm1210_vm4, %v2963_v40, %v1405_v28  ;;  %v3645_v40 = vld [vmem:[#allocation27_spill] sm:$0xff]  ;;  %v3663_v57 = vld [vmem:[#allocation20_spill] sm:$0xff] }
 0x265   :  { %v1264_v30 = vsel %vm1219_vm7, %v1263_v23, %v1262_v50  ;;  %v1274_v49 = vadd.f32 %v1273_v47, %v1254_v20  ;;  %v1413_v36 = vsel %vm1210_vm4, %v2967_v60, %v1412_v31  ;;  %v1420_v53 = vsel %vm1210_vm4, %v2971_v15, %v1419_v48  ;;  %v3646_v15 = vld [vmem:[#allocation54_spill] sm:$0xff]  ;;  %v1038_v23 = vld [vmem:[#allocation9] sm:$0xf]  ;;  %v1039_v20 = vld [vmem:[#allocation11] sm:$0xf] }
 0x266   :  { %v1266_v17 = vsel %vm1222_vm8, %v1265_v29, %v1264_v30  ;;  %v1407_v32 = vsel %vm1213_vm5, %v2979_v41, %v1406_v61  ;;  %v1414_v5 = vsel %vm1213_vm5, %v2983_v21, %v1413_v36  ;;  %v1421_v13 = vsel %vm1213_vm5, %v2987_v7, %v1420_v53  ;;  %v3648_v41 = vld [vmem:[#allocation28_spill] sm:$0xff]  ;;  %v3664_v47 = vld [vmem:[#allocation19_spill] sm:$0xff]  ;;  %v3665_v30 = vld [vmem:[#allocation21_spill] sm:$0xff] }
 0x267   :  { %v1268_v35 = vsel %vm1225_vm9, %v1267_v45, %v1266_v17  ;;  %v1408_v27 = vsel %vm1216_vm6, %v2995_v26, %v1407_v32  ;;  %v1415_v59 = vsel %vm1216_vm6, %v2999_v44, %v1414_v5  ;;  %v1422_v60 = vsel %vm1216_vm6, %v3645_v40, %v1421_v13  ;;  %v3666_v48 = vld [vmem:[#allocation50_spill] sm:$0xff]  ;;  %v3667_v61 = vld [vmem:[#allocation51_spill] sm:$0xff]  ;;  %v3668_v53 = vld [vmem:[#allocation52_spill] sm:$0xff] }
 0x268   :  { %v1275_v18 = vsel %vm432_vm2, %v1268_v35, 0.0  ;;  %v1426_v51 = vsel %vm1207_vm3, %v3647_v3, %v3646_v15  ;;  %v1409_v21 = vsel %vm1219_vm7, %v3648_v41, %v1408_v27  ;;  %v1416_v7 = vsel %vm1219_vm7, %v3649_v22, %v1415_v59  ;;  %v3669_v32 = vld [vmem:[#allocation53_spill] sm:$0xff]  ;;  %v3670_v41 = vld [vmem:[#allocation22_spill] sm:$0xff]  ;;  %v3671_v22 = vld [vmem:[#allocation24_spill] sm:$0xff] }
 0x269   :  { %v1276_v16 = vadd.f32 %v1275_v18, %v1274_v49  ;;  %v1423_v26 = vsel %vm1219_vm7, %v3650_v39, %v1422_v60  ;;  %v1427_v44 = vsel %vm1210_vm4, %v3651_v0, %v1426_v51  ;;  %v1410_v62 = vsel %vm1222_vm8, %v3652_v55, %v1409_v21 }
 0x26a   :  { %v1417_v8 = vsel %vm1222_vm8, %v3653_v19, %v1416_v7  ;;  %v1424_v34 = vsel %vm1222_vm8, %v3654_v1, %v1423_v26  ;;  %v1428_v4 = vsel %vm1213_vm5, %v3655_v10, %v1427_v44  ;;  %v3214_v2 = vsel %vm1225_vm9, %v3656_v11, %v1410_v62  ;;  %v3672_v26 = vld [vmem:[#allocation23_spill] sm:$0xff] }
 0x26b   :  { %1277 = vadd.xlane.f32.xlu0 %v1276_v16  ;;  %v3218_v25 = vsel %vm1225_vm9, %v3657_v6, %v1417_v8  ;;  %v3222_v63 = vsel %vm1225_vm9, %v3658_v33, %v1424_v34  ;;  %v1429_v52 = vsel %vm1216_vm6, %v3659_v14, %v1428_v4  ;;  %v1073_v29 = vrot.slane %v1038_v23, %v3662_v38  ;;  %v3676_v6 = vld [vmem:[#allocation17_spill] sm:$0xff] }
 0x26c   :  { %v1430_v56 = vsel %vm1219_vm7, %v3660_v43, %v1429_v52  ;;  %v1061_v24 = vpop.xlane.xlu1 %1060  ;;  %v1077_v45 = vrot.slane %v1038_v23, %v3663_v57  ;;  %v1081_v50 = vrot.slane %v1038_v23, %v3664_v47  ;;  %v1085_v49 = vrot.slane %v1038_v23, %v3665_v30 }
 0x26d   :  { %v1431_v54 = vsel %vm1222_vm8, %v3661_v9, %v1430_v56  ;;  %v1062_v42 = vmul.f32 0.0025, %v1061_v24  ;;  %v1098_v35 = vrot.slane %v1039_v20, %v3662_v38  ;;  %v1106_v28 = vrot.slane %v1039_v20, %v3664_v47 }
 0x26e   :  { %v3232_v46 = vsel %vm1225_vm9, %v3059_v58, %v1431_v54  ;;  %v1102_v58 = vrot.slane %v1039_v20, %v3663_v57  ;;  %v1110_v31 = vrot.slane %v1039_v20, %v3665_v30  ;;  %v3673_v8 = vlaneseq }
 0x26f   :  { %v1063_v12 = vadd.f32 1e-05, %v1062_v42  ;;  %v1789_v34 = vmov -1e+30   ;;  %v1790_v10 = vmov 0.0   ;;  %vm1297_vm12 = vcmp.lt.s32.totalorder %v3676_v6, 2 }
 0x270   :  { %vm3264_vm11 = vcmp.lt.s32.totalorder %v3673_v8, 400  ;;  %90 = vst.msk [vmem:[#allocation2] sm:$0x1] %vm89_vm10, %v1789_v34  ;;  %91 = vst.msk [vmem:[#allocation3] sm:$0x1] %vm89_vm10, %v1790_v10 }
 0x271   :  { %1679 = vrsqrt.f32 %v1063_v12  ;;  %96 = vst.msk [vmem:[#allocation4] sm:$0xf] %vm3264_vm11, %v1790_v10 }
 0x277   :  { %v1300_v20 = vld [vmem:[#allocation2] sm:$0x1] }
 0x27b   :  { %v1680_v17 = vpop.eup %1679 }
 0x27c   :  { %v1065_v18 = vmul.f32 %v1680_v17, %v3666_v48  ;;  %v1066_v36 = vmul.f32 %v1680_v17, %v3667_v61  ;;  %v1067_v16 = vmul.f32 %v1680_v17, %v3668_v53  ;;  %v1068_v5 = vmul.f32 %v1680_v17, %v3669_v32 }
 0x27e   :  { %v1090_v13 = vmul.f32 %v1073_v29, %v1065_v18  ;;  %v1091_v27 = vmul.f32 %v1077_v45, %v1066_v36  ;;  %v1092_v59 = vmul.f32 %v1081_v50, %v1067_v16  ;;  %v1093_v40 = vmul.f32 %v1085_v49, %v1068_v5 }
 0x280   :  { %v3246_v60 = vadd.f32 %v1098_v35, %v1090_v13  ;;  %v3248_v15 = vadd.f32 %v1102_v58, %v1091_v27  ;;  %v3250_v3 = vadd.f32 %v1106_v28, %v1092_v59  ;;  %v3252_v51 = vadd.f32 %v1110_v31, %v1093_v40 }
 0x281   :  { %v1791_v13 = vmov 1966171168  }
 0x282   :  { %v1281_v21 = vmul.f32 %v3670_v41, %v3246_v60  ;;  %v1282_v7 = vmul.f32 %v3671_v22, %v3248_v15  ;;  %v1284_v39 = vmul.f32 %v3644_v37, %v3252_v51  ;;  %v1283_v0 = vmul.f32 %v3672_v26, %v3250_v3 }
 0x283   :  { %v1279_v37 = vstv %s3328_s9  ;;  %v1473_v27 = vunpack.c.l.s4 %v1791_v13 }
 0x284   :  { %v1285_v44 = vadd.f32 %v1282_v7, %v1281_v21  ;;  %v1287_v62 = vsel %vm432_vm2, %v1284_v39, 0.0 }
 0x285   :  { %v1474_v22 = vunpack.c.0.s8 %v1473_v27 }
 0x286   :  { %v1286_v55 = vadd.f32 %v1285_v44, %v1283_v0 }
 0x287   :  { %v3294_v10 = vsub.s32 %v1474_v22, %v3676_v6 }
 0x288   :  { %v1288_v19 = vadd.f32 %v1287_v62, %v1286_v55 }
 0x28a   :  { %1289 = vadd.xlane.f32.xlu1 %v1288_v19 }
 0x2f8   :  { %v1278_v4 = vpop.xlane.xlu0 %1277 }
 0x2f9   :  { %v1280_v11 = vadd.f32 %v1279_v37, %v1278_v4 }
 0x2fb   :  { %v1298_v52 = vsel %vm1297_vm12, %v1280_v11, -1e+30 }
 0x317   :  { %v1290_v33 = vpop.xlane.xlu1 %1289 }
 0x318   :  { %v1291_v14 = vadd.f32 %v1290_v33, %v1279_v37 }
 0x31a   :  { %v1299_v43 = vsel %vm1297_vm12, %v1291_v14, -1e+30 }
 0x31b   :  { %v1301_v56 = vmax.f32 %v1298_v52, %v1299_v43 }
 0x31d   :  { %v1302_v9 = vrot.slane %v1301_v56, 4 }
 0x31f   :  { %v1303_v54 = vmax.f32 %v1301_v56, %v1302_v9 }
 0x321   :  { %v1304_v24 = vrot.slane %v1303_v54, 2 }
 0x323   :  { %v1305_v42 = vmax.f32 %v1303_v54, %v1304_v24 }
 0x325   :  { %v1306_v12 = vrot.slane %v1305_v42, 1 }
 0x327   :  { %v1307_v23 = vmax.f32 %v1305_v42, %v1306_v12 }
 0x329   :  { %1622 = vpush %v1307_v23 }
 0x35a   :  { %s1623_s9 = spop %1622 }
 0x35b   :  { %v1309_v29 = vstv %s1623_s9 }
 0x35c   :  { %v1310_v57 = vmax.f32 %v1300_v20, %v1309_v29 }
 0x35e   :  { %v1311_v45 = vsub.f32 %v1300_v20, %v1310_v57  ;;  %v1318_v47 = vrot.slane %v1310_v57, %v3662_v38  ;;  %1565 = vst.msk [vmem:[#allocation2] sm:$0x1] %vm89_vm10, %v1310_v57 }
 0x360   :  { %v1312_v50 = vmul.f32 1.442695, %v1311_v45  ;;  %v1320_v30 = vsub.f32 %v1298_v52, %v1318_v47  ;;  %v1324_v49 = vsub.f32 %v1299_v43, %v1318_v47 }
 0x362   :  { %1681 = vpow2.f32 %v1312_v50  ;;  %v1321_v17 = vmul.f32 1.442695, %v1320_v30  ;;  %v1325_v35 = vmul.f32 1.442695, %v1324_v49 }
 0x364   :  { %1683 = vpow2.f32 %v1321_v17 }
 0x365   :  { %1685 = vpow2.f32 %v1325_v35 }
 0x36c   :  { %v3282_v58 = vpop.eup %1681 }
 0x36d   :  { %1360 = vperm.xlu0 %1637, %v3282_v58  }
 0x36e   :  { %v1684_v28 = vpop.eup %1683 }
 0x36f   :  { %v1686_v31 = vpop.eup %1685  ;;  %v1323_v48 = vsel %vm1297_vm12, %v1684_v28, 0.0 }
 0x370   :  { %v1331_v18 = vsel %vm1330_vm13, %v1323_v48, 0.0  ;;  %v1327_v61 = vsel %vm1297_vm12, %v1686_v31, 0.0 }
 0x371   :  { %1332 = vadd.xlane.f32.xlu1 %v1331_v18  ;;  %v1343_v36 = vsel %vm1330_vm13, %v1327_v61, 0.0 }
 0x375   :  { %1344 = vadd.xlane.f32.xlu1 %v1343_v36 }
 0x386   :  { %1370 = vperm.xlu1 %1638, %v1323_v48  }
 0x38a   :  { %1498 = vperm.xlu1 %1638, %v1327_v61  }
 0x3fe   :  { %v1333_v53 = vpop.xlane.xlu1 %1332 }
 0x3ff   :  { %v1334_v16 = vrot.slane %v1333_v53, 4 }
 0x401   :  { %v1335_v32 = vadd.f32 %v1334_v16, %v1333_v53 }
 0x402   :  { %v1345_v5 = vpop.xlane.xlu1 %1344 }
 0x403   :  { %v1336_v59 = vrot.slane %v1335_v32, 2  ;;  %v1346_v40 = vrot.slane %v1345_v5, 4 }
 0x405   :  { %v1347_v41 = vadd.f32 %v1346_v40, %v1345_v5  ;;  %v1337_v21 = vadd.f32 %v1336_v59, %v1335_v32 }
 0x406   :  { %v1371_v7 = vpop.permute.xlu1 %1370 }
 0x407   :  { %v1348_v39 = vrot.slane %v1347_v41, 2  ;;  %v1437_v26 = vmul.f32 %v3214_v2, %v1371_v7  ;;  %v1438_v0 = vmul.f32 %v3218_v25, %v1371_v7  ;;  %v1439_v44 = vmul.f32 %v3222_v63, %v1371_v7 }
 0x408   :  { %v1440_v55 = vmul.f32 %v3232_v46, %v1371_v7  ;;  %v1338_v62 = vrot.slane %v1337_v21, 1 }
 0x409   :  { %v1441_v19 = vrot.slane %v1437_v26, 4  ;;  %v1447_v8 = vrot.slane %v1438_v0, 4  ;;  %v1453_v34 = vrot.slane %v1439_v44, 4  ;;  %v1349_v33 = vadd.f32 %v1348_v39, %v1347_v41 }
 0x40a   :  { %v1459_v37 = vsel %vm432_vm2, %v1440_v55, 0.0  ;;  %v1499_v4 = vpop.permute.xlu1 %1498  ;;  %v1339_v11 = vadd.f32 %v1338_v62, %v1337_v21 }
 0x40b   :  { %v1442_v14 = vadd.f32 %v1441_v19, %v1437_v26  ;;  %v1448_v2 = vadd.f32 %v1447_v8, %v1438_v0  ;;  %v1454_v52 = vadd.f32 %v1453_v34, %v1439_v44  ;;  %v1460_v25 = vrot.slane %v1459_v37, 4  ;;  %v1361_v8 = vpop.permute.xlu0 %1360 }
 0x40c   :  { %v1501_v63 = vmul.f32 %v1499_v4, %v3246_v60  ;;  %v1502_v46 = vmul.f32 %v1499_v4, %v3248_v15  ;;  %v1503_v43 = vmul.f32 %v1499_v4, %v3250_v3  ;;  %v1504_v56 = vmul.f32 %v1499_v4, %v3252_v51  ;;  %1624 = vpush %v1339_v11 }
 0x40d   :  { %v1443_v6 = vrot.slane %v1442_v14, 2  ;;  %v1449_v9 = vrot.slane %v1448_v2, 2  ;;  %v1455_v54 = vrot.slane %v1454_v52, 2  ;;  %v1461_v24 = vadd.f32 %v1460_v25, %v1459_v37  ;;  %v1357_v25 = vld [vmem:[#allocation4] sm:$0xf] }
 0x40e   :  { %v1505_v42 = vrot.slane %v1501_v63, 4  ;;  %v1511_v12 = vrot.slane %v1502_v46, 4  ;;  %v1517_v23 = vrot.slane %v1503_v43, 4  ;;  %v1523_v20 = vsel %vm432_vm2, %v1504_v56, 0.0 }
 0x40f   :  { %v1444_v29 = vadd.f32 %v1443_v6, %v1442_v14  ;;  %v1450_v57 = vadd.f32 %v1449_v9, %v1448_v2  ;;  %v1456_v45 = vadd.f32 %v1455_v54, %v1454_v52  ;;  %v1462_v60 = vrot.slane %v1461_v24, 2  ;;  %v1328_v54 = vld [vmem:[#allocation3] sm:$0x1] }
 0x410   :  { %v1506_v47 = vadd.f32 %v1505_v42, %v1501_v63  ;;  %v1512_v15 = vadd.f32 %v1511_v12, %v1502_v46  ;;  %v1518_v50 = vadd.f32 %v1517_v23, %v1503_v43  ;;  %v1524_v3 = vrot.slane %v1523_v20, 4 }
 0x411   :  { %v1445_v30 = vrot.slane %v1444_v29, 1  ;;  %v1451_v51 = vrot.slane %v1450_v57, 1  ;;  %v1457_v49 = vrot.slane %v1456_v45, 1  ;;  %v1463_v17 = vadd.f32 %v1462_v60, %v1461_v24 }
 0x412   :  { %v1507_v35 = vrot.slane %v1506_v47, 2  ;;  %v1513_v28 = vrot.slane %v1512_v15, 2  ;;  %v1519_v31 = vrot.slane %v1518_v50, 2  ;;  %v1525_v48 = vadd.f32 %v1524_v3, %v1523_v20 }
 0x413   :  { %v1446_v18 = vadd.f32 %v1445_v30, %v1444_v29  ;;  %v1452_v61 = vadd.f32 %v1451_v51, %v1450_v57  ;;  %v1458_v36 = vadd.f32 %v1457_v49, %v1456_v45  ;;  %v1464_v53 = vrot.slane %v1463_v17, 1 }
 0x414   :  { %v1508_v16 = vadd.f32 %v1507_v35, %v1506_v47  ;;  %v1514_v32 = vadd.f32 %v1513_v28, %v1512_v15  ;;  %v1520_v5 = vadd.f32 %v1519_v31, %v1518_v50  ;;  %v1526_v13 = vrot.slane %v1525_v48, 2 }
 0x415   :  { %v1465_v27 = vadd.f32 %v1464_v53, %v1463_v17  ;;  %v1470_v59 = vcombine.low %v1446_v18, %v1452_v61  ;;  %v1350_v40 = vrot.slane %v1349_v33, 1  ;;  %v1366_v14 = vrot.slane %v1361_v8, %v3662_v38 }
 0x416   :  { %v1509_v41 = vrot.slane %v1508_v16, 1  ;;  %v1515_v21 = vrot.slane %v1514_v32, 1  ;;  %v1521_v22 = vrot.slane %v1520_v5, 1  ;;  %v1527_v7 = vadd.f32 %v1526_v13, %v1525_v48 }
 0x417   :  { %v1471_v39 = vcombine.low %v1458_v36, %v1465_v27  ;;  %v1478_v26 = vrot.slane %v1470_v59, %v3294_v10  ;;  %v1351_v0 = vadd.f32 %v1350_v40, %v1349_v33  ;;  %v1367_v46 = vmul.f32 %v1366_v14, %v1357_v25 }
 0x418   :  { %v1510_v44 = vadd.f32 %v1509_v41, %v1508_v16  ;;  %v1516_v55 = vadd.f32 %v1515_v21, %v1514_v32  ;;  %v1522_v62 = vadd.f32 %v1521_v22, %v1520_v5  ;;  %v1528_v19 = vrot.slane %v1527_v7, 1 }
 0x419   :  { %v1485_v34 = vrot.slane %v1471_v39, %v3294_v10  ;;  %1626 = vpush %v1351_v0  ;;  %v1329_v42 = vmul.f32 %v3282_v58, %v1328_v54 }
 0x41a   :  { %v1529_v37 = vadd.f32 %v1528_v19, %v1527_v7  ;;  %v1534_v4 = vcombine.low %v1510_v44, %v1516_v55 }
 0x41b   :  { %v1486_v11 = vcombine.low %v1478_v26, %v1485_v34 }
 0x41c   :  { %v1535_v2 = vcombine.low %v1522_v62, %v1529_v37  ;;  %v1542_v52 = vrot.slane %v1534_v4, %v3294_v10 }
 0x41d   :  { %v1493_v63 = vrot.slane %v1486_v11, %v3294_v10 }
 0x41e   :  { %v1549_v33 = vrot.slane %v1535_v2, %v3294_v10 }
 0x41f   :  { %v1495_v56 = vadd.f32 %v1493_v63, %v1367_v46 }
 0x420   :  { %v1550_v43 = vcombine.low %v1542_v52, %v1549_v33 }
 0x422   :  { %v1557_v6 = vrot.slane %v1550_v43, %v3294_v10 }
 0x424   :  { %v1559_v9 = vadd.f32 %v1557_v6, %v1495_v56 }
 0x426   :  { %1564 = vst.msk [vmem:[#allocation4] sm:$0xf] %vm3264_vm11, %v1559_v9 }
 0x42d   :  { %v1569_v60 = vld [vmem:[#allocation4] sm:$0xf] }
 0x43d   :  { %s1625_s25 = spop %1624 }
 0x43e   :  { %v1341_v24 = vstv %s1625_s25 }
 0x43f   :  { %v1342_v12 = vadd.f32 %v1341_v24, %v1329_v42 }
 0x44a   :  { %s1627_s26 = spop %1626 }
 0x44b   :  { %v1353_v23 = vstv %s1627_s26 }
 0x44c   :  { %v1354_v20 = vadd.f32 %v1353_v23, %v1342_v12 }
 0x44e   :  { %1356 = vst.msk [vmem:[#allocation3] sm:$0x1] %vm89_vm10, %v1354_v20 }
 0x455   :  { %v1570_v29 = vld [vmem:[#allocation3] sm:$0x1] }
 0x456   :  { %1573 = vperm.xlu1 %1638, %v1570_v29  }
 0x4d5   :  { %v1574_v57 = vpop.permute.xlu1 %1573 }
 0x4d6   :  { %v1579_v10 = vrot.slane %v1574_v57, %v3662_v38 }
 0x4d8   :  { %1687 = vrcp.f32 %v1579_v10 }
 0x4e2   :  { %v1688_v45 = vpop.eup %1687 }
 0x4e3   :  { %v1581_v47 = vmul.f32 %v1688_v45, %v1569_v60 }
 0x4e5   :  { %1582 = vst.msk [vmem:[%s3329_s10] sm:$0xf] %vm3264_vm11, %v1581_v47 }
 0x4e6   :  { %1587 = vsyncpa [#allocation8], 1 }
 0x4e7   :  { %1588 = vsyncpa [#allocation10], 1 }
 0x4e8   :  { %1589 = vsyncpa [#allocation13], 1 }

// kernel: rewarder_forward.3
= control target key start
LH: loop header
LB: loop body
LE: loop exit
PB: predicated region body
PF: predicated region fallthrough
CT: control target
= control target key end

     0   :  { %v4955_v1 = vmov 0   ;;  %vm232_vm0 = vcmask 1041408   ;;  %vm228_vm1 = vcmask 818176   ;;  %v78_v38 = vlaneseq  ;;  %s6550_s2 = inlined_call_operand.vmem [shape: bf16[100,400], index: 2, kind: input, shape index: {}]   ;;  %s6551_s0 = inlined_call_operand.vmem [shape: bf16[8,100], index: 0, kind: input, shape index: {}]   ;;  %s6552_s3 = inlined_call_operand.vmem [shape: f32[1,400], index: 3, kind: input, shape index: {}]   ;;  %s6553_s6 = inlined_call_operand.vmem [shape: bf16[400,800], index: 6, kind: input, shape index: {}]   ;;  %s6554_s4 = inlined_call_operand.vmem [shape: f32[1,400], index: 4, kind: input, shape index: {}]   ;;  %s6555_s5 = inlined_call_operand.vmem [shape: f32[1,400], index: 5, kind: input, shape index: {}]   ;;  %s6556_s1 = inlined_call_operand.vmem [shape: f32[1,400], index: 1, kind: input, shape index: {}]   ;;  %s6557_s8 = inlined_call_operand.vmem [shape: bf16[800,400], index: 8, kind: input, shape index: {}]   ;;  %s6558_s7 = inlined_call_operand.vmem [shape: f32[1,800], index: 7, kind: input, shape index: {}]   ;;  %s6559_s10 = inlined_call_operand.vmem [shape: bf16[400,64], index: 10, kind: input, shape index: {}]   ;;  %s6560_s9 = inlined_call_operand.vmem [shape: f32[1,400], index: 9, kind: input, shape index: {}]   ;;  %s6561_s11 = inlined_call_operand.vmem [shape: f32[1,64], index: 11, kind: input, shape index: {}]   ;;  %s6562_s12 = inlined_call_operand.vmem [shape: f32[1,64], index: 12, kind: input, shape index: {}]   ;;  %s6563_s13 = inlined_call_operand.<no memory space> [shape: f32[1,1], index: 13, kind: input, shape index: {}]   ;;  %s6564_s14 = inlined_call_operand.vmem [shape: f32[1,1,8], index: 14, kind: output, shape index: {}]  }
   0x1   :  { %v4334_v0 = vld [vmem:[%s6550_s2 + $0x4] ss:$16 sps:$4 sm:$0xff]   ;;  %277 = vmatprep.mubr.bf16.mxu1 %v4955_v1  ;;  %v4336_v2 = vld [vmem:[%s6550_s2] ss:$16 sps:$4 sm:$0xff]   ;;  %v4356_v17 = vld [vmem:[%s6550_s2 + $0xc] ss:$16 sps:$4 sm:$0xff]  }
   0x2   :  { %245 = vmatprep.subr.bf16.mxu1 %v4334_v0  ;;  %v4337_v3 = vld [vmem:[%s6550_s2 + $0x24] ss:$16 sps:$4 sm:$0xff]   ;;  %v4339_v4 = vld [vmem:[%s6550_s2 + $0x20] ss:$16 sps:$4 sm:$0xff]   ;;  %v4354_v19 = vld [vmem:[%s6550_s2 + $0x8] ss:$16 sps:$4 sm:$0xff]  }
   0x3   :  { %246 = vmatpush1.bf16.msra.mxu1 %v4336_v2  ;;  %v4340_v5 = vld [vmem:[%s6550_s2 + $0x44] ss:$16 sps:$4 sm:$0xff]   ;;  %v4342_v6 = vld [vmem:[%s6550_s2 + $0x40] ss:$16 sps:$4 sm:$0xff]   ;;  %v4359_v20 = vld [vmem:[%s6550_s2 + $0x2c] ss:$16 sps:$4 sm:$0xff]  }
   0x4   :  { %247 = vmatprep.subr.bf16.mxu1 %v4337_v3  ;;  %v4343_v7 = vld [vmem:[%s6550_s2 + $0x64] ss:$16 sps:$4 sm:$0xff]   ;;  %v4345_v8 = vld [vmem:[%s6550_s2 + $0x60] ss:$16 sps:$4 sm:$0xff]   ;;  %v4357_v21 = vld [vmem:[%s6550_s2 + $0x28] ss:$16 sps:$4 sm:$0xff]  }
   0x5   :  { %v4346_v9 = vld [vmem:[%s6550_s2 + $0x84] ss:$16 sps:$4 sm:$0xff]   ;;  %v4348_v10 = vld [vmem:[%s6550_s2 + $0x80] ss:$16 sps:$4 sm:$0xff]   ;;  %v4362_v22 = vld [vmem:[%s6550_s2 + $0x4c] ss:$16 sps:$4 sm:$0xff]  }
   0x6   :  { %v4349_v11 = vld [vmem:[%s6550_s2 + $0xa4] ss:$16 sps:$4 sm:$0xff]   ;;  %v4351_v13 = vld [vmem:[%s6550_s2 + $0xa0] ss:$16 sps:$4 sm:$0xff]   ;;  %v4360_v23 = vld [vmem:[%s6550_s2 + $0x48] ss:$16 sps:$4 sm:$0xff]  }
   0x7   :  { %248 = vmatpush1.bf16.msra.mxu1 %v4339_v4  ;;  %v74_v12 = vld [vmem:[%s6550_s2 + $0xc0] sm:$0x33]  ;;  %v4365_v24 = vld [vmem:[%s6550_s2 + $0x6c] ss:$16 sps:$4 sm:$0xff]   ;;  %v4363_v25 = vld [vmem:[%s6550_s2 + $0x68] ss:$16 sps:$4 sm:$0xff]  }
   0x8   :  { %249 = vmatprep.subr.bf16.mxu1 %v4340_v5  ;;  %v3828_v14 = vcombine.high %v74_v12, %v74_v12  ;;  %v3827_v15 = vcombine.low %v74_v12, %v74_v12  ;;  %v49_v18 = vld [vmem:[%s6551_s0] sm:$0xf]  ;;  %v4368_v26 = vld [vmem:[%s6550_s2 + $0x8c] ss:$16 sps:$4 sm:$0xff]   ;;  %v4366_v27 = vld [vmem:[%s6550_s2 + $0x88] ss:$16 sps:$4 sm:$0xff]  }
   0x9   :  { %v4371_v28 = vld [vmem:[%s6550_s2 + $0xac] ss:$16 sps:$4 sm:$0xff]   ;;  %v4369_v30 = vld [vmem:[%s6550_s2 + $0xa8] ss:$16 sps:$4 sm:$0xff]   ;;  %v5121_v39 = vshrl.u32 %v78_v38, 7  ;;  %vm331_vm2 = vcmask 130048  }
   0xa   :  { %v234_v16 = vsel %vm232_vm0, %v3827_v15, 0  ;;  %v75_v29 = vld [vmem:[%s6550_s2 + $0xc8] sm:$0x33]  ;;  %v76_v42 = vld [vmem:[%s6552_s3] sm:$0xf]  ;;  %vm3141_vm3 = vcmask 261120  }
   0xb   :  { %250 = vmatpush1.bf16.msra.mxu1 %v4342_v6  ;;  %v3830_v31 = vcombine.high %v75_v29, %v75_v29  ;;  %v3829_v32 = vcombine.low %v75_v29, %v75_v29  ;;  %v5124_v40 = vsub.s32 0, %v5121_v39  ;;  %v5127_v41 = vsub.s32 1, %v5121_v39  ;;  %v4374_v61 = vld [vmem:[%s6553_s6 + $0x4] ss:$28 sps:$4 sm:$0xff]   ;;  %v4378_v63 = vld [vmem:[%s6553_s6 + $0xc] ss:$28 sps:$4 sm:$0xff]  }
   0xc   :  { %251 = vmatprep.subr.bf16.mxu1 %v4343_v7  ;;  %v5135_v45 = vsub.s32 2, %v5121_v39  ;;  %v5138_v46 = vsub.s32 3, %v5121_v39  ;;  %v4376_v62 = vld [vmem:[%s6553_s6 + $0x8] ss:$28 sps:$4 sm:$0xff]   ;;  %1579 = vmatprep.subr.bf16.mxu0 %v4374_v61  ;;  %v4379_v0 = vld [vmem:[%s6553_s6] ss:$28 sps:$4 sm:$0xff]  }
   0xd   :  { %v240_v33 = vsel %vm232_vm0, %v3829_v32, 0  ;;  %v81_v43 = vrot.slane %v76_v42, %v5124_v40  ;;  %v85_v44 = vrot.slane %v76_v42, %v5127_v41  ;;  %v4380_v2 = vld [vmem:[%s6553_s6 + $0x3c] ss:$28 sps:$4 sm:$0xff]   ;;  %1580 = vmatpush1.bf16.msra.mxu0 %v4379_v0  ;;  %v4384_v4 = vld [vmem:[%s6553_s6 + $0x44] ss:$28 sps:$4 sm:$0xff]   ;;  %vm3776_vm4 = vcmask 523264  }
   0xe   :  { %v89_v49 = vrot.slane %v76_v42, %v5135_v45  ;;  %v93_v50 = vrot.slane %v76_v42, %v5138_v46  ;;  %v4382_v3 = vld [vmem:[%s6553_s6 + $0x40] ss:$28 sps:$4 sm:$0xff]   ;;  %1581 = vmatprep.subr.bf16.mxu0 %v4380_v2  ;;  %v4385_v5 = vld [vmem:[%s6553_s6 + $0x38] ss:$28 sps:$4 sm:$0xff]   ;;  %v4394_v12 = vld [vmem:[%s6553_s6 + $0xb0] ss:$28 sps:$4 sm:$0xff]  }
   0xf   :  { %252 = vmatpush1.bf16.msra.mxu1 %v4345_v8  ;;  %v4386_v6 = vld [vmem:[%s6553_s6 + $0x74] ss:$28 sps:$4 sm:$0xff]   ;;  %v4390_v8 = vld [vmem:[%s6553_s6 + $0x7c] ss:$28 sps:$4 sm:$0xff]   ;;  %v4402_v15 = vld [vmem:[%s6553_s6 + $0xec] ss:$28 sps:$4 sm:$0xff]  }
  0x10   :  { %253 = vmatprep.subr.bf16.mxu1 %v4346_v9  ;;  %v4388_v7 = vld [vmem:[%s6553_s6 + $0x78] ss:$28 sps:$4 sm:$0xff]   ;;  %v4391_v9 = vld [vmem:[%s6553_s6 + $0x70] ss:$28 sps:$4 sm:$0xff]   ;;  %v4427_v32 = vld [vmem:[%s6553_s6 + $0x1c0] ss:$28 sps:$4 sm:$0xff]  }
  0x11   :  { %1582 = vmatpush1.bf16.msra.mxu0 %v4385_v5  ;;  %v4418_v29 = vld [vmem:[%s6553_s6 + $0x190] ss:$28 sps:$4 sm:$0xff]   ;;  %v4445_v2 = vld [vmem:[%s6553_s6 + $0x268] ss:$28 sps:$4 sm:$0xff]   ;;  %vm3797_vm5 = vcmask 57344  }
  0x12   :  { %1583 = vmatprep.subr.bf16.mxu0 %v4386_v6  ;;  %v4439_v61 = vld [vmem:[%s6553_s6 + $0x230] ss:$28 sps:$4 sm:$0xff]   ;;  %v4448_v5 = vld [vmem:[%s6553_s6 + $0x2a8] ss:$28 sps:$4 sm:$0xff]   ;;  %v4451_v6 = vld [vmem:[%s6553_s6 + $0x2a0] ss:$28 sps:$4 sm:$0xff]  }
  0x13   :  { %254 = vmatpush1.bf16.msra.mxu1 %v4348_v10  ;;  %v4392_v10 = vld [vmem:[%s6553_s6 + $0xac] ss:$28 sps:$4 sm:$0xff]  }
  0x14   :  { %255 = vmatprep.subr.bf16.mxu1 %v4349_v11  ;;  %v4396_v11 = vld [vmem:[%s6553_s6 + $0xb4] ss:$28 sps:$4 sm:$0xff]  }
  0x15   :  { %1584 = vmatpush1.bf16.msra.mxu0 %v4391_v9  ;;  %v4442_v0 = vld [vmem:[%s6553_s6 + $0x270] ss:$28 sps:$4 sm:$0xff]   ;;  %v4454_v9 = vld [vmem:[%s6553_s6 + $0x2e0] ss:$28 sps:$4 sm:$0xff]  }
  0x16   :  { %1585 = vmatprep.subr.bf16.mxu0 %v4392_v10  ;;  %v4457_v10 = vld [vmem:[%s6553_s6 + $0x2d8] ss:$28 sps:$4 sm:$0xff]  }
  0x17   :  { %256 = vmatpush1.bf16.msra.mxu1 %v4351_v13  ;;  %v4397_v13 = vld [vmem:[%s6553_s6 + $0xa8] ss:$28 sps:$4 sm:$0xff]  }
  0x18   :  { %3831 = vmatprep.subr.msk.bf16.mxu1 %vm232_vm0, %v3828_v14  ;;  %v4398_v14 = vld [vmem:[%s6553_s6 + $0xe4] ss:$28 sps:$4 sm:$0xff]  }
  0x19   :  { %1586 = vmatpush1.bf16.msra.mxu0 %v4397_v13  ;;  %v4460_v13 = vld [vmem:[%s6553_s6 + $0x318] ss:$28 sps:$4 sm:$0xff]  }
  0x1a   :  { %1587 = vmatprep.subr.bf16.mxu0 %v4398_v14  ;;  %v4463_v14 = vld [vmem:[%s6553_s6 + $0x310] ss:$28 sps:$4 sm:$0xff]  }
  0x1b   :  { %258 = vmatpush1.bf16.msra.mxu1 %v234_v16  ;;  %v4400_v16 = vld [vmem:[%s6553_s6 + $0xe8] ss:$28 sps:$4 sm:$0xff]  }
  0x1c   :  { %286 = vmatprep.subr.bf16.mxu1 %v4356_v17  ;;  %v4403_v17 = vld [vmem:[%s6553_s6 + $0xe0] ss:$28 sps:$4 sm:$0xff]  }
  0x1d   :  { %1588 = vmatpush1.bf16.msra.mxu0 %v4403_v17  ;;  %v4466_v17 = vld [vmem:[%s6553_s6 + $0x350] ss:$28 sps:$4 sm:$0xff]  }
  0x1e   :  { %3832 = vmatmul.mubr.msk.bf16.vlgmr.msra.gmra.mrb[0].mxu1 %vm228_vm1, %v49_v18 }
  0x1f   :  { %287 = vmatpush1.bf16.msra.mxu1 %v4354_v19  ;;  %318 = vmatprep.mubr.bf16.mxu1 %v4955_v1  ;;  %v4408_v19 = vld [vmem:[%s6553_s6 + $0x124] ss:$28 sps:$4 sm:$0xff]  }
  0x20   :  { %288 = vmatprep.subr.bf16.mxu1 %v4359_v20  ;;  %v4406_v20 = vld [vmem:[%s6553_s6 + $0x120] ss:$28 sps:$4 sm:$0xff]  }
  0x23   :  { %289 = vmatpush1.bf16.msra.mxu1 %v4357_v21  ;;  %v4409_v21 = vld [vmem:[%s6553_s6 + $0x118] ss:$28 sps:$4 sm:$0xff]  }
  0x24   :  { %290 = vmatprep.subr.bf16.mxu1 %v4362_v22  ;;  %v4410_v22 = vld [vmem:[%s6553_s6 + $0x154] ss:$28 sps:$4 sm:$0xff]  }
  0x27   :  { %291 = vmatpush1.bf16.msra.mxu1 %v4360_v23  ;;  %v4414_v23 = vld [vmem:[%s6553_s6 + $0x15c] ss:$28 sps:$4 sm:$0xff]  }
  0x28   :  { %292 = vmatprep.subr.bf16.mxu1 %v4365_v24  ;;  %v4412_v24 = vld [vmem:[%s6553_s6 + $0x158] ss:$28 sps:$4 sm:$0xff]  }
  0x2b   :  { %293 = vmatpush1.bf16.msra.mxu1 %v4363_v25  ;;  %v4415_v25 = vld [vmem:[%s6553_s6 + $0x150] ss:$28 sps:$4 sm:$0xff]  }
  0x2c   :  { %294 = vmatprep.subr.bf16.mxu1 %v4368_v26  ;;  %v4416_v26 = vld [vmem:[%s6553_s6 + $0x18c] ss:$28 sps:$4 sm:$0xff]  }
  0x2f   :  { %295 = vmatpush1.bf16.msra.mxu1 %v4366_v27  ;;  %v4420_v27 = vld [vmem:[%s6553_s6 + $0x194] ss:$28 sps:$4 sm:$0xff]  }
  0x30   :  { %296 = vmatprep.subr.bf16.mxu1 %v4371_v28  ;;  %v4421_v28 = vld [vmem:[%s6553_s6 + $0x188] ss:$28 sps:$4 sm:$0xff]  }
  0x33   :  { %297 = vmatpush1.bf16.msra.mxu1 %v4369_v30  ;;  %v4422_v30 = vld [vmem:[%s6553_s6 + $0x1c4] ss:$28 sps:$4 sm:$0xff]  }
  0x34   :  { %3833 = vmatprep.subr.msk.bf16.mxu1 %vm232_vm0, %v3830_v31  ;;  %v4426_v31 = vld [vmem:[%s6553_s6 + $0x1cc] ss:$28 sps:$4 sm:$0xff]  }
  0x37   :  { %299 = vmatpush1.bf16.msra.mxu1 %v240_v33  ;;  %v4424_v33 = vld [vmem:[%s6553_s6 + $0x1c8] ss:$28 sps:$4 sm:$0xff]  }
  0x38   :  { %1661 = vmatprep.subr.bf16.mxu1 %v4378_v63  ;;  %v4444_v63 = vld [vmem:[%s6553_s6 + $0x274] ss:$28 sps:$4 sm:$0xff]  }
  0x3a   :  { %3834 = vmatmul.mubr.msk.bf16.vlgmr.msra.gmra.mrb[4].mxu1 %vm228_vm1, %v49_v18  ;;  %v4404_v18 = vld [vmem:[%s6553_s6 + $0x11c] ss:$28 sps:$4 sm:$0xff]  }
  0x3b   :  { %1662 = vmatpush1.bf16.msra.mxu1 %v4376_v62  ;;  %1589 = vmatprep.subr.bf16.mxu0 %v4404_v18  ;;  %v4440_v62 = vld [vmem:[%s6553_s6 + $0x26c] ss:$28 sps:$4 sm:$0xff]  }
  0x3c   :  { %1663 = vmatprep.subr.bf16.mxu1 %v4384_v4  ;;  %1590 = vmatpush1.bf16.msra.mxu0 %v4409_v21  ;;  %v4450_v4 = vld [vmem:[%s6553_s6 + $0x2ac] ss:$28 sps:$4 sm:$0xff]  }
  0x3d   :  { %1591 = vmatprep.subr.bf16.mxu0 %v4410_v22  ;;  %v4469_v18 = vld [vmem:[%s6553_s6 + $0x348] ss:$28 sps:$4 sm:$0xff]  }
  0x3f   :  { %1664 = vmatpush1.bf16.msra.mxu1 %v4382_v3  ;;  %v4446_v3 = vld [vmem:[%s6553_s6 + $0x2a4] ss:$28 sps:$4 sm:$0xff]  }
  0x40   :  { %1665 = vmatprep.subr.bf16.mxu1 %v4390_v8  ;;  %1592 = vmatpush1.bf16.msra.mxu0 %v4415_v25  ;;  %v4456_v8 = vld [vmem:[%s6553_s6 + $0x2e4] ss:$28 sps:$4 sm:$0xff]  }
  0x41   :  { %1593 = vmatprep.subr.bf16.mxu0 %v4416_v26  ;;  %v5382_v25 = vld [vmem:[%s6555_s5] sm:$0xf] }
  0x43   :  { %1666 = vmatpush1.bf16.msra.mxu1 %v4388_v7  ;;  %v4452_v7 = vld [vmem:[%s6553_s6 + $0x2dc] ss:$28 sps:$4 sm:$0xff]  }
  0x44   :  { %1667 = vmatprep.subr.bf16.mxu1 %v4396_v11  ;;  %1594 = vmatpush1.bf16.msra.mxu0 %v4421_v28  ;;  %v4458_v11 = vld [vmem:[%s6553_s6 + $0x314] ss:$28 sps:$4 sm:$0xff]  }
  0x45   :  { %1595 = vmatprep.subr.bf16.mxu0 %v4422_v30 }
  0x47   :  { %1668 = vmatpush1.bf16.msra.mxu1 %v4394_v12  ;;  %v4462_v12 = vld [vmem:[%s6553_s6 + $0x31c] ss:$28 sps:$4 sm:$0xff]  }
  0x48   :  { %1669 = vmatprep.subr.bf16.mxu1 %v4402_v15  ;;  %1596 = vmatpush1.bf16.msra.mxu0 %v4427_v32  ;;  %v4464_v15 = vld [vmem:[%s6553_s6 + $0x34c] ss:$28 sps:$4 sm:$0xff]   ;;  %v388_v32 = vrot.slane %v5382_v25, %v5124_v40 }
  0x4b   :  { %1670 = vmatpush1.bf16.msra.mxu1 %v4400_v16  ;;  %v4468_v16 = vld [vmem:[%s6553_s6 + $0x354] ss:$28 sps:$4 sm:$0xff]  }
  0x4c   :  { %1671 = vmatprep.subr.bf16.mxu1 %v4408_v19  ;;  %v4472_v19 = vld [vmem:[%s6553_s6 + $0x384] ss:$28 sps:$4 sm:$0xff]  }
  0x4f   :  { %1672 = vmatpush1.bf16.msra.mxu1 %v4406_v20  ;;  %v4475_v20 = vld [vmem:[%s6553_s6 + $0x38c] ss:$28 sps:$4 sm:$0xff]  }
  0x50   :  { %1673 = vmatprep.subr.bf16.mxu1 %v4414_v23 }
  0x53   :  { %1674 = vmatpush1.bf16.msra.mxu1 %v4412_v24  ;;  %v5377_v24 = vld [vmem:[%s6554_s4] sm:$0xf] }
  0x54   :  { %1675 = vmatprep.subr.bf16.mxu1 %v4420_v27  ;;  %v367_v26 = vrot.slane %v5377_v24, %v5127_v41  ;;  %v5389_v27 = vld [vmem:[%s6556_s1] sm:$0xf]  ;;  %v363_v28 = vrot.slane %v5377_v24, %v5124_v40 }
  0x57   :  { %1676 = vmatpush1.bf16.msra.mxu1 %v4418_v29  ;;  %v375_v29 = vrot.slane %v5377_v24, %v5138_v46 }
  0x58   :  { %1677 = vmatprep.subr.bf16.mxu1 %v4426_v31  ;;  %v392_v31 = vrot.slane %v5382_v25, %v5127_v41 }
  0x5b   :  { %1678 = vmatpush1.bf16.msra.mxu1 %v4424_v33 }
  0xf1   :  { %v279_v34 = vpop.f32.mrb[0].mxu1 }
  0xf2   :  { %v281_v35 = vpop.f32.mrb[1].mxu1  ;;  %v5140_v47 = vadd.f32 %v279_v34, %v81_v43  ;;  %v4428_v34 = vld [vmem:[%s6553_s6 + $0x1fc] ss:$28 sps:$4 sm:$0xff]  }
  0xf3   :  { %v283_v36 = vpop.f32.mrb[2].mxu1  ;;  %v5142_v48 = vadd.f32 %v281_v35, %v85_v44  ;;  %v4432_v35 = vld [vmem:[%s6553_s6 + $0x204] ss:$28 sps:$4 sm:$0xff]   ;;  %1597 = vmatprep.subr.bf16.mxu0 %v4428_v34 }
  0xf4   :  { %v284_v37 = vpop.f32.mrb[3].mxu1  ;;  %v4433_v36 = vld [vmem:[%s6553_s6 + $0x1f8] ss:$28 sps:$4 sm:$0xff]   ;;  %1679 = vmatprep.subr.bf16.mxu1 %v4432_v35 }
  0xf5   :  { %v329_v52 = vadd.f32 %v5142_v48, %v5140_v47  ;;  %v4430_v37 = vld [vmem:[%s6553_s6 + $0x200] ss:$28 sps:$4 sm:$0xff]   ;;  %1598 = vmatpush1.bf16.msra.mxu0 %v4433_v36  ;;  %v400_v36 = vrot.slane %v5382_v25, %v5138_v46 }
  0xf6   :  { %1680 = vmatpush1.bf16.msra.mxu1 %v4430_v37  ;;  %v418_v37 = vrot.slane %v5389_v27, %v5127_v41 }
 0x10d   :  { %v320_v51 = vpop.f32.mrb[4].mxu1 }
 0x10e   :  { %v5148_v53 = vadd.f32 %v320_v51, %v89_v49  ;;  %v322_v54 = vpop.f32.mrb[5].mxu1 }
 0x10f   :  { %v5150_v55 = vadd.f32 %v322_v54, %v93_v50  ;;  %v324_v56 = vpop.f32.mrb[6].mxu1 }
 0x110   :  { %v325_v57 = vpop.f32.mrb[7].mxu1  ;;  %v330_v58 = vadd.f32 %v329_v52, %v5148_v53 }
 0x111   :  { %v332_v59 = vsel %vm331_vm2, %v5150_v55, 0.0 }
 0x112   :  { %v333_v60 = vadd.f32 %v332_v59, %v330_v58  ;;  %v4438_v59 = vld [vmem:[%s6553_s6 + $0x23c] ss:$28 sps:$4 sm:$0xff]  }
 0x113   :  { %1681 = vmatprep.subr.bf16.mxu1 %v4438_v59 }
 0x114   :  { %334 = vadd.xlane.f32.xlu0 %v333_v60  ;;  %v4436_v60 = vld [vmem:[%s6553_s6 + $0x238] ss:$28 sps:$4 sm:$0xff]  }
 0x115   :  { %1682 = vmatpush1.bf16.msra.mxu1 %v4436_v60  ;;  %v4478_v60 = vld [vmem:[%s6553_s6 + $0x3bc] ss:$28 sps:$4 sm:$0xff]  }
 0x116   :  { %1683 = vmatprep.subr.bf16.mxu1 %v4444_v63  ;;  %v4476_v63 = vld [vmem:[%s6553_s6 + $0x3b8] ss:$28 sps:$4 sm:$0xff]  }
 0x119   :  { %1684 = vmatpush1.bf16.msra.mxu1 %v4442_v0  ;;  %v4479_v0 = vld [vmem:[%s6553_s6 + $0x3c0] ss:$28 sps:$4 sm:$0xff]  }
 0x11a   :  { %1685 = vmatprep.subr.bf16.mxu1 %v4450_v4  ;;  %v4482_v4 = vld [vmem:[%s6553_s6 + $0x3f0] ss:$28 sps:$4 sm:$0xff]  }
 0x11d   :  { %1686 = vmatpush1.bf16.msra.mxu1 %v4448_v5  ;;  %v4485_v5 = vld [vmem:[%s6553_s6 + $0x3f8] ss:$28 sps:$4 sm:$0xff]  }
 0x11e   :  { %1687 = vmatprep.subr.bf16.mxu1 %v4456_v8  ;;  %v4488_v8 = vld [vmem:[%s6553_s6 + $0x428] ss:$28 sps:$4 sm:$0xff]  }
 0x121   :  { %1688 = vmatpush1.bf16.msra.mxu1 %v4454_v9  ;;  %v4491_v9 = vld [vmem:[%s6553_s6 + $0x430] ss:$28 sps:$4 sm:$0xff]  }
 0x122   :  { %1689 = vmatprep.subr.bf16.mxu1 %v4462_v12  ;;  %v4494_v12 = vld [vmem:[%s6553_s6 + $0x460] ss:$28 sps:$4 sm:$0xff]  }
 0x125   :  { %1690 = vmatpush1.bf16.msra.mxu1 %v4460_v13  ;;  %v4497_v13 = vld [vmem:[%s6553_s6 + $0x468] ss:$28 sps:$4 sm:$0xff]  }
 0x126   :  { %1691 = vmatprep.subr.bf16.mxu1 %v4468_v16  ;;  %v4500_v16 = vld [vmem:[%s6553_s6 + $0x498] ss:$28 sps:$4 sm:$0xff]  }
 0x129   :  { %1692 = vmatpush1.bf16.msra.mxu1 %v4466_v17  ;;  %v4503_v17 = vld [vmem:[%s6553_s6 + $0x4a0] ss:$28 sps:$4 sm:$0xff]  }
 0x12a   :  { %1702 = vmatprep.subr.bf16.mxu1 %v4475_v20 }
 0x1a1   :  { %v335_v42 = vpop.xlane.xlu0 %334 }
 0x1a2   :  { %v337_v43 = vmul.f32 0.0025, %v335_v42 }
 0x1a4   :  { %v5276_v44 = vsub.f32 %v5140_v47, %v337_v43  ;;  %v5279_v49 = vsub.f32 %v5142_v48, %v337_v43  ;;  %v5282_v50 = vsub.f32 %v5148_v53, %v337_v43  ;;  %v5285_v51 = vsub.f32 %v5150_v55, %v337_v43  ;;  %v4434_v55 = vld [vmem:[%s6553_s6 + $0x234] ss:$28 sps:$4 sm:$0xff]  }
 0x1a5   :  { %1599 = vmatprep.subr.bf16.mxu0 %v4434_v55  ;;  %v4473_v55 = vld [vmem:[%s6553_s6 + $0x388] ss:$28 sps:$4 sm:$0xff]  }
 0x1a6   :  { %v342_v52 = vmul.f32 %v5276_v44, %v5276_v44  ;;  %v343_v54 = vmul.f32 %v5279_v49, %v5279_v49  ;;  %v345_v56 = vmul.f32 %v5285_v51, %v5285_v51  ;;  %v344_v47 = vmul.f32 %v5282_v50, %v5282_v50  ;;  %1600 = vmatpush1.bf16.msra.mxu0 %v4439_v61  ;;  %v4481_v61 = vld [vmem:[%s6553_s6 + $0x3c4] ss:$28 sps:$4 sm:$0xff]  }
 0x1a7   :  { %1601 = vmatprep.subr.bf16.mxu0 %v4440_v62 }
 0x1a8   :  { %v346_v48 = vadd.f32 %v343_v54, %v342_v52  ;;  %v348_v53 = vsel %vm331_vm2, %v345_v56, 0.0  ;;  %v414_v52 = vrot.slane %v5389_v27, %v5124_v40 }
 0x1aa   :  { %v347_v57 = vadd.f32 %v346_v48, %v344_v47  ;;  %1602 = vmatpush1.bf16.msra.mxu0 %v4445_v2  ;;  %v4484_v2 = vld [vmem:[%s6553_s6 + $0x3f4] ss:$28 sps:$4 sm:$0xff]  }
 0x1ab   :  { %1603 = vmatprep.subr.bf16.mxu0 %v4446_v3  ;;  %v4487_v3 = vld [vmem:[%s6553_s6 + $0x3fc] ss:$28 sps:$4 sm:$0xff]  }
 0x1ac   :  { %v349_v58 = vadd.f32 %v348_v53, %v347_v57 }
 0x1ae   :  { %350 = vadd.xlane.f32.xlu0 %v349_v58  ;;  %1604 = vmatpush1.bf16.msra.mxu0 %v4451_v6  ;;  %v4470_v58 = vld [vmem:[%s6553_s6 + $0x380] ss:$28 sps:$4 sm:$0xff]   ;;  %v4490_v6 = vld [vmem:[%s6553_s6 + $0x42c] ss:$28 sps:$4 sm:$0xff]  }
 0x1af   :  { %1605 = vmatprep.subr.bf16.mxu0 %v4452_v7  ;;  %v4493_v7 = vld [vmem:[%s6553_s6 + $0x434] ss:$28 sps:$4 sm:$0xff]  }
 0x1b2   :  { %1606 = vmatpush1.bf16.msra.mxu0 %v4457_v10  ;;  %v4496_v10 = vld [vmem:[%s6553_s6 + $0x464] ss:$28 sps:$4 sm:$0xff]  }
 0x1b3   :  { %1607 = vmatprep.subr.bf16.mxu0 %v4458_v11  ;;  %v4499_v11 = vld [vmem:[%s6553_s6 + $0x46c] ss:$28 sps:$4 sm:$0xff]  }
 0x1b6   :  { %1608 = vmatpush1.bf16.msra.mxu0 %v4463_v14  ;;  %v4502_v14 = vld [vmem:[%s6553_s6 + $0x49c] ss:$28 sps:$4 sm:$0xff]  }
 0x1b7   :  { %1609 = vmatprep.subr.bf16.mxu0 %v4464_v15  ;;  %v4505_v15 = vld [vmem:[%s6553_s6 + $0x4a4] ss:$28 sps:$4 sm:$0xff]  }
 0x1ba   :  { %1610 = vmatpush1.bf16.msra.mxu0 %v4469_v18  ;;  %v4508_v18 = vld [vmem:[%s6553_s6 + $0x4d4] ss:$28 sps:$4 sm:$0xff]  }
 0x1bb   :  { %1620 = vmatprep.subr.bf16.mxu0 %v4472_v19  ;;  %v4511_v19 = vld [vmem:[%s6553_s6 + $0x4dc] ss:$28 sps:$4 sm:$0xff]  }
 0x23b   :  { %v351_v21 = vpop.xlane.xlu0 %350 }
 0x23c   :  { %v352_v22 = vmul.f32 0.0025, %v351_v21  ;;  %v371_v21 = vrot.slane %v5377_v24, %v5135_v45 }
 0x23e   :  { %v353_v23 = vadd.f32 1e-05, %v352_v22  ;;  %v4506_v22 = vld [vmem:[%s6553_s6 + $0x4d0] ss:$28 sps:$4 sm:$0xff]  }
 0x240   :  { %4949 = vrsqrt.f32 %v353_v23  ;;  %v4509_v23 = vld [vmem:[%s6553_s6 + $0x4d8] ss:$28 sps:$4 sm:$0xff]  }
 0x24a   :  { %v5395_v30 = vpop.eup %4949 }
 0x24b   :  { %v356_v33 = vmul.f32 %v5395_v30, %v5279_v49  ;;  %v355_v34 = vmul.f32 %v5395_v30, %v5276_v44  ;;  %v358_v35 = vmul.f32 %v5395_v30, %v5285_v51  ;;  %v426_v49 = vrot.slane %v5389_v27, %v5138_v46 }
 0x24c   :  { %v357_v20 = vmul.f32 %v5395_v30, %v5282_v50  ;;  %v4517_v50 = vld [vmem:[%s6553_s6 + $0x514] ss:$28 sps:$4 sm:$0xff]  }
 0x24d   :  { %v381_v42 = vmul.f32 %v367_v26, %v356_v33  ;;  %v380_v43 = vmul.f32 %v363_v28, %v355_v34  ;;  %v383_v54 = vmul.f32 %v375_v29, %v358_v35  ;;  %v4514_v26 = vld [vmem:[%s6553_s6 + $0x50c] ss:$28 sps:$4 sm:$0xff]   ;;  %v396_v28 = vrot.slane %v5382_v25, %v5135_v45  ;;  %v4518_v34 = vld [vmem:[%s6553_s6 + $0x540] ss:$28 sps:$4 sm:$0xff]  }
 0x24e   :  { %v382_v24 = vmul.f32 %v371_v21, %v357_v20  ;;  %v4512_v29 = vld [vmem:[%s6553_s6 + $0x508] ss:$28 sps:$4 sm:$0xff]   ;;  %v4515_v30 = vld [vmem:[%s6553_s6 + $0x510] ss:$28 sps:$4 sm:$0xff]   ;;  %v422_v33 = vrot.slane %v5389_v27, %v5135_v45 }
 0x24f   :  { %v406_v56 = vadd.f32 %v392_v31, %v381_v42  ;;  %v405_v44 = vadd.f32 %v388_v32, %v380_v43  ;;  %v408_v47 = vadd.f32 %v400_v36, %v383_v54  ;;  %v4520_v31 = vld [vmem:[%s6553_s6 + $0x544] ss:$28 sps:$4 sm:$0xff]   ;;  %v4523_v25 = vld [vmem:[%s6553_s6 + $0x54c] ss:$28 sps:$4 sm:$0xff]   ;;  %v4526_v36 = vld [vmem:[%s6553_s6 + $0x14] ss:$28 sps:$4 sm:$0xff]  }
 0x250   :  { %v407_v32 = vadd.f32 %v396_v28, %v382_v24  ;;  %v4521_v35 = vld [vmem:[%s6553_s6 + $0x548] ss:$28 sps:$4 sm:$0xff]   ;;  %v4524_v42 = vld [vmem:[%s6553_s6 + $0x10] ss:$28 sps:$4 sm:$0xff]   ;;  %v4528_v43 = vld [vmem:[%s6553_s6 + $0x18] ss:$28 sps:$4 sm:$0xff]  }
 0x251   :  { %v432_v48 = vadd.f32 %v418_v37, %v406_v56  ;;  %v431_v51 = vadd.f32 %v414_v52, %v405_v44  ;;  %v434_v57 = vadd.f32 %v426_v49, %v408_v47  ;;  %v4527_v37 = vld [vmem:[%s6553_s6 + $0x1d8] ss:$28 sps:$4 sm:$0xff]   ;;  %v4531_v52 = vld [vmem:[%s6553_s6 + $0x4c] ss:$28 sps:$4 sm:$0xff]   ;;  %v4536_v47 = vld [vmem:[%s6553_s6 + $0x84] ss:$28 sps:$4 sm:$0xff]  }
 0x252   :  { %v433_v27 = vadd.f32 %v422_v33, %v407_v32  ;;  %v4532_v54 = vld [vmem:[%s6553_s6 + $0x210] ss:$28 sps:$4 sm:$0xff]   ;;  %v4529_v56 = vld [vmem:[%s6553_s6 + $0x48] ss:$28 sps:$4 sm:$0xff]   ;;  %v4579_v24 = vld [vmem:[%s6553_s6 + $0x440] ss:$28 sps:$4 sm:$0xff]  }
 0x253   :  { %v5415_v53 = vpack.c.bf16 %v432_v48, %v432_v48  ;;  %v5423_v59 = vpack.c.bf16 %v431_v51, %v431_v51  ;;  %v5435_v62 = vpack.c.bf16 %v434_v57, %v434_v57  ;;  %v4533_v44 = vld [vmem:[%s6553_s6 + $0x50] ss:$28 sps:$4 sm:$0xff]   ;;  %v4537_v48 = vld [vmem:[%s6553_s6 + $0x248] ss:$28 sps:$4 sm:$0xff]   ;;  %v4534_v51 = vld [vmem:[%s6553_s6 + $0x80] ss:$28 sps:$4 sm:$0xff]  }
 0x254   :  { %v5557_v49 = vpack.c.bf16 %v433_v27, %v433_v27  ;;  %v4538_v57 = vld [vmem:[%s6553_s6 + $0x88] ss:$28 sps:$4 sm:$0xff]   ;;  %v4571_v20 = vld [vmem:[%s6553_s6 + $0x3d0] ss:$28 sps:$4 sm:$0xff]   ;;  %v4595_v27 = vld [vmem:[%s6553_s6 + $0x520] ss:$28 sps:$4 sm:$0xff]  }
 0x255   :  { %1611 = vmatprep.mubr.bf16.mxu0 %v5415_v53  ;;  %1693 = vmatprep.mubr.bf16.mxu1 %v5415_v53  ;;  %v4574_v21 = vld [vmem:[%s6553_s6 + $0x244] ss:$28 sps:$4 sm:$0xff]   ;;  %v4582_v28 = vld [vmem:[%s6553_s6 + $0x2b4] ss:$28 sps:$4 sm:$0xff]  }
 0x256   :  { %1612 = vmatmul.mubr.bf16.vlgmr.msra.gmra.mrb[0].mxu0 %v5423_v59  ;;  %1694 = vmatmul.mubr.bf16.vlgmr.msra.gmra.mrb[8].mxu1 %v5423_v59  ;;  %v4587_v32 = vld [vmem:[%s6553_s6 + $0x4b0] ss:$28 sps:$4 sm:$0xff]   ;;  %v4590_v33 = vld [vmem:[%s6553_s6 + $0x324] ss:$28 sps:$4 sm:$0xff]  }
 0x257   :  { %1621 = vmatpush1.bf16.msra.mxu0 %v4470_v58  ;;  %1703 = vmatpush1.bf16.msra.mxu1 %v4473_v55  ;;  %v4541_v58 = vld [vmem:[%s6553_s6 + $0xbc] ss:$28 sps:$4 sm:$0xff]  }
 0x258   :  { %4010 = vmatprep.mubr.msk.bf16.mxu0 %vm331_vm2, %v5435_v62  ;;  %4011 = vmatprep.mubr.msk.bf16.mxu1 %vm331_vm2, %v5435_v62  ;;  %v4542_v55 = vld [vmem:[%s6553_s6 + $0x280] ss:$28 sps:$4 sm:$0xff]  }
 0x259   :  { %1622 = vmatprep.subr.bf16.mxu0 %v4478_v60  ;;  %1704 = vmatprep.subr.bf16.mxu1 %v4481_v61  ;;  %v4543_v60 = vld [vmem:[%s6553_s6 + $0xc0] ss:$28 sps:$4 sm:$0xff]   ;;  %v4546_v61 = vld [vmem:[%s6553_s6 + $0xf4] ss:$28 sps:$4 sm:$0xff]  }
 0x25b   :  { %1623 = vmatpush1.bf16.msra.mxu0 %v4476_v63  ;;  %1705 = vmatpush1.bf16.msra.mxu1 %v4479_v0  ;;  %v4547_v63 = vld [vmem:[%s6553_s6 + $0x2b8] ss:$28 sps:$4 sm:$0xff]   ;;  %v4544_v0 = vld [vmem:[%s6553_s6 + $0xf0] ss:$28 sps:$4 sm:$0xff]  }
 0x25c   :  { %1624 = vmatprep.subr.bf16.mxu0 %v4484_v2  ;;  %1706 = vmatprep.subr.bf16.mxu1 %v4487_v3  ;;  %v4548_v2 = vld [vmem:[%s6553_s6 + $0xf8] ss:$28 sps:$4 sm:$0xff]   ;;  %v4551_v3 = vld [vmem:[%s6553_s6 + $0x12c] ss:$28 sps:$4 sm:$0xff]  }
 0x25f   :  { %1625 = vmatpush1.bf16.msra.mxu0 %v4482_v4  ;;  %1707 = vmatpush1.bf16.msra.mxu1 %v4485_v5  ;;  %v4552_v4 = vld [vmem:[%s6553_s6 + $0x2f0] ss:$28 sps:$4 sm:$0xff]   ;;  %v4549_v5 = vld [vmem:[%s6553_s6 + $0x128] ss:$28 sps:$4 sm:$0xff]  }
 0x260   :  { %1626 = vmatprep.subr.bf16.mxu0 %v4490_v6  ;;  %1708 = vmatprep.subr.bf16.mxu1 %v4493_v7  ;;  %v4553_v6 = vld [vmem:[%s6553_s6 + $0x130] ss:$28 sps:$4 sm:$0xff]   ;;  %v4556_v7 = vld [vmem:[%s6553_s6 + $0x164] ss:$28 sps:$4 sm:$0xff]  }
 0x263   :  { %1627 = vmatpush1.bf16.msra.mxu0 %v4488_v8  ;;  %1709 = vmatpush1.bf16.msra.mxu1 %v4491_v9  ;;  %v4557_v8 = vld [vmem:[%s6553_s6 + $0x328] ss:$28 sps:$4 sm:$0xff]   ;;  %v4554_v9 = vld [vmem:[%s6553_s6 + $0x160] ss:$28 sps:$4 sm:$0xff]  }
 0x264   :  { %1628 = vmatprep.subr.bf16.mxu0 %v4496_v10  ;;  %1710 = vmatprep.subr.bf16.mxu1 %v4499_v11  ;;  %v4558_v10 = vld [vmem:[%s6553_s6 + $0x168] ss:$28 sps:$4 sm:$0xff]   ;;  %v4561_v11 = vld [vmem:[%s6553_s6 + $0x19c] ss:$28 sps:$4 sm:$0xff]  }
 0x267   :  { %1629 = vmatpush1.bf16.msra.mxu0 %v4494_v12  ;;  %1711 = vmatpush1.bf16.msra.mxu1 %v4497_v13  ;;  %v4562_v12 = vld [vmem:[%s6553_s6 + $0x360] ss:$28 sps:$4 sm:$0xff]   ;;  %v4559_v13 = vld [vmem:[%s6553_s6 + $0x198] ss:$28 sps:$4 sm:$0xff]  }
 0x268   :  { %1630 = vmatprep.subr.bf16.mxu0 %v4502_v14  ;;  %1712 = vmatprep.subr.bf16.mxu1 %v4505_v15  ;;  %v4563_v14 = vld [vmem:[%s6553_s6 + $0x1a0] ss:$28 sps:$4 sm:$0xff]   ;;  %v4566_v15 = vld [vmem:[%s6553_s6 + $0x1d4] ss:$28 sps:$4 sm:$0xff]  }
 0x26b   :  { %1631 = vmatpush1.bf16.msra.mxu0 %v4500_v16  ;;  %1713 = vmatpush1.bf16.msra.mxu1 %v4503_v17  ;;  %v4564_v16 = vld [vmem:[%s6553_s6 + $0x1d0] ss:$28 sps:$4 sm:$0xff]   ;;  %v4567_v17 = vld [vmem:[%s6553_s6 + $0x398] ss:$28 sps:$4 sm:$0xff]  }
 0x26c   :  { %1632 = vmatprep.subr.bf16.mxu0 %v4508_v18  ;;  %1714 = vmatprep.subr.bf16.mxu1 %v4511_v19  ;;  %v4570_v18 = vld [vmem:[%s6553_s6 + $0x20c] ss:$28 sps:$4 sm:$0xff]  }
 0x26d   :  { %v4568_v19 = vld [vmem:[%s6553_s6 + $0x208] ss:$28 sps:$4 sm:$0xff]  }
 0x26f   :  { %1633 = vmatpush1.bf16.msra.mxu0 %v4506_v22  ;;  %1715 = vmatpush1.bf16.msra.mxu1 %v4509_v23  ;;  %v4572_v22 = vld [vmem:[%s6553_s6 + $0x240] ss:$28 sps:$4 sm:$0xff]   ;;  %v4575_v23 = vld [vmem:[%s6553_s6 + $0x408] ss:$28 sps:$4 sm:$0xff]  }
 0x270   :  { %1634 = vmatprep.subr.bf16.mxu0 %v4514_v26  ;;  %1716 = vmatprep.subr.bf16.mxu1 %v4517_v50  ;;  %v4578_v26 = vld [vmem:[%s6553_s6 + $0x27c] ss:$28 sps:$4 sm:$0xff]  }
 0x271   :  { %v4576_v50 = vld [vmem:[%s6553_s6 + $0x278] ss:$28 sps:$4 sm:$0xff]  }
 0x273   :  { %1635 = vmatpush1.bf16.msra.mxu0 %v4512_v29  ;;  %1717 = vmatpush1.bf16.msra.mxu1 %v4515_v30  ;;  %v4580_v29 = vld [vmem:[%s6553_s6 + $0x2b0] ss:$28 sps:$4 sm:$0xff]   ;;  %v4583_v30 = vld [vmem:[%s6553_s6 + $0x478] ss:$28 sps:$4 sm:$0xff]  }
 0x274   :  { %1636 = vmatprep.subr.bf16.mxu0 %v4520_v31  ;;  %1718 = vmatprep.subr.bf16.mxu1 %v4523_v25  ;;  %v4586_v31 = vld [vmem:[%s6553_s6 + $0x2ec] ss:$28 sps:$4 sm:$0xff]  }
 0x275   :  { %v4584_v25 = vld [vmem:[%s6553_s6 + $0x2e8] ss:$28 sps:$4 sm:$0xff]  }
 0x277   :  { %1637 = vmatpush1.bf16.msra.mxu0 %v4518_v34  ;;  %1719 = vmatpush1.bf16.msra.mxu1 %v4521_v35  ;;  %v4588_v34 = vld [vmem:[%s6553_s6 + $0x320] ss:$28 sps:$4 sm:$0xff]   ;;  %v4591_v35 = vld [vmem:[%s6553_s6 + $0x4e8] ss:$28 sps:$4 sm:$0xff]  }
 0x278   :  { %1743 = vmatprep.subr.bf16.mxu0 %v4526_v36  ;;  %4245 = vmatprep.subr.bf16.mxu1 %v4527_v37  ;;  %v4594_v36 = vld [vmem:[%s6553_s6 + $0x35c] ss:$28 sps:$4 sm:$0xff]  }
 0x279   :  { %v4592_v37 = vld [vmem:[%s6553_s6 + $0x358] ss:$28 sps:$4 sm:$0xff]  }
 0x27a   :  { %1653 = vmatmul.mubr.bf16.vlgmr.msra.gmra.mrb[0].mxu0 %v5557_v49  ;;  %1735 = vmatmul.mubr.bf16.vlgmr.msra.gmra.mrb[8].mxu1 %v5557_v49 }
 0x27b   :  { %1744 = vmatpush1.bf16.msra.mxu0 %v4524_v42  ;;  %1775 = vmatprep.mubr.bf16.mxu0 %v5415_v53  ;;  %v4598_v42 = vld [vmem:[%s6553_s6 + $0x394] ss:$28 sps:$4 sm:$0xff]  }
 0x27c   :  { %4246 = vmatpush3.bf16.msra.mxu1 %v4528_v43  ;;  %1857 = vmatprep.mubr.bf16.mxu1 %v5415_v53  ;;  %v4539_v53 = vld [vmem:[%s6553_s6 + $0xb8] ss:$28 sps:$4 sm:$0xff]   ;;  %v4596_v43 = vld [vmem:[%s6553_s6 + $0x390] ss:$28 sps:$4 sm:$0xff]  }
 0x27d   :  { %1745 = vmatprep.subr.bf16.mxu0 %v4531_v52  ;;  %4247 = vmatprep.subr.bf16.mxu1 %v4532_v54  ;;  %v4599_v52 = vld [vmem:[%s6553_s6 + $0x558] ss:$28 sps:$4 sm:$0xff]   ;;  %v4602_v54 = vld [vmem:[%s6553_s6 + $0x3cc] ss:$28 sps:$4 sm:$0xff]  }
 0x27f   :  { %1746 = vmatpush1.bf16.msra.mxu0 %v4529_v56  ;;  %v4626_v56 = vld [vmem:[%s6557_s8 + $0x4] ss:$16 sps:$4 sm:$0xff]  }
 0x280   :  { %4248 = vmatpush3.bf16.msra.mxu1 %v4533_v44  ;;  %1747 = vmatprep.subr.bf16.mxu0 %v4536_v47  ;;  %v4600_v44 = vld [vmem:[%s6553_s6 + $0x3c8] ss:$28 sps:$4 sm:$0xff]  }
 0x281   :  { %4249 = vmatprep.subr.bf16.mxu1 %v4537_v48  ;;  %v4605_v47 = vld [vmem:[%s6553_s6 + $0x404] ss:$28 sps:$4 sm:$0xff]  }
 0x282   :  { %v4624_v48 = vld [vmem:[%s6557_s8] ss:$16 sps:$4 sm:$0xff]  }
 0x283   :  { %1748 = vmatpush1.bf16.msra.mxu0 %v4534_v51  ;;  %v4608_v51 = vld [vmem:[%s6553_s6 + $0x43c] ss:$28 sps:$4 sm:$0xff]  }
 0x284   :  { %4250 = vmatpush3.bf16.msra.mxu1 %v4538_v57  ;;  %1749 = vmatprep.subr.bf16.mxu0 %v4541_v58  ;;  %v4627_v57 = vld [vmem:[%s6557_s8 + $0x20] ss:$16 sps:$4 sm:$0xff]   ;;  %v4632_v58 = vld [vmem:[%s6557_s8 + $0x44] ss:$16 sps:$4 sm:$0xff]  }
 0x285   :  { %4251 = vmatprep.subr.bf16.mxu1 %v4542_v55  ;;  %v4606_v55 = vld [vmem:[%s6553_s6 + $0x438] ss:$28 sps:$4 sm:$0xff]  }
 0x287   :  { %1750 = vmatpush1.bf16.msra.mxu0 %v4539_v53  ;;  %v4611_v53 = vld [vmem:[%s6553_s6 + $0x474] ss:$28 sps:$4 sm:$0xff]  }
 0x288   :  { %4252 = vmatpush3.bf16.msra.mxu1 %v4543_v60  ;;  %1751 = vmatprep.subr.bf16.mxu0 %v4546_v61  ;;  %v4630_v60 = vld [vmem:[%s6557_s8 + $0x40] ss:$16 sps:$4 sm:$0xff]   ;;  %v4635_v61 = vld [vmem:[%s6557_s8 + $0x64] ss:$16 sps:$4 sm:$0xff]  }
 0x289   :  { %4253 = vmatprep.subr.bf16.mxu1 %v4547_v63  ;;  %v4609_v63 = vld [vmem:[%s6553_s6 + $0x470] ss:$28 sps:$4 sm:$0xff]  }
 0x28b   :  { %1752 = vmatpush1.bf16.msra.mxu0 %v4544_v0  ;;  %v4614_v0 = vld [vmem:[%s6553_s6 + $0x4ac] ss:$28 sps:$4 sm:$0xff]  }
 0x28c   :  { %4254 = vmatpush3.bf16.msra.mxu1 %v4548_v2  ;;  %1753 = vmatprep.subr.bf16.mxu0 %v4551_v3  ;;  %v4633_v2 = vld [vmem:[%s6557_s8 + $0x60] ss:$16 sps:$4 sm:$0xff]   ;;  %v4638_v3 = vld [vmem:[%s6557_s8 + $0x84] ss:$16 sps:$4 sm:$0xff]  }
 0x28d   :  { %4255 = vmatprep.subr.bf16.mxu1 %v4552_v4  ;;  %v4612_v4 = vld [vmem:[%s6553_s6 + $0x4a8] ss:$28 sps:$4 sm:$0xff]  }
 0x28f   :  { %1754 = vmatpush1.bf16.msra.mxu0 %v4549_v5  ;;  %v4617_v5 = vld [vmem:[%s6553_s6 + $0x4e4] ss:$28 sps:$4 sm:$0xff]  }
 0x290   :  { %4256 = vmatpush3.bf16.msra.mxu1 %v4553_v6  ;;  %1755 = vmatprep.subr.bf16.mxu0 %v4556_v7  ;;  %v4636_v6 = vld [vmem:[%s6557_s8 + $0x80] ss:$16 sps:$4 sm:$0xff]   ;;  %v4641_v7 = vld [vmem:[%s6557_s8 + $0xa4] ss:$16 sps:$4 sm:$0xff]  }
 0x291   :  { %4257 = vmatprep.subr.bf16.mxu1 %v4557_v8  ;;  %v4615_v8 = vld [vmem:[%s6553_s6 + $0x4e0] ss:$28 sps:$4 sm:$0xff]  }
 0x293   :  { %1756 = vmatpush1.bf16.msra.mxu0 %v4554_v9  ;;  %v4620_v9 = vld [vmem:[%s6553_s6 + $0x51c] ss:$28 sps:$4 sm:$0xff]  }
 0x294   :  { %4258 = vmatpush3.bf16.msra.mxu1 %v4558_v10  ;;  %1757 = vmatprep.subr.bf16.mxu0 %v4561_v11  ;;  %v4639_v10 = vld [vmem:[%s6557_s8 + $0xa0] ss:$16 sps:$4 sm:$0xff]   ;;  %v4644_v11 = vld [vmem:[%s6557_s8 + $0xc4] ss:$16 sps:$4 sm:$0xff]  }
 0x295   :  { %4259 = vmatprep.subr.bf16.mxu1 %v4562_v12  ;;  %v4618_v12 = vld [vmem:[%s6553_s6 + $0x518] ss:$28 sps:$4 sm:$0xff]  }
 0x297   :  { %1758 = vmatpush1.bf16.msra.mxu0 %v4559_v13  ;;  %v4623_v13 = vld [vmem:[%s6553_s6 + $0x554] ss:$28 sps:$4 sm:$0xff]  }
 0x298   :  { %4260 = vmatpush3.bf16.msra.mxu1 %v4563_v14  ;;  %1759 = vmatprep.subr.bf16.mxu0 %v4566_v15  ;;  %v4642_v14 = vld [vmem:[%s6557_s8 + $0xc0] ss:$16 sps:$4 sm:$0xff]   ;;  %v4647_v15 = vld [vmem:[%s6557_s8 + $0xe4] ss:$16 sps:$4 sm:$0xff]  }
 0x299   :  { %1865 = vmatprep.subr.bf16.mxu1 %v4955_v1 }
 0x29b   :  { %1858 = vmatmul.mubr.bf16.vlgmr.msra.gmra.mrb[12].mxu1 %v5423_v59  ;;  %1760 = vmatpush1.bf16.msra.mxu0 %v4564_v16  ;;  %v4621_v16 = vld [vmem:[%s6553_s6 + $0x550] ss:$28 sps:$4 sm:$0xff]  }
 0x29c   :  { %1866 = vmatpush1.bf16.msra.mxu1 %v4567_v17  ;;  %4013 = vmatprep.mubr.msk.bf16.mxu1 %vm331_vm2, %v5435_v62  ;;  %v4645_v17 = vld [vmem:[%s6557_s8 + $0xe0] ss:$16 sps:$4 sm:$0xff]  }
 0x29d   :  { %1761 = vmatprep.subr.bf16.mxu0 %v4570_v18  ;;  %1867 = vmatprep.subr.bf16.mxu1 %v4955_v1  ;;  %v4650_v18 = vld [vmem:[%s6557_s8 + $0x104] ss:$16 sps:$4 sm:$0xff]  }
 0x29f   :  { %1762 = vmatpush1.bf16.msra.mxu0 %v4568_v19  ;;  %v4648_v19 = vld [vmem:[%s6557_s8 + $0x100] ss:$16 sps:$4 sm:$0xff]  }
 0x2a0   :  { %1868 = vmatpush1.bf16.msra.mxu1 %v4571_v20  ;;  %1763 = vmatprep.subr.bf16.mxu0 %v4574_v21  ;;  %v4653_v20 = vld [vmem:[%s6557_s8 + $0x124] ss:$16 sps:$4 sm:$0xff]   ;;  %v4651_v21 = vld [vmem:[%s6557_s8 + $0x120] ss:$16 sps:$4 sm:$0xff]  }
 0x2a1   :  { %1869 = vmatprep.subr.bf16.mxu1 %v4955_v1 }
 0x2a3   :  { %1764 = vmatpush1.bf16.msra.mxu0 %v4572_v22  ;;  %v4656_v22 = vld [vmem:[%s6557_s8 + $0x144] ss:$16 sps:$4 sm:$0xff]  }
 0x2a4   :  { %1870 = vmatpush1.bf16.msra.mxu1 %v4575_v23  ;;  %1765 = vmatprep.subr.bf16.mxu0 %v4578_v26  ;;  %v4654_v23 = vld [vmem:[%s6557_s8 + $0x140] ss:$16 sps:$4 sm:$0xff]  }
 0x2a5   :  { %1871 = vmatprep.subr.bf16.mxu1 %v4955_v1  ;;  %v4657_v26 = vld [vmem:[%s6557_s8 + $0x160] ss:$16 sps:$4 sm:$0xff]  }
 0x2a7   :  { %1766 = vmatpush1.bf16.msra.mxu0 %v4576_v50  ;;  %v4662_v50 = vld [vmem:[%s6557_s8 + $0x184] ss:$16 sps:$4 sm:$0xff]  }
 0x2a8   :  { %1872 = vmatpush1.bf16.msra.mxu1 %v4579_v24  ;;  %1767 = vmatprep.subr.bf16.mxu0 %v4582_v28  ;;  %v4660_v24 = vld [vmem:[%s6557_s8 + $0x180] ss:$16 sps:$4 sm:$0xff]   ;;  %v4665_v28 = vld [vmem:[%s6557_s8 + $0x1a4] ss:$16 sps:$4 sm:$0xff]  }
 0x2a9   :  { %1873 = vmatprep.subr.bf16.mxu1 %v4955_v1 }
 0x2ab   :  { %1768 = vmatpush1.bf16.msra.mxu0 %v4580_v29  ;;  %v4663_v29 = vld [vmem:[%s6557_s8 + $0x1a0] ss:$16 sps:$4 sm:$0xff]  }
 0x2ac   :  { %1874 = vmatpush1.bf16.msra.mxu1 %v4583_v30  ;;  %1769 = vmatprep.subr.bf16.mxu0 %v4586_v31  ;;  %v4668_v30 = vld [vmem:[%s6557_s8 + $0x1c4] ss:$16 sps:$4 sm:$0xff]   ;;  %v4666_v31 = vld [vmem:[%s6557_s8 + $0x1c0] ss:$16 sps:$4 sm:$0xff]  }
 0x2ad   :  { %1875 = vmatprep.subr.bf16.mxu1 %v4955_v1 }
 0x2af   :  { %1770 = vmatpush1.bf16.msra.mxu0 %v4584_v25  ;;  %v4671_v25 = vld [vmem:[%s6557_s8 + $0x1e4] ss:$16 sps:$4 sm:$0xff]  }
 0x2b0   :  { %1876 = vmatpush1.bf16.msra.mxu1 %v4587_v32  ;;  %1771 = vmatprep.subr.bf16.mxu0 %v4590_v33  ;;  %v4669_v32 = vld [vmem:[%s6557_s8 + $0x1e0] ss:$16 sps:$4 sm:$0xff]   ;;  %v4674_v33 = vld [vmem:[%s6557_s8 + $0x204] ss:$16 sps:$4 sm:$0xff]  }
 0x2b1   :  { %1877 = vmatprep.subr.bf16.mxu1 %v4955_v1 }
 0x2b3   :  { %1772 = vmatpush1.bf16.msra.mxu0 %v4588_v34  ;;  %v4719_v34 = vld [vmem:[%s6557_s8 + $0x604] ss:$16 sps:$4 sm:$0xff]  }
 0x2b4   :  { %1878 = vmatpush1.bf16.msra.mxu1 %v4591_v35  ;;  %1773 = vmatprep.subr.bf16.mxu0 %v4594_v36  ;;  %v4717_v35 = vld [vmem:[%s6557_s8 + $0x600] ss:$16 sps:$4 sm:$0xff]   ;;  %v4725_v36 = vld [vmem:[%s6557_s8 + $0x624] ss:$16 sps:$4 sm:$0xff]  }
 0x2b5   :  { %1879 = vmatprep.subr.bf16.mxu1 %v4955_v1 }
 0x2b7   :  { %1774 = vmatpush1.bf16.msra.mxu0 %v4592_v37  ;;  %v4723_v37 = vld [vmem:[%s6557_s8 + $0x620] ss:$16 sps:$4 sm:$0xff]  }
 0x2b8   :  { %1880 = vmatpush1.bf16.msra.mxu1 %v4595_v27  ;;  %1784 = vmatprep.subr.bf16.mxu0 %v4598_v42  ;;  %v4731_v27 = vld [vmem:[%s6557_s8 + $0xc] ss:$16 sps:$4 sm:$0xff]   ;;  %v5905_v42 = vld [vmem:[%s6558_s7] sm:$0x7f] }
 0x2b9   :  { %1881 = vmatprep.subr.bf16.mxu1 %v4955_v1 }
 0x2ba   :  { %1776 = vmatmul.mubr.bf16.vlgmr.msra.gmra.mrb[4].mxu0 %v5423_v59  ;;  %v4629_v59 = vld [vmem:[%s6557_s8 + $0x24] ss:$16 sps:$4 sm:$0xff]  }
 0x2bb   :  { %1785 = vmatpush1.bf16.msra.mxu0 %v4596_v43  ;;  %4012 = vmatprep.mubr.msk.bf16.mxu0 %vm331_vm2, %v5435_v62  ;;  %v4603_v62 = vld [vmem:[%s6553_s6 + $0x400] ss:$28 sps:$4 sm:$0xff]   ;;  %v644_v43 = vrot.slane %v5905_v42, %v5124_v40 }
 0x2bc   :  { %1882 = vmatpush1.bf16.msra.mxu1 %v4599_v52  ;;  %1786 = vmatprep.subr.bf16.mxu0 %v4602_v54  ;;  %v648_v52 = vrot.slane %v5905_v42, %v5127_v41  ;;  %v656_v54 = vrot.slane %v5905_v42, %v5138_v46 }
 0x2bd   :  { %3145 = vmatprep.subr.bf16.mxu1 %v4626_v56 }
 0x2bf   :  { %1898 = vmatmul.mubr.bf16.vlgmr.msra.gmra.mrb[16].mxu1 %v5557_v49  ;;  %1787 = vmatpush1.bf16.msra.mxu0 %v4600_v44 }
 0x2c0   :  { %1788 = vmatprep.subr.bf16.mxu0 %v4605_v47  ;;  %3146 = vmatpush1.bf16.msra.mxu1 %v4624_v48 }
 0x2c1   :  { %3147 = vmatprep.subr.bf16.mxu1 %v4629_v59 }
 0x2c3   :  { %1789 = vmatpush1.bf16.msra.mxu0 %v4603_v62 }
 0x2c4   :  { %1790 = vmatprep.subr.bf16.mxu0 %v4608_v51  ;;  %3148 = vmatpush1.bf16.msra.mxu1 %v4627_v57 }
 0x2c5   :  { %3149 = vmatprep.subr.bf16.mxu1 %v4632_v58 }
 0x2c7   :  { %1791 = vmatpush1.bf16.msra.mxu0 %v4606_v55 }
 0x2c8   :  { %1792 = vmatprep.subr.bf16.mxu0 %v4611_v53  ;;  %3150 = vmatpush1.bf16.msra.mxu1 %v4630_v60 }
 0x2c9   :  { %3151 = vmatprep.subr.bf16.mxu1 %v4635_v61 }
 0x2cb   :  { %1793 = vmatpush1.bf16.msra.mxu0 %v4609_v63 }
 0x2cc   :  { %1794 = vmatprep.subr.bf16.mxu0 %v4614_v0  ;;  %3152 = vmatpush1.bf16.msra.mxu1 %v4633_v2  ;;  %v4672_v2 = vld [vmem:[%s6557_s8 + $0x200] ss:$16 sps:$4 sm:$0xff]  }
 0x2cd   :  { %3153 = vmatprep.subr.bf16.mxu1 %v4638_v3 }
 0x2cf   :  { %1795 = vmatpush1.bf16.msra.mxu0 %v4612_v4  ;;  %v4677_v4 = vld [vmem:[%s6557_s8 + $0x224] ss:$16 sps:$4 sm:$0xff]  }
 0x2d0   :  { %1796 = vmatprep.subr.bf16.mxu0 %v4617_v5  ;;  %3154 = vmatpush1.bf16.msra.mxu1 %v4636_v6  ;;  %v4675_v6 = vld [vmem:[%s6557_s8 + $0x220] ss:$16 sps:$4 sm:$0xff]  }
 0x2d1   :  { %3155 = vmatprep.subr.bf16.mxu1 %v4641_v7  ;;  %v4680_v7 = vld [vmem:[%s6557_s8 + $0x244] ss:$16 sps:$4 sm:$0xff]  }
 0x2d3   :  { %1797 = vmatpush1.bf16.msra.mxu0 %v4615_v8  ;;  %v4678_v8 = vld [vmem:[%s6557_s8 + $0x240] ss:$16 sps:$4 sm:$0xff]  }
 0x2d4   :  { %1798 = vmatprep.subr.bf16.mxu0 %v4620_v9  ;;  %3156 = vmatpush1.bf16.msra.mxu1 %v4639_v10  ;;  %v4683_v9 = vld [vmem:[%s6557_s8 + $0x264] ss:$16 sps:$4 sm:$0xff]   ;;  %v4681_v10 = vld [vmem:[%s6557_s8 + $0x260] ss:$16 sps:$4 sm:$0xff]  }
 0x2d5   :  { %3157 = vmatprep.subr.bf16.mxu1 %v4644_v11  ;;  %v4686_v11 = vld [vmem:[%s6557_s8 + $0x284] ss:$16 sps:$4 sm:$0xff]  }
 0x2d7   :  { %1799 = vmatpush1.bf16.msra.mxu0 %v4618_v12  ;;  %v4684_v12 = vld [vmem:[%s6557_s8 + $0x280] ss:$16 sps:$4 sm:$0xff]  }
 0x2d8   :  { %1800 = vmatprep.subr.bf16.mxu0 %v4623_v13  ;;  %3158 = vmatpush1.bf16.msra.mxu1 %v4642_v14  ;;  %v4689_v13 = vld [vmem:[%s6557_s8 + $0x2a4] ss:$16 sps:$4 sm:$0xff]   ;;  %v4687_v14 = vld [vmem:[%s6557_s8 + $0x2a0] ss:$16 sps:$4 sm:$0xff]  }
 0x2d9   :  { %3159 = vmatprep.subr.bf16.mxu1 %v4647_v15  ;;  %v4692_v15 = vld [vmem:[%s6557_s8 + $0x2c4] ss:$16 sps:$4 sm:$0xff]  }
 0x2db   :  { %1801 = vmatpush1.bf16.msra.mxu0 %v4621_v16  ;;  %v4690_v16 = vld [vmem:[%s6557_s8 + $0x2c0] ss:$16 sps:$4 sm:$0xff]  }
 0x2dc   :  { %3160 = vmatpush1.bf16.msra.mxu1 %v4645_v17  ;;  %3268 = vmatprep.subr.bf16.mxu0 %v4719_v34  ;;  %v4695_v17 = vld [vmem:[%s6557_s8 + $0x2e4] ss:$16 sps:$4 sm:$0xff]   ;;  %v4711_v34 = vld [vmem:[%s6557_s8 + $0x3a0] ss:$16 sps:$4 sm:$0xff]  }
 0x2dd   :  { %3161 = vmatprep.subr.bf16.mxu1 %v4650_v18 }
 0x2de   :  { %1817 = vmatmul.mubr.bf16.vlgmr.msra.gmra.mrb[4].mxu0 %v5557_v49  ;;  %v4659_v49 = vld [vmem:[%s6557_s8 + $0x164] ss:$16 sps:$4 sm:$0xff]  }
 0x2df   :  { %3300 = vmatprep.mubr.bf16.mxu0 %v4955_v1  ;;  %3269 = vmatpush1.bf16.msra.mxu0 %v4717_v35  ;;  %v652_v35 = vrot.slane %v5905_v42, %v5135_v45 }
 0x2e0   :  { %3162 = vmatpush1.bf16.msra.mxu1 %v4648_v19  ;;  %3270 = vmatprep.subr.bf16.mxu0 %v4725_v36  ;;  %v4716_v36 = vld [vmem:[%s6557_s8 + $0x3c4] ss:$16 sps:$4 sm:$0xff]  }
 0x2e1   :  { %3163 = vmatprep.subr.bf16.mxu1 %v4653_v20  ;;  %v4693_v20 = vld [vmem:[%s6557_s8 + $0x2e0] ss:$16 sps:$4 sm:$0xff]  }
 0x2e3   :  { %3271 = vmatpush1.bf16.msra.mxu0 %v4723_v37  ;;  %v667_v37 = vsub.s32 6, %v5121_v39 }
 0x2e4   :  { %3164 = vmatpush1.bf16.msra.mxu1 %v4651_v21  ;;  %3309 = vmatprep.subr.bf16.mxu0 %v4731_v27  ;;  %v4714_v27 = vld [vmem:[%s6557_s8 + $0x3c0] ss:$16 sps:$4 sm:$0xff]  }
 0x2e5   :  { %3165 = vmatprep.subr.bf16.mxu1 %v4656_v22 }
 0x2e8   :  { %3166 = vmatpush1.bf16.msra.mxu1 %v4654_v23  ;;  %v4698_v23 = vld [vmem:[%s6557_s8 + $0x304] ss:$16 sps:$4 sm:$0xff]  }
 0x2e9   :  { %3167 = vmatprep.subr.bf16.mxu1 %v4659_v49 }
 0x2ec   :  { %3168 = vmatpush1.bf16.msra.mxu1 %v4657_v26  ;;  %v4696_v26 = vld [vmem:[%s6557_s8 + $0x300] ss:$16 sps:$4 sm:$0xff]  }
 0x2ed   :  { %3169 = vmatprep.subr.bf16.mxu1 %v4662_v50  ;;  %v4701_v50 = vld [vmem:[%s6557_s8 + $0x324] ss:$16 sps:$4 sm:$0xff]  }
 0x2f0   :  { %3170 = vmatpush1.bf16.msra.mxu1 %v4660_v24  ;;  %v4699_v24 = vld [vmem:[%s6557_s8 + $0x320] ss:$16 sps:$4 sm:$0xff]  }
 0x2f1   :  { %3171 = vmatprep.subr.bf16.mxu1 %v4665_v28  ;;  %v4704_v28 = vld [vmem:[%s6557_s8 + $0x344] ss:$16 sps:$4 sm:$0xff]  }
 0x2f4   :  { %3172 = vmatpush1.bf16.msra.mxu1 %v4663_v29  ;;  %v4702_v29 = vld [vmem:[%s6557_s8 + $0x340] ss:$16 sps:$4 sm:$0xff]  }
 0x2f5   :  { %3173 = vmatprep.subr.bf16.mxu1 %v4668_v30  ;;  %v4707_v30 = vld [vmem:[%s6557_s8 + $0x364] ss:$16 sps:$4 sm:$0xff]  }
 0x2f8   :  { %3174 = vmatpush1.bf16.msra.mxu1 %v4666_v31  ;;  %v4705_v31 = vld [vmem:[%s6557_s8 + $0x360] ss:$16 sps:$4 sm:$0xff]  }
 0x2f9   :  { %3175 = vmatprep.subr.bf16.mxu1 %v4671_v25  ;;  %v4710_v25 = vld [vmem:[%s6557_s8 + $0x384] ss:$16 sps:$4 sm:$0xff]  }
 0x2fc   :  { %3176 = vmatpush1.bf16.msra.mxu1 %v4669_v32  ;;  %v4708_v32 = vld [vmem:[%s6557_s8 + $0x380] ss:$16 sps:$4 sm:$0xff]  }
 0x2fd   :  { %3186 = vmatprep.subr.bf16.mxu1 %v4674_v33  ;;  %v4713_v33 = vld [vmem:[%s6557_s8 + $0x3a4] ss:$16 sps:$4 sm:$0xff]  }
 0x34d   :  { %v1654_v56 = vpop.f32.mrb[0].mxu0  ;;  %v5913_v44 = vpop.f32.mrb[8].mxu1 }
 0x34e   :  { %v4289_v47 = vadd.f32 %v1654_v56, %v644_v43  ;;  %v1656_v48 = vpop.f32.mrb[1].mxu0  ;;  %v1738_v59 = vpop.f32.mrb[9].mxu1  ;;  %v4291_v43 = vadd.f32 %v5913_v44, %v652_v35  ;;  %v4720_v56 = vld [vmem:[%s6557_s8 + $0x3e0] ss:$16 sps:$4 sm:$0xff]  }
 0x34f   :  { %v4290_v62 = vadd.f32 %v1656_v48, %v648_v52  ;;  %v4292_v51 = vadd.f32 %v1738_v59, %v656_v54  ;;  %v1658_v57 = vpop.f32.mrb[2].mxu0  ;;  %v1740_v58 = vpop.f32.mrb[10].mxu1  ;;  %v4722_v52 = vld [vmem:[%s6557_s8 + $0x3e4] ss:$16 sps:$4 sm:$0xff]   ;;  %v668_v54 = vrot.slane %v5905_v42, %v667_v37  ;;  %v4774_v37 = vld [vmem:[%s6557_s8 + $0x500] ss:$16 sps:$4 sm:$0xff]  }
 0x350   :  { %v1905_v55 = vmax.f32 %v4289_v47, 0.0  ;;  %v1659_v53 = vpop.f32.mrb[3].mxu0  ;;  %v1741_v60 = vpop.f32.mrb[11].mxu1  ;;  %v1907_v47 = vmax.f32 %v4291_v43, 0.0  ;;  %v4728_v48 = vld [vmem:[%s6557_s8 + $0x404] ss:$16 sps:$4 sm:$0xff]  }
 0x351   :  { %v1906_v61 = vmax.f32 %v4290_v62, 0.0  ;;  %v1908_v63 = vmax.f32 %v4292_v51, 0.0  ;;  %v4726_v57 = vld [vmem:[%s6557_s8 + $0x400] ss:$16 sps:$4 sm:$0xff]   ;;  %v4734_v53 = vld [vmem:[%s6557_s8 + $0x424] ss:$16 sps:$4 sm:$0xff]  }
 0x352   :  { %v5920_v3 = vpack.c.bf16 %v1905_v55, %v1905_v55  ;;  %v6028_v58 = vpack.c.bf16 %v1907_v47, %v1907_v47 }
 0x353   :  { %v5915_v0 = vpack.c.bf16 %v1906_v61, %v1906_v61  ;;  %v5925_v5 = vpack.c.bf16 %v1908_v63, %v1908_v63  ;;  %v4729_v63 = vld [vmem:[%s6557_s8 + $0x8] ss:$16 sps:$4 sm:$0xff]  }
 0x355   :  { %3177 = vmatprep.mubr.bf16.mxu1 %v5915_v0 }
 0x356   :  { %3178 = vmatmul.mubr.bf16.vlgmr.msra.gmra.mrb[20].mxu1 %v5920_v3 }
 0x357   :  { %3187 = vmatpush1.bf16.msra.mxu1 %v4672_v2  ;;  %3218 = vmatprep.mubr.bf16.mxu1 %v5925_v5 }
 0x358   :  { %3188 = vmatprep.subr.bf16.mxu1 %v4677_v4  ;;  %v4732_v4 = vld [vmem:[%s6557_s8 + $0x420] ss:$16 sps:$4 sm:$0xff]  }
 0x35b   :  { %3189 = vmatpush1.bf16.msra.mxu1 %v4675_v6  ;;  %v4737_v6 = vld [vmem:[%s6557_s8 + $0x2c] ss:$16 sps:$4 sm:$0xff]  }
 0x35c   :  { %3190 = vmatprep.subr.bf16.mxu1 %v4680_v7  ;;  %v4740_v7 = vld [vmem:[%s6557_s8 + $0x444] ss:$16 sps:$4 sm:$0xff]  }
 0x35f   :  { %3191 = vmatpush1.bf16.msra.mxu1 %v4678_v8  ;;  %v4735_v8 = vld [vmem:[%s6557_s8 + $0x28] ss:$16 sps:$4 sm:$0xff]  }
 0x360   :  { %3192 = vmatprep.subr.bf16.mxu1 %v4683_v9  ;;  %v4738_v9 = vld [vmem:[%s6557_s8 + $0x440] ss:$16 sps:$4 sm:$0xff]  }
 0x363   :  { %3193 = vmatpush1.bf16.msra.mxu1 %v4681_v10  ;;  %v4743_v10 = vld [vmem:[%s6557_s8 + $0x4c] ss:$16 sps:$4 sm:$0xff]  }
 0x364   :  { %3194 = vmatprep.subr.bf16.mxu1 %v4686_v11  ;;  %v4746_v11 = vld [vmem:[%s6557_s8 + $0x464] ss:$16 sps:$4 sm:$0xff]  }
 0x367   :  { %3195 = vmatpush1.bf16.msra.mxu1 %v4684_v12  ;;  %v4744_v12 = vld [vmem:[%s6557_s8 + $0x460] ss:$16 sps:$4 sm:$0xff]  }
 0x368   :  { %3196 = vmatprep.subr.bf16.mxu1 %v4689_v13  ;;  %v4749_v13 = vld [vmem:[%s6557_s8 + $0x6c] ss:$16 sps:$4 sm:$0xff]  }
 0x36b   :  { %3197 = vmatpush1.bf16.msra.mxu1 %v4687_v14  ;;  %v4752_v14 = vld [vmem:[%s6557_s8 + $0x484] ss:$16 sps:$4 sm:$0xff]  }
 0x36c   :  { %3198 = vmatprep.subr.bf16.mxu1 %v4692_v15  ;;  %v4747_v15 = vld [vmem:[%s6557_s8 + $0x68] ss:$16 sps:$4 sm:$0xff]  }
 0x36e   :  { %v4261_v18 = vpop.f32.mrb[12].mxu1 }
 0x36f   :  { %v4262_v19 = vpop.f32.mrb[13].mxu1  ;;  %3199 = vmatpush1.bf16.msra.mxu1 %v4690_v16  ;;  %v4750_v16 = vld [vmem:[%s6557_s8 + $0x480] ss:$16 sps:$4 sm:$0xff]  }
 0x370   :  { %v4263_v21 = vadd.f32 %v4262_v19, %v4261_v18  ;;  %v4264_v22 = vpop.f32.mrb[14].mxu1  ;;  %3200 = vmatprep.subr.bf16.mxu1 %v4695_v17  ;;  %v4755_v17 = vld [vmem:[%s6557_s8 + $0x8c] ss:$16 sps:$4 sm:$0xff]   ;;  %v4758_v18 = vld [vmem:[%s6557_s8 + $0x4a4] ss:$16 sps:$4 sm:$0xff]  }
 0x371   :  { %v4265_v49 = vpop.f32.mrb[15].mxu1  ;;  %v4753_v19 = vld [vmem:[%s6557_s8 + $0x88] ss:$16 sps:$4 sm:$0xff]   ;;  %v4764_v22 = vld [vmem:[%s6557_s8 + $0x4c4] ss:$16 sps:$4 sm:$0xff]  }
 0x372   :  { %v1860_v59 = vadd.f32 %v4263_v21, %v668_v54  ;;  %v4761_v21 = vld [vmem:[%s6557_s8 + $0xac] ss:$16 sps:$4 sm:$0xff]   ;;  %v4762_v49 = vld [vmem:[%s6557_s8 + $0x4c0] ss:$16 sps:$4 sm:$0xff]  }
 0x373   :  { %3201 = vmatpush1.bf16.msra.mxu1 %v4693_v20  ;;  %v4756_v20 = vld [vmem:[%s6557_s8 + $0x4a0] ss:$16 sps:$4 sm:$0xff]  }
 0x374   :  { %3202 = vmatprep.subr.bf16.mxu1 %v4698_v23  ;;  %v4759_v23 = vld [vmem:[%s6557_s8 + $0xa8] ss:$16 sps:$4 sm:$0xff]  }
 0x377   :  { %3203 = vmatpush1.bf16.msra.mxu1 %v4696_v26  ;;  %v4767_v26 = vld [vmem:[%s6557_s8 + $0xcc] ss:$16 sps:$4 sm:$0xff]  }
 0x378   :  { %3204 = vmatprep.subr.bf16.mxu1 %v4701_v50  ;;  %v663_v50 = vsub.s32 5, %v5121_v39 }
 0x37b   :  { %3205 = vmatpush1.bf16.msra.mxu1 %v4699_v24  ;;  %v4770_v24 = vld [vmem:[%s6557_s8 + $0x4e4] ss:$16 sps:$4 sm:$0xff]  }
 0x37c   :  { %3206 = vmatprep.subr.bf16.mxu1 %v4704_v28  ;;  %v4765_v28 = vld [vmem:[%s6557_s8 + $0xc8] ss:$16 sps:$4 sm:$0xff]  }
 0x37f   :  { %3207 = vmatpush1.bf16.msra.mxu1 %v4702_v29  ;;  %v4768_v29 = vld [vmem:[%s6557_s8 + $0x4e0] ss:$16 sps:$4 sm:$0xff]  }
 0x380   :  { %3208 = vmatprep.subr.bf16.mxu1 %v4707_v30  ;;  %v664_v30 = vrot.slane %v5905_v42, %v663_v50  ;;  %v4827_v50 = vld [vmem:[%s6557_s8 + $0x22c] ss:$16 sps:$4 sm:$0xff]  }
 0x383   :  { %3209 = vmatpush1.bf16.msra.mxu1 %v4705_v31  ;;  %v4773_v31 = vld [vmem:[%s6557_s8 + $0xec] ss:$16 sps:$4 sm:$0xff]  }
 0x384   :  { %3210 = vmatprep.subr.bf16.mxu1 %v4710_v25  ;;  %v4776_v25 = vld [vmem:[%s6557_s8 + $0x504] ss:$16 sps:$4 sm:$0xff]  }
 0x387   :  { %3211 = vmatpush1.bf16.msra.mxu1 %v4708_v32 }
 0x388   :  { %3212 = vmatprep.subr.bf16.mxu1 %v4713_v33 }
 0x38b   :  { %3213 = vmatpush1.bf16.msra.mxu1 %v4711_v34  ;;  %v4771_v34 = vld [vmem:[%s6557_s8 + $0xe8] ss:$16 sps:$4 sm:$0xff]  }
 0x38c   :  { %3214 = vmatprep.subr.bf16.mxu1 %v4716_v36 }
 0x38f   :  { %3215 = vmatpush1.bf16.msra.mxu1 %v4714_v27  ;;  %v4779_v27 = vld [vmem:[%s6557_s8 + $0x10c] ss:$16 sps:$4 sm:$0xff]  }
 0x390   :  { %3216 = vmatprep.subr.bf16.mxu1 %v4722_v52  ;;  %v4782_v52 = vld [vmem:[%s6557_s8 + $0x524] ss:$16 sps:$4 sm:$0xff]  }
 0x392   :  { %v1899_v44 = vpop.f32.mrb[16].mxu1 }
 0x393   :  { %v1900_v62 = vadd.f32 %v1899_v44, %v1860_v59  ;;  %v1901_v51 = vpop.f32.mrb[17].mxu1  ;;  %3217 = vmatpush1.bf16.msra.mxu1 %v4720_v56  ;;  %v4777_v56 = vld [vmem:[%s6557_s8 + $0x108] ss:$16 sps:$4 sm:$0xff]   ;;  %v4785_v59 = vld [vmem:[%s6557_s8 + $0x12c] ss:$16 sps:$4 sm:$0xff]  }
 0x394   :  { %v1902_v55 = vpop.f32.mrb[18].mxu1  ;;  %3227 = vmatprep.subr.bf16.mxu1 %v4728_v48  ;;  %v4780_v48 = vld [vmem:[%s6557_s8 + $0x520] ss:$16 sps:$4 sm:$0xff]   ;;  %v4788_v44 = vld [vmem:[%s6557_s8 + $0x544] ss:$16 sps:$4 sm:$0xff]  }
 0x395   :  { %v1911_v60 = vmax.f32 %v1900_v62, 0.0  ;;  %v1903_v61 = vpop.f32.mrb[19].mxu1  ;;  %v4783_v62 = vld [vmem:[%s6557_s8 + $0x128] ss:$16 sps:$4 sm:$0xff]   ;;  %v4786_v51 = vld [vmem:[%s6557_s8 + $0x540] ss:$16 sps:$4 sm:$0xff]  }
 0x396   :  { %3219 = vmatmul.mubr.bf16.vlgmr.msra.gmra.mrb[20].mxu1 %v6028_v58  ;;  %v4794_v55 = vld [vmem:[%s6557_s8 + $0x564] ss:$16 sps:$4 sm:$0xff]   ;;  %v4797_v61 = vld [vmem:[%s6557_s8 + $0x16c] ss:$16 sps:$4 sm:$0xff]  }
 0x397   :  { %v6037_v2 = vpack.c.bf16 %v1911_v60, %v1911_v60  ;;  %3228 = vmatpush1.bf16.msra.mxu1 %v4726_v57  ;;  %v4791_v57 = vld [vmem:[%s6557_s8 + $0x14c] ss:$16 sps:$4 sm:$0xff]   ;;  %v4792_v60 = vld [vmem:[%s6557_s8 + $0x560] ss:$16 sps:$4 sm:$0xff]  }
 0x398   :  { %3229 = vmatprep.subr.bf16.mxu1 %v4734_v53  ;;  %v4789_v53 = vld [vmem:[%s6557_s8 + $0x148] ss:$16 sps:$4 sm:$0xff]  }
 0x399   :  { %4214 = vmatmul.mubr.msk.bf16.vlgmr.msra.gmra.mrb[8].mxu0 %vm3141_vm3, %v6037_v2 }
 0x39a   :  { %3310 = vmatpush1.bf16.msra.mxu0 %v4729_v63  ;;  %3341 = vmatprep.mubr.bf16.mxu0 %v5915_v0  ;;  %v4741_v0 = vld [vmem:[%s6557_s8 + $0x48] ss:$16 sps:$4 sm:$0xff]   ;;  %v4800_v63 = vld [vmem:[%s6557_s8 + $0x584] ss:$16 sps:$4 sm:$0xff]  }
 0x39b   :  { %3230 = vmatpush1.bf16.msra.mxu1 %v4732_v4  ;;  %3311 = vmatprep.subr.bf16.mxu0 %v4737_v6  ;;  %v4795_v4 = vld [vmem:[%s6557_s8 + $0x168] ss:$16 sps:$4 sm:$0xff]   ;;  %v4798_v6 = vld [vmem:[%s6557_s8 + $0x580] ss:$16 sps:$4 sm:$0xff]  }
 0x39c   :  { %3231 = vmatprep.subr.bf16.mxu1 %v4740_v7  ;;  %v4803_v7 = vld [vmem:[%s6557_s8 + $0x18c] ss:$16 sps:$4 sm:$0xff]  }
 0x39e   :  { %3312 = vmatpush1.bf16.msra.mxu0 %v4735_v8  ;;  %v659_v8 = vsub.s32 4, %v5121_v39 }
 0x39f   :  { %3232 = vmatpush1.bf16.msra.mxu1 %v4738_v9  ;;  %3313 = vmatprep.subr.bf16.mxu0 %v4743_v10  ;;  %v4806_v9 = vld [vmem:[%s6557_s8 + $0x5a4] ss:$16 sps:$4 sm:$0xff]   ;;  %v4801_v10 = vld [vmem:[%s6557_s8 + $0x188] ss:$16 sps:$4 sm:$0xff]  }
 0x3a0   :  { %3233 = vmatprep.subr.bf16.mxu1 %v4746_v11  ;;  %v4804_v11 = vld [vmem:[%s6557_s8 + $0x5a0] ss:$16 sps:$4 sm:$0xff]  }
 0x3a2   :  { %3314 = vmatpush1.bf16.msra.mxu0 %v4741_v0  ;;  %v4809_v0 = vld [vmem:[%s6557_s8 + $0x1ac] ss:$16 sps:$4 sm:$0xff]  }
 0x3a3   :  { %3234 = vmatpush1.bf16.msra.mxu1 %v4744_v12  ;;  %3315 = vmatprep.subr.bf16.mxu0 %v4749_v13  ;;  %v660_v12 = vrot.slane %v5905_v42, %v659_v8  ;;  %v4812_v13 = vld [vmem:[%s6557_s8 + $0x5c4] ss:$16 sps:$4 sm:$0xff]   ;;  %v4815_v42 = vld [vmem:[%s6557_s8 + $0x1cc] ss:$16 sps:$4 sm:$0xff]  }
 0x3a4   :  { %3235 = vmatprep.subr.bf16.mxu1 %v4752_v14  ;;  %v4807_v14 = vld [vmem:[%s6557_s8 + $0x1a8] ss:$16 sps:$4 sm:$0xff]  }
 0x3a5   :  { %v4935_v8 = vld [vmem:[%s6559_s10 + $0x28] sm:$0xff]  }
 0x3a6   :  { %3316 = vmatpush1.bf16.msra.mxu0 %v4747_v15  ;;  %v4810_v15 = vld [vmem:[%s6557_s8 + $0x5c0] ss:$16 sps:$4 sm:$0xff]  }
 0x3a7   :  { %3236 = vmatpush1.bf16.msra.mxu1 %v4750_v16  ;;  %3317 = vmatprep.subr.bf16.mxu0 %v4755_v17  ;;  %v4818_v17 = vld [vmem:[%s6557_s8 + $0x5e4] ss:$16 sps:$4 sm:$0xff]  }
 0x3a8   :  { %3237 = vmatprep.subr.bf16.mxu1 %v4758_v18  ;;  %v4813_v18 = vld [vmem:[%s6557_s8 + $0x1c8] ss:$16 sps:$4 sm:$0xff]  }
 0x3aa   :  { %3318 = vmatpush1.bf16.msra.mxu0 %v4753_v19  ;;  %v4816_v19 = vld [vmem:[%s6557_s8 + $0x5e0] ss:$16 sps:$4 sm:$0xff]  }
 0x3ab   :  { %3238 = vmatpush1.bf16.msra.mxu1 %v4756_v20  ;;  %3319 = vmatprep.subr.bf16.mxu0 %v4761_v21  ;;  %v4821_v20 = vld [vmem:[%s6557_s8 + $0x1ec] ss:$16 sps:$4 sm:$0xff]  }
 0x3ac   :  { %3239 = vmatprep.subr.bf16.mxu1 %v4764_v22  ;;  %v4819_v22 = vld [vmem:[%s6557_s8 + $0x1e8] ss:$16 sps:$4 sm:$0xff]  }
 0x3ae   :  { %3320 = vmatpush1.bf16.msra.mxu0 %v4759_v23  ;;  %v4824_v23 = vld [vmem:[%s6557_s8 + $0x20c] ss:$16 sps:$4 sm:$0xff]  }
 0x3af   :  { %3240 = vmatpush1.bf16.msra.mxu1 %v4762_v49  ;;  %3321 = vmatprep.subr.bf16.mxu0 %v4767_v26  ;;  %v4822_v26 = vld [vmem:[%s6557_s8 + $0x208] ss:$16 sps:$4 sm:$0xff]  }
 0x3b0   :  { %3241 = vmatprep.subr.bf16.mxu1 %v4770_v24  ;;  %v4825_v24 = vld [vmem:[%s6557_s8 + $0x228] ss:$16 sps:$4 sm:$0xff]  }
 0x3b1   :  { %v6125_v32 = vpop.f32.mrb[4].mxu0 }
 0x3b2   :  { %3322 = vmatpush1.bf16.msra.mxu0 %v4765_v28  ;;  %v1820_v33 = vpop.f32.mrb[5].mxu0  ;;  %v4293_v16 = vadd.f32 %v6125_v32, %v660_v12  ;;  %v4830_v28 = vld [vmem:[%s6557_s8 + $0x24c] ss:$16 sps:$4 sm:$0xff]   ;;  %v4837_v32 = vld [vmem:[%s6557_s8 + $0x2a8] ss:$16 sps:$4 sm:$0xff]  }
 0x3b3   :  { %v4294_v35 = vadd.f32 %v1820_v33, %v664_v30  ;;  %3242 = vmatpush1.bf16.msra.mxu1 %v4768_v29  ;;  %v1822_v36 = vpop.f32.mrb[6].mxu0  ;;  %3323 = vmatprep.subr.bf16.mxu0 %v4773_v31  ;;  %v4828_v29 = vld [vmem:[%s6557_s8 + $0x248] ss:$16 sps:$4 sm:$0xff]   ;;  %v4836_v30 = vld [vmem:[%s6557_s8 + $0x28c] ss:$16 sps:$4 sm:$0xff]  }
 0x3b4   :  { %v1823_v43 = vpop.f32.mrb[7].mxu0  ;;  %3243 = vmatprep.subr.bf16.mxu1 %v4776_v25  ;;  %v1909_v21 = vmax.f32 %v4293_v16, 0.0  ;;  %v4834_v31 = vld [vmem:[%s6557_s8 + $0x288] ss:$16 sps:$4 sm:$0xff]   ;;  %v4839_v25 = vld [vmem:[%s6557_s8 + $0x2ac] ss:$16 sps:$4 sm:$0xff]  }
 0x3b5   :  { %v1910_v54 = vmax.f32 %v4294_v35, 0.0  ;;  %v4842_v33 = vld [vmem:[%s6557_s8 + $0x2cc] ss:$16 sps:$4 sm:$0xff]   ;;  %v4843_v36 = vld [vmem:[%s6557_s8 + $0x2e8] ss:$16 sps:$4 sm:$0xff]   ;;  %v4925_v43 = vld [vmem:[%s6559_s10] sm:$0xff]  }
 0x3b6   :  { %3324 = vmatpush1.bf16.msra.mxu0 %v4771_v34  ;;  %v6232_v49 = vpack.c.bf16 %v1909_v21, %v1909_v21  ;;  %v4840_v34 = vld [vmem:[%s6557_s8 + $0x2c8] ss:$16 sps:$4 sm:$0xff]   ;;  %v4845_v35 = vld [vmem:[%s6557_s8 + $0x2ec] ss:$16 sps:$4 sm:$0xff]  }
 0x3b7   :  { %v6142_v47 = vpack.c.bf16 %v1910_v54, %v1910_v54  ;;  %3244 = vmatpush1.bf16.msra.mxu1 %v4774_v37  ;;  %3325 = vmatprep.subr.bf16.mxu0 %v4779_v27  ;;  %v4924_v37 = vld [vmem:[%s6559_s10 + $0x40] sm:$0xff]   ;;  %v4848_v27 = vld [vmem:[%s6557_s8 + $0x30c] ss:$16 sps:$4 sm:$0xff]   ;;  %v4864_v12 = vld [vmem:[%s6557_s8 + $0x3c8] ss:$16 sps:$4 sm:$0xff]  }
 0x3b8   :  { %3245 = vmatprep.subr.bf16.mxu1 %v4782_v52  ;;  %v4926_v52 = vld [vmem:[%s6559_s10 + $0x48] sm:$0xff]  }
 0x3b9   :  { %3259 = vmatprep.mubr.bf16.mxu1 %v6142_v47  ;;  %v4927_v54 = vld [vmem:[%s6559_s10 + $0x8] sm:$0xff]  }
 0x3ba   :  { %3326 = vmatpush1.bf16.msra.mxu0 %v4777_v56  ;;  %v4928_v56 = vld [vmem:[%s6559_s10 + $0x50] sm:$0xff]   ;;  %v4875_v16 = vld [vmem:[%s6557_s8 + $0x42c] ss:$16 sps:$4 sm:$0xff]   ;;  %v4882_v21 = vld [vmem:[%s6557_s8 + $0x488] ss:$16 sps:$4 sm:$0xff]  }
 0x3bb   :  { %3246 = vmatpush1.bf16.msra.mxu1 %v4780_v48  ;;  %3327 = vmatprep.subr.bf16.mxu0 %v4785_v59  ;;  %v4846_v48 = vld [vmem:[%s6557_s8 + $0x308] ss:$16 sps:$4 sm:$0xff]   ;;  %v4851_v59 = vld [vmem:[%s6557_s8 + $0x32c] ss:$16 sps:$4 sm:$0xff]  }
 0x3bc   :  { %3247 = vmatprep.subr.bf16.mxu1 %v4788_v44  ;;  %v4929_v44 = vld [vmem:[%s6559_s10 + $0x10] sm:$0xff]  }
 0x3be   :  { %3328 = vmatpush1.bf16.msra.mxu0 %v4783_v62  ;;  %v4930_v62 = vld [vmem:[%s6559_s10 + $0x58] sm:$0xff]  }
 0x3bf   :  { %3248 = vmatpush1.bf16.msra.mxu1 %v4786_v51  ;;  %3329 = vmatprep.subr.bf16.mxu0 %v4791_v57  ;;  %v4849_v51 = vld [vmem:[%s6557_s8 + $0x328] ss:$16 sps:$4 sm:$0xff]   ;;  %v4854_v57 = vld [vmem:[%s6557_s8 + $0x34c] ss:$16 sps:$4 sm:$0xff]  }
 0x3c0   :  { %3249 = vmatprep.subr.bf16.mxu1 %v4794_v55  ;;  %v4931_v55 = vld [vmem:[%s6559_s10 + $0x18] sm:$0xff]  }
 0x3c2   :  { %3330 = vmatpush1.bf16.msra.mxu0 %v4789_v53  ;;  %v4852_v53 = vld [vmem:[%s6557_s8 + $0x348] ss:$16 sps:$4 sm:$0xff]  }
 0x3c3   :  { %3250 = vmatpush1.bf16.msra.mxu1 %v4792_v60  ;;  %3331 = vmatprep.subr.bf16.mxu0 %v4797_v61  ;;  %v4932_v60 = vld [vmem:[%s6559_s10 + $0x60] sm:$0xff]   ;;  %v4857_v61 = vld [vmem:[%s6557_s8 + $0x36c] ss:$16 sps:$4 sm:$0xff]  }
 0x3c4   :  { %3251 = vmatprep.subr.bf16.mxu1 %v4800_v63  ;;  %v4933_v63 = vld [vmem:[%s6559_s10 + $0x20] sm:$0xff]  }
 0x3c6   :  { %3332 = vmatpush1.bf16.msra.mxu0 %v4795_v4  ;;  %v4934_v4 = vld [vmem:[%s6559_s10 + $0x68] sm:$0xff]  }
 0x3c7   :  { %3252 = vmatpush1.bf16.msra.mxu1 %v4798_v6  ;;  %3333 = vmatprep.subr.bf16.mxu0 %v4803_v7  ;;  %v4855_v6 = vld [vmem:[%s6557_s8 + $0x368] ss:$16 sps:$4 sm:$0xff]   ;;  %v4860_v7 = vld [vmem:[%s6557_s8 + $0x38c] ss:$16 sps:$4 sm:$0xff]  }
 0x3c8   :  { %3253 = vmatprep.subr.bf16.mxu1 %v4806_v9  ;;  %v4858_v9 = vld [vmem:[%s6557_s8 + $0x388] ss:$16 sps:$4 sm:$0xff]  }
 0x3ca   :  { %3334 = vmatpush1.bf16.msra.mxu0 %v4801_v10  ;;  %v4863_v10 = vld [vmem:[%s6557_s8 + $0x3ac] ss:$16 sps:$4 sm:$0xff]  }
 0x3cb   :  { %3254 = vmatpush1.bf16.msra.mxu1 %v4804_v11  ;;  %3335 = vmatprep.subr.bf16.mxu0 %v4809_v0  ;;  %v4861_v11 = vld [vmem:[%s6557_s8 + $0x3a8] ss:$16 sps:$4 sm:$0xff]   ;;  %v4866_v0 = vld [vmem:[%s6557_s8 + $0x3cc] ss:$16 sps:$4 sm:$0xff]  }
 0x3cc   :  { %3255 = vmatprep.subr.bf16.mxu1 %v4812_v13  ;;  %v4869_v13 = vld [vmem:[%s6557_s8 + $0x3ec] ss:$16 sps:$4 sm:$0xff]  }
 0x3ce   :  { %3336 = vmatpush1.bf16.msra.mxu0 %v4807_v14  ;;  %v4867_v14 = vld [vmem:[%s6557_s8 + $0x3e8] ss:$16 sps:$4 sm:$0xff]  }
 0x3cf   :  { %3256 = vmatpush1.bf16.msra.mxu1 %v4810_v15  ;;  %3337 = vmatprep.subr.bf16.mxu0 %v4815_v42  ;;  %v4872_v15 = vld [vmem:[%s6557_s8 + $0x40c] ss:$16 sps:$4 sm:$0xff]   ;;  %v4870_v42 = vld [vmem:[%s6557_s8 + $0x408] ss:$16 sps:$4 sm:$0xff]  }
 0x3d0   :  { %3257 = vmatprep.subr.bf16.mxu1 %v4818_v17  ;;  %v4873_v17 = vld [vmem:[%s6557_s8 + $0x428] ss:$16 sps:$4 sm:$0xff]  }
 0x3d2   :  { %3338 = vmatpush1.bf16.msra.mxu0 %v4813_v18  ;;  %v4878_v18 = vld [vmem:[%s6557_s8 + $0x44c] ss:$16 sps:$4 sm:$0xff]  }
 0x3d3   :  { %3258 = vmatpush1.bf16.msra.mxu1 %v4816_v19  ;;  %3339 = vmatprep.subr.bf16.mxu0 %v4821_v20  ;;  %v4876_v19 = vld [vmem:[%s6557_s8 + $0x448] ss:$16 sps:$4 sm:$0xff]   ;;  %v4884_v20 = vld [vmem:[%s6557_s8 + $0x48c] ss:$16 sps:$4 sm:$0xff]  }
 0x3d4   :  { %4267 = vmatprep.subr.bf16.mxu1 %v4924_v37  ;;  %v4903_v37 = vld [vmem:[%s6557_s8 + $0x568] ss:$16 sps:$4 sm:$0xff]  }
 0x3d6   :  { %3340 = vmatpush1.bf16.msra.mxu0 %v4819_v22  ;;  %3260 = vmatmul.mubr.bf16.vlgmr.msra.gmra.mrb[20].mxu1 %v6232_v49  ;;  %v4887_v22 = vld [vmem:[%s6557_s8 + $0x4ac] ss:$16 sps:$4 sm:$0xff]  }
 0x3d7   :  { %3350 = vmatprep.subr.bf16.mxu0 %v4824_v23  ;;  %4268 = vmatpush3.bf16.msra.mxu1 %v4925_v43  ;;  %v4936_v23 = vld [vmem:[%s6559_s10 + $0x70] sm:$0xff]   ;;  %v4906_v43 = vld [vmem:[%s6557_s8 + $0x588] ss:$16 sps:$4 sm:$0xff]  }
 0x3d8   :  { %4269 = vmatprep.subr.bf16.mxu1 %v4926_v52  ;;  %v4911_v52 = vld [vmem:[%s6557_s8 + $0x5ac] ss:$16 sps:$4 sm:$0xff]  }
 0x3d9   :  { %3342 = vmatmul.mubr.bf16.vlgmr.msra.gmra.mrb[12].mxu0 %v5920_v3  ;;  %v4833_v3 = vld [vmem:[%s6557_s8 + $0x26c] ss:$16 sps:$4 sm:$0xff]  }
 0x3da   :  { %3351 = vmatpush1.bf16.msra.mxu0 %v4822_v26  ;;  %3382 = vmatprep.mubr.bf16.mxu0 %v5925_v5  ;;  %v4831_v5 = vld [vmem:[%s6557_s8 + $0x268] ss:$16 sps:$4 sm:$0xff]  }
 0x3db   :  { %3352 = vmatprep.subr.bf16.mxu0 %v4827_v50  ;;  %4270 = vmatpush3.bf16.msra.mxu1 %v4927_v54  ;;  %v4885_v26 = vld [vmem:[%s6557_s8 + $0x4a8] ss:$16 sps:$4 sm:$0xff]   ;;  %v4937_v50 = vld [vmem:[%s6559_s10 + $0x30] sm:$0xff]  }
 0x3dc   :  { %4271 = vmatprep.subr.bf16.mxu1 %v4928_v56  ;;  %v4909_v54 = vld [vmem:[%s6557_s8 + $0x5a8] ss:$16 sps:$4 sm:$0xff]   ;;  %v4914_v56 = vld [vmem:[%s6557_s8 + $0x5cc] ss:$16 sps:$4 sm:$0xff]  }
 0x3de   :  { %3353 = vmatpush1.bf16.msra.mxu0 %v4825_v24  ;;  %v4890_v24 = vld [vmem:[%s6557_s8 + $0x4cc] ss:$16 sps:$4 sm:$0xff]  }
 0x3df   :  { %3354 = vmatprep.subr.bf16.mxu0 %v4830_v28  ;;  %4272 = vmatpush3.bf16.msra.mxu1 %v4929_v44  ;;  %v4938_v28 = vld [vmem:[%s6559_s10 + $0x78] sm:$0xff]  }
 0x3e0   :  { %4273 = vmatprep.subr.bf16.mxu1 %v4930_v62  ;;  %v4915_v44 = vld [vmem:[%s6557_s8 + $0x5e8] ss:$16 sps:$4 sm:$0xff]   ;;  %v4920_v62 = vld [vmem:[%s6557_s8 + $0x60c] ss:$16 sps:$4 sm:$0xff]  }
 0x3e2   :  { %3355 = vmatpush1.bf16.msra.mxu0 %v4828_v29  ;;  %v4888_v29 = vld [vmem:[%s6557_s8 + $0x4c8] ss:$16 sps:$4 sm:$0xff]  }
 0x3e3   :  { %3356 = vmatprep.subr.bf16.mxu0 %v4833_v3  ;;  %4274 = vmatpush3.bf16.msra.mxu1 %v4931_v55  ;;  %v4939_v3 = vld [vmem:[%s6559_s10 + $0x38] sm:$0xff]  }
 0x3e4   :  { %4275 = vmatprep.subr.bf16.mxu1 %v4932_v60  ;;  %v4921_v55 = vld [vmem:[%s6557_s8 + $0x628] ss:$16 sps:$4 sm:$0xff]   ;;  %v4942_v60 = vld [vmem:[%s6559_s10 + $0x90] sm:$0xff]  }
 0x3e6   :  { %3357 = vmatpush1.bf16.msra.mxu0 %v4831_v5  ;;  %v4893_v5 = vld [vmem:[%s6557_s8 + $0x4ec] ss:$16 sps:$4 sm:$0xff]  }
 0x3e7   :  { %3358 = vmatprep.subr.bf16.mxu0 %v4836_v30  ;;  %4276 = vmatpush3.bf16.msra.mxu1 %v4933_v63  ;;  %v4891_v30 = vld [vmem:[%s6557_s8 + $0x4e8] ss:$16 sps:$4 sm:$0xff]  }
 0x3e8   :  { %4277 = vmatprep.subr.bf16.mxu1 %v4934_v4 }
 0x3ea   :  { %3359 = vmatpush1.bf16.msra.mxu0 %v4834_v31  ;;  %v4896_v31 = vld [vmem:[%s6557_s8 + $0x50c] ss:$16 sps:$4 sm:$0xff]  }
 0x3eb   :  { %3360 = vmatprep.subr.bf16.mxu0 %v4839_v25  ;;  %4278 = vmatpush3.bf16.msra.mxu1 %v4935_v8  ;;  %v4894_v25 = vld [vmem:[%s6557_s8 + $0x508] ss:$16 sps:$4 sm:$0xff]  }
 0x3ec   :  { %4279 = vmatprep.subr.bf16.mxu1 %v4936_v23  ;;  %v4945_v8 = vld [vmem:[%s6559_s10 + $0xa8] sm:$0xff]  }
 0x3ee   :  { %3361 = vmatpush1.bf16.msra.mxu0 %v4837_v32  ;;  %v4899_v32 = vld [vmem:[%s6557_s8 + $0x52c] ss:$16 sps:$4 sm:$0xff]  }
 0x3ef   :  { %3362 = vmatprep.subr.bf16.mxu0 %v4842_v33  ;;  %4280 = vmatpush3.bf16.msra.mxu1 %v4937_v50  ;;  %v4897_v33 = vld [vmem:[%s6557_s8 + $0x528] ss:$16 sps:$4 sm:$0xff]  }
 0x3f0   :  { %4281 = vmatprep.subr.bf16.mxu1 %v4938_v28 }
 0x3f2   :  { %3363 = vmatpush1.bf16.msra.mxu0 %v4840_v34  ;;  %v4902_v34 = vld [vmem:[%s6557_s8 + $0x54c] ss:$16 sps:$4 sm:$0xff]  }
 0x3f3   :  { %3364 = vmatprep.subr.bf16.mxu0 %v4845_v35  ;;  %4282 = vmatpush3.bf16.msra.mxu1 %v4939_v3  ;;  %v4900_v35 = vld [vmem:[%s6557_s8 + $0x548] ss:$16 sps:$4 sm:$0xff]  }
 0x3f6   :  { %3365 = vmatpush1.bf16.msra.mxu0 %v4843_v36  ;;  %v4905_v36 = vld [vmem:[%s6557_s8 + $0x56c] ss:$16 sps:$4 sm:$0xff]  }
 0x3f7   :  { %3366 = vmatprep.subr.bf16.mxu0 %v4848_v27  ;;  %v4908_v27 = vld [vmem:[%s6557_s8 + $0x58c] ss:$16 sps:$4 sm:$0xff]  }
 0x3fa   :  { %3367 = vmatpush1.bf16.msra.mxu0 %v4846_v48  ;;  %v4912_v48 = vld [vmem:[%s6557_s8 + $0x5c8] ss:$16 sps:$4 sm:$0xff]  }
 0x3fb   :  { %3368 = vmatprep.subr.bf16.mxu0 %v4851_v59  ;;  %v4917_v59 = vld [vmem:[%s6557_s8 + $0x5ec] ss:$16 sps:$4 sm:$0xff]  }
 0x3fe   :  { %3369 = vmatpush1.bf16.msra.mxu0 %v4849_v51  ;;  %v4918_v51 = vld [vmem:[%s6557_s8 + $0x608] ss:$16 sps:$4 sm:$0xff]  }
 0x3ff   :  { %3370 = vmatprep.subr.bf16.mxu0 %v4854_v57  ;;  %v4923_v57 = vld [vmem:[%s6557_s8 + $0x62c] ss:$16 sps:$4 sm:$0xff]  }
 0x402   :  { %3371 = vmatpush1.bf16.msra.mxu0 %v4852_v53  ;;  %v4940_v53 = vld [vmem:[%s6559_s10 + $0x80] sm:$0xff]  }
 0x403   :  { %3372 = vmatprep.subr.bf16.mxu0 %v4857_v61 }
 0x406   :  { %3373 = vmatpush1.bf16.msra.mxu0 %v4855_v6 }
 0x407   :  { %3374 = vmatprep.subr.bf16.mxu0 %v4860_v7  ;;  %v4944_v7 = vld [vmem:[%s6559_s10 + $0xa0] sm:$0xff]  }
 0x40a   :  { %3375 = vmatpush1.bf16.msra.mxu0 %v4858_v9  ;;  %v4946_v9 = vld [vmem:[%s6559_s10 + $0xb0] sm:$0xff]  }
 0x40b   :  { %3376 = vmatprep.subr.bf16.mxu0 %v4863_v10  ;;  %v2119_v10 = vld [vmem:[%s6560_s9] sm:$0xf] }
 0x40e   :  { %3377 = vmatpush1.bf16.msra.mxu0 %v4861_v11  ;;  %v2124_v11 = vrot.slane %v2119_v10, %v5124_v40  ;;  %v4948_v40 = vld [vmem:[%s6559_s10 + $0xc0] sm:$0xff]  }
 0x40f   :  { %3378 = vmatprep.subr.bf16.mxu0 %v4866_v0  ;;  %v2128_v0 = vrot.slane %v2119_v10, %v5127_v41  ;;  %v2132_v41 = vrot.slane %v2119_v10, %v5135_v45  ;;  %v4216_v45 = vld [vmem:[%s6561_s11] ss:$0 sm:$0xff] }
 0x412   :  { %3379 = vmatpush1.bf16.msra.mxu0 %v4864_v12 }
 0x413   :  { %3380 = vmatprep.subr.bf16.mxu0 %v4869_v13 }
 0x416   :  { %3381 = vmatpush1.bf16.msra.mxu0 %v4867_v14 }
 0x417   :  { %3391 = vmatprep.subr.bf16.mxu0 %v4872_v15 }
 0x419   :  { %3383 = vmatmul.mubr.bf16.vlgmr.msra.gmra.mrb[12].mxu0 %v6028_v58  ;;  %v4881_v58 = vld [vmem:[%s6557_s8 + $0x46c] ss:$16 sps:$4 sm:$0xff]  }
 0x41a   :  { %3392 = vmatpush1.bf16.msra.mxu0 %v4870_v42  ;;  %3423 = vmatprep.mubr.bf16.mxu0 %v6142_v47  ;;  %v4879_v47 = vld [vmem:[%s6557_s8 + $0x468] ss:$16 sps:$4 sm:$0xff]  }
 0x41b   :  { %3393 = vmatprep.subr.bf16.mxu0 %v4875_v16 }
 0x41e   :  { %3394 = vmatpush1.bf16.msra.mxu0 %v4873_v17 }
 0x41f   :  { %3395 = vmatprep.subr.bf16.mxu0 %v4878_v18 }
 0x422   :  { %3396 = vmatpush1.bf16.msra.mxu0 %v4876_v19 }
 0x423   :  { %3397 = vmatprep.subr.bf16.mxu0 %v4881_v58 }
 0x426   :  { %3398 = vmatpush1.bf16.msra.mxu0 %v4879_v47  ;;  %v4947_v47 = vld [vmem:[%s6559_s10 + $0xb8] sm:$0xff]  }
 0x427   :  { %3399 = vmatprep.subr.bf16.mxu0 %v4884_v20  ;;  %v2136_v20 = vrot.slane %v2119_v10, %v5138_v46 }
 0x42a   :  { %3400 = vmatpush1.bf16.msra.mxu0 %v4882_v21 }
 0x42b   :  { %3401 = vmatprep.subr.bf16.mxu0 %v4887_v22 }
 0x42e   :  { %3402 = vmatpush1.bf16.msra.mxu0 %v4885_v26 }
 0x42f   :  { %3403 = vmatprep.subr.bf16.mxu0 %v4890_v24 }
 0x432   :  { %3404 = vmatpush1.bf16.msra.mxu0 %v4888_v29 }
 0x433   :  { %3405 = vmatprep.subr.bf16.mxu0 %v4893_v5 }
 0x436   :  { %3406 = vmatpush1.bf16.msra.mxu0 %v4891_v30 }
 0x437   :  { %3407 = vmatprep.subr.bf16.mxu0 %v4896_v31 }
 0x43a   :  { %3408 = vmatpush1.bf16.msra.mxu0 %v4894_v25 }
 0x43b   :  { %3409 = vmatprep.subr.bf16.mxu0 %v4899_v32 }
 0x43e   :  { %3410 = vmatpush1.bf16.msra.mxu0 %v4897_v33 }
 0x43f   :  { %3411 = vmatprep.subr.bf16.mxu0 %v4902_v34 }
 0x442   :  { %3412 = vmatpush1.bf16.msra.mxu0 %v4900_v35  ;;  %v4243_v35 = vld [vmem:[%s6562_s12] ss:$0 sm:$0xff] }
 0x443   :  { %3413 = vmatprep.subr.bf16.mxu0 %v4905_v36 }
 0x446   :  { %3414 = vmatpush1.bf16.msra.mxu0 %v4903_v37 }
 0x447   :  { %3415 = vmatprep.subr.bf16.mxu0 %v4908_v27 }
 0x44a   :  { %3416 = vmatpush1.bf16.msra.mxu0 %v4906_v43 }
 0x44b   :  { %3417 = vmatprep.subr.bf16.mxu0 %v4911_v52  ;;  %v3781_v52 = vstv %s6563_s13 }
 0x44e   :  { %3418 = vmatpush1.bf16.msra.mxu0 %v4909_v54 }
 0x44f   :  { %3419 = vmatprep.subr.bf16.mxu0 %v4914_v56 }
 0x452   :  { %3420 = vmatpush1.bf16.msra.mxu0 %v4912_v48 }
 0x453   :  { %3421 = vmatprep.subr.bf16.mxu0 %v4917_v59 }
 0x456   :  { %3422 = vmatpush1.bf16.msra.mxu0 %v4915_v44 }
 0x457   :  { %3432 = vmatprep.subr.bf16.mxu0 %v4920_v62  ;;  %v3791_v62 = vand.u32 127, %v78_v38 }
 0x459   :  { %3424 = vmatmul.mubr.bf16.vlgmr.msra.gmra.mrb[12].mxu0 %v6232_v49  ;;  %v4941_v49 = vld [vmem:[%s6559_s10 + $0x88] sm:$0xff]  }
 0x45a   :  { %3433 = vmatpush1.bf16.msra.mxu0 %v4918_v51  ;;  %3464 = vmatprep.mubr.bf16.mxu0 %v4955_v1  ;;  %v3794_v51 = vsub.s32 %v3791_v62, %v5121_v39 }
 0x45b   :  { %3434 = vmatprep.subr.bf16.mxu0 %v4923_v57 }
 0x45e   :  { %3435 = vmatpush1.bf16.msra.mxu0 %v4921_v55 }
 0x45f   :  { %3727 = vmatprep.subr.bf16.mxu0 %v4955_v1 }
 0x465   :  { %4215 = vmatmul.mubr.msk.bf16.vlgmr.msra.gmra.mrb[12].mxu0 %vm3141_vm3, %v6037_v2  ;;  %v4943_v2 = vld [vmem:[%s6559_s10 + $0x98] sm:$0xff]  }
 0x466   :  { %3728 = vmatpush1.bf16.msra.mxu0 %v4940_v53 }
 0x467   :  { %3729 = vmatprep.subr.bf16.mxu0 %v4955_v1 }
 0x46a   :  { %3730 = vmatpush1.bf16.msra.mxu0 %v4941_v49 }
 0x46b   :  { %3731 = vmatprep.subr.bf16.mxu0 %v4955_v1 }
 0x46c   :  { %v3302_v61 = vpop.f32.mrb[8].mxu0 }
 0x46d   :  { %v3304_v63 = vpop.f32.mrb[9].mxu0 }
 0x46e   :  { %v3306_v4 = vpop.f32.mrb[10].mxu0  ;;  %3732 = vmatpush1.bf16.msra.mxu0 %v4942_v60 }
 0x46f   :  { %v3307_v6 = vpop.f32.mrb[11].mxu0  ;;  %3733 = vmatprep.subr.bf16.mxu0 %v4955_v1 }
 0x472   :  { %3734 = vmatpush1.bf16.msra.mxu0 %v4943_v2 }
 0x473   :  { %3735 = vmatprep.subr.bf16.mxu0 %v4955_v1 }
 0x476   :  { %3736 = vmatpush1.bf16.msra.mxu0 %v4944_v7 }
 0x477   :  { %3737 = vmatprep.subr.bf16.mxu0 %v4955_v1 }
 0x47a   :  { %3738 = vmatpush1.bf16.msra.mxu0 %v4945_v8 }
 0x47b   :  { %3739 = vmatprep.subr.bf16.mxu0 %v4955_v1 }
 0x47e   :  { %3740 = vmatpush1.bf16.msra.mxu0 %v4946_v9 }
 0x47f   :  { %3741 = vmatprep.subr.bf16.mxu0 %v4955_v1 }
 0x482   :  { %3742 = vmatpush1.bf16.msra.mxu0 %v4947_v47 }
 0x483   :  { %3743 = vmatprep.subr.bf16.mxu0 %v4955_v1 }
 0x486   :  { %3744 = vmatpush1.bf16.msra.mxu0 %v4948_v40 }
 0x4a9   :  { %v3261_v12 = vpop.f32.mrb[20].mxu1 }
 0x4aa   :  { %v4295_v13 = vadd.f32 %v3261_v12, %v2124_v11  ;;  %v3263_v14 = vpop.f32.mrb[21].mxu1 }
 0x4ab   :  { %v4297_v15 = vadd.f32 %v3263_v14, %v2128_v0  ;;  %v3265_v42 = vpop.f32.mrb[22].mxu1 }
 0x4ac   :  { %v4296_v16 = vadd.f32 %v4295_v13, %v3302_v61  ;;  %v3266_v17 = vpop.f32.mrb[23].mxu1 }
 0x4ad   :  { %v4298_v18 = vadd.f32 %v4297_v15, %v3304_v63 }
 0x4ae   :  { %v3473_v58 = vpack.c.bf16 %v4296_v16, %v4296_v16 }
 0x4af   :  { %v3474_v19 = vpack.c.bf16 %v4298_v18, %v4298_v18 }
 0x4b1   :  { %3719 = vmatprep.mubr.bf16.mxu1 %v3474_v19 }
 0x4b2   :  { %3720 = vmatmul.mubr.bf16.vlgmr.msra.gmra.mrb[24].mxu1 %v3473_v58 }
 0x538   :  { %v3466_v21 = vpop.f32.mrb[12].mxu0 }
 0x539   :  { %v4299_v22 = vadd.f32 %v3466_v21, %v2132_v41  ;;  %v3468_v23 = vpop.f32.mrb[13].mxu0 }
 0x53a   :  { %v4300_v26 = vadd.f32 %v3468_v23, %v2136_v20  ;;  %v3470_v50 = vpop.f32.mrb[14].mxu0 }
 0x53b   :  { %v3471_v24 = vpop.f32.mrb[15].mxu0  ;;  %v3475_v29 = vpack.c.bf16 %v4299_v22, %v4299_v22 }
 0x53c   :  { %v3476_v28 = vpack.c.bf16 %v4300_v26, %v4300_v26 }
 0x53e   :  { %4242 = vmatprep.mubr.msk.bf16.mxu0 %vm331_vm2, %v3476_v28 }
 0x53f   :  { %3760 = vmatmul.mubr.bf16.vlgmr.msra.gmra.mrb[16].mxu0 %v3475_v29 }
 0x585   :  { %v4283_v1 = vpop.f32.mrb[24].mxu1 }
 0x586   :  { %v4284_v3 = vpop.f32.mrb[25].mxu1 }
 0x587   :  { %v4285_v5 = vadd.f32 %v4284_v3, %v4283_v1  ;;  %v4286_v30 = vpop.f32.mrb[26].mxu1 }
 0x588   :  { %v4287_v31 = vpop.f32.mrb[27].mxu1 }
 0x589   :  { %v3722_v46 = vadd.f32 %v4285_v5, %v4216_v45 }
 0x612   :  { %v3761_v25 = vpop.f32.mrb[16].mxu0 }
 0x613   :  { %v3762_v32 = vadd.f32 %v3761_v25, %v3722_v46  ;;  %v3763_v33 = vpop.f32.mrb[17].mxu0 }
 0x614   :  { %v3764_v34 = vpop.f32.mrb[18].mxu0 }
 0x615   :  { %v3767_v36 = vmax.f32 %v3762_v32, 0.0  ;;  %v3765_v37 = vpop.f32.mrb[19].mxu0 }
 0x617   :  { %v3775_v27 = vmul.f32 %v4243_v35, %v3767_v36 }
 0x619   :  { %v3777_v43 = vsel %vm3776_vm4, %v3775_v27, 0.0 }
 0x61a   :  { %3778 = vadd.xlane.f32.xlu1 %v3777_v43 }
 0x6a7   :  { %v3779_v54 = vpop.xlane.xlu1 %3778 }
 0x6a8   :  { %v3782_v56 = vadd.f32 %v3781_v52, %v3779_v54 }
 0x6aa   :  { %v4244_v48 = vmul.f32 -1.442695, %v3782_v56 }
 0x6ac   :  { %4951 = vpow2.f32 %v4244_v48 }
 0x6b6   :  { %v4952_v59 = vpop.eup %4951 }
 0x6b7   :  { %v3786_v44 = vadd.f32 1.0, %v4952_v59 }
 0x6b9   :  { %4953 = vrcp.f32 %v3786_v44 }
 0x6c3   :  { %v4954_v57 = vpop.eup %4953 }
 0x6c4   :  { %v3795_v55 = vrot.slane %v4954_v57, %v3794_v51 }
 0x6c6   :  { %3798 = vst.msk [vmem:[%s6564_s14] sm:$0x1] %vm3797_vm5, %v3795_v55 }

</bundles_post_ra>
